<compile_context>
chip_gen: v5e
topology: v5e:2x2
jax: 0.10.0
libtpu: 0.0.40
codegen_flags: <defaults>
</compile_context>

<pallas_src>
import functools

import jax
import jax.numpy as jnp
from jax.experimental import pallas as pl
from jax.experimental.pallas import tpu as pltpu


# ---------------------------------------------------------------------------
# The single fused Pallas kernel
# ---------------------------------------------------------------------------
def _lenet_kernel(xk_ref, w1_ref, b1_ref, w2_ref, b2_ref,
                  f1w_ref, f1b_ref, f2w_ref, f2b_ref, f3w_ref, f3b_ref,
                  out_ref, p1s_ref, pr_ref, xf_ref, *, B, S, HALO):
    """Fused LeNet forward.

    xk_ref : (16, 80, S) K-folded conv1 RHS planes:
             xk[4*u+v, 15*dj+3*di+ci, b*64+yh*8+xh] = x[b, ci, 4*yh+u+di, 4*xh+v+dj]
    w1_ref : (8, 80)     conv1 LHS, rows 6..7 and cols 75..79 zero
    b1_ref : (8, 1)      conv1 bias column (rows 6..7 zero)
    w2_ref : (5, 16, 40) conv2 LHS per kernel column dj: w2[dj][co, 8*di+ci]
    b2_ref : (16, 1)
    f1w_ref: (1024, 128) fc1 weights with the view(-1,400) crop absorbed (see packing)
    f2w_ref/f3w_ref: (128, 128) padded, pre-transposed fc2/fc3 weights
    out_ref: (B, 10)
    p1s_ref: (4, 8, S+HALO) scratch: pool1 parity planes (+ zeroed lane halo)
    pr_ref : (6, 48, S)     scratch: restacked, pre-shifted pool1 for conv2
    xf_ref : (BP, 1024)     scratch: fc1 input rows
    """
    f32 = jnp.float32
    w1 = w1_ref[...]                    # (8, 80)
    b1 = b1_ref[...]                    # (8, 1)   broadcasts over lanes
    w2 = w2_ref[...]                    # (5, 16, 40)
    b2 = b2_ref[...]                    # (16, 1)

    # ---- stage 1: conv1 + bias + ReLU + 2x2/2 max pool --------------------------------
    # One aligned (8,80)@(80,S) dot per conv1 output plane (u, v); pooling is a pure
    # elementwise max of the 4 planes of a 2x2 window; bias+ReLU applied after the max
    # (both are monotonic, so this is exact).
    p1s_ref[...] = jnp.zeros((4, 8, S + HALO), f32)   # halo lanes must stay finite (zero)
    for alpha in range(2):
        for beta in range(2):
            m = None
            for q in range(2):
                for p in range(2):
                    u, v = 2 * alpha + q, 2 * beta + p
                    r = jnp.dot(w1, xk_ref[4 * u + v], preferred_element_type=f32)  # (8,S)
                    m = r if m is None else jnp.maximum(m, r)
            # pool1[b, ci, 2*yh+alpha, 2*xh+beta] at lane t = b*64 + yh*8 + xh
            p1s_ref[2 * alpha + beta, :, :S] = jnp.maximum(m + b1, 0.0)

    # ---- restack pool1 with the (row, col) lane shifts pre-applied ---------------------
    # pr_ref[W, 8*V+ci, b*64+y2*8+x2] = pool1[b, ci, 2*y2+V, 2*x2+W].
    # Shift = 8*(V//2) + (W//2) lanes; shifted reads that run past an image/batch only
    # land at y2>=5 or x2>=5 positions, which are discarded because the matching fc1
    # weight rows are zero (halo lanes are zero, so everything stays finite).
    for W in range(6):
        for V in range(6):
            off = 8 * (V // 2) + (W // 2)
            pr_ref[W, 8 * V:8 * V + 8, :] = p1s_ref[2 * (V % 2) + (W % 2), :, off:off + S]

    # ---- stage 2: conv2 + bias + ReLU + 2x2/2 max pool ---------------------------------
    # RHS slices start at sublane offsets {0, 8} and span full lanes -> aligned blocks.
    m2 = None
    for q in range(2):
        for p in range(2):
            acc = None
            for dj in range(5):
                term = jnp.dot(w2[dj], pr_ref[p + dj, 8 * q:8 * q + 40, :],
                               preferred_element_type=f32)        # (16, S)
                acc = term if acc is None else acc + term
            m2 = acc if m2 is None else jnp.maximum(m2, acc)
    p2 = jnp.maximum(m2 + b2, 0.0)      # (16, S); garbage (finite) at y2>=5 or x2>=5

    # ---- fc1 + ReLU + fc2 + ReLU + fc3 --------------------------------------------------
    # The only re-layout left: 8 KB batch de-interleave (16, S) -> (B, 1024); the crop to
    # the valid 5x5 window is handled by zero rows in f1w, so no masking is needed here.
    BP = xf_ref.shape[0]
    xf_ref[...] = jnp.zeros((BP, 1024), f32)
    for c in range(16):
        for b in range(B):
            xf_ref[b:b + 1, 64 * c:64 * (c + 1)] = p2[c:c + 1, 64 * b:64 * (b + 1)]
    xf = xf_ref[...]                                              # (BP, 1024)

    h = jnp.maximum(jnp.dot(xf, f1w_ref[...], preferred_element_type=f32) + f1b_ref[...],
                    0.0)
    h = jnp.maximum(jnp.dot(h, f2w_ref[...], preferred_element_type=f32) + f2b_ref[...],
                    0.0)
    h = jnp.dot(h, f3w_ref[...], preferred_element_type=f32) + f3b_ref[...]
    out_ref[...] = h[:B, :10]


# ---------------------------------------------------------------------------
# pallas_call wrapper (single launch for the whole network)
# ---------------------------------------------------------------------------
def _full_spec(shape):
    return pl.BlockSpec(shape, lambda *_: (0,) * len(shape))


def _pack_conv1_rhs(x):
    """Single-gather packing of the input into the K-folded conv1 RHS planes.

    xk[4*u+v, 15*dj+3*di+ci, b*64+yh*8+xh] = x[b, ci, 4*yh+u+di, 4*xh+v+dj] (zeros outside)
    """
    B = x.shape[0]
    xp = jnp.pad(x.astype(jnp.float32), ((0, 0), (0, 0), (0, 4), (0, 4)))   # (B,3,36,36)
    idx = (4 * jnp.arange(8)[:, None, None] + jnp.arange(4)[None, :, None]
           + jnp.arange(5)[None, None, :])                                  # (8,4,5) <= 35
    g = xp[:, :, idx[:, :, :, None, None, None], idx[None, None, None, :, :, :]]
    # g: (B, 3, 8, 4, 5, 8, 4, 5) with dims (b, ci, yh, u, di, xh, v, dj)
    g = g.transpose(3, 6, 7, 4, 1, 0, 2, 5)          # (u, v, dj, di, ci, b, yh, xh)
    g = g.reshape(16, 75, B * 64)
    return jnp.pad(g, ((0, 0), (0, 5), (0, 0)))      # K padded 75 -> 80     (16, 80, S)


def lenet_forward(prep, x):
    # x: (B, 3, 32, 32) NCHW float32 (LeNet geometry requires 3x32x32)
    B = x.shape[0]
    S = B * 64
    HALO = 24                     # >= 18 = max pre-applied lane shift in the restack
    BP = max(B, 8)

    xk = _pack_conv1_rhs(x)
    args = (xk, prep["w1f"], prep["b1c"], prep["w2f"], prep["b2c"],
            prep["fc1_wp"], prep["fc1_bp"], prep["fc2_wp"], prep["fc2_bp"],
            prep["fc3_wp"], prep["fc3_bp"])
    kernel = functools.partial(_lenet_kernel, B=B, S=S, HALO=HALO)

    flops = 2 * S * (16 * 8 * 80 + 20 * 16 * 40) + 2 * BP * (1024 * 128 + 2 * 128 * 128)
    bytes_accessed = 4 * (16 * 80 * S + 1024 * 128 + 2 * 128 * 128 + 5 * 16 * 40 + B * 10)

    # NOTE: grid=(1,) keeps everything resident in VMEM; for large batch, add a leading
    # "parallel" batch-tile axis (lights up v7x's second TensorCore) and consider manual
    # async copies to prefetch the fc weights behind the conv stage.
    return pl.pallas_call(
        kernel,
        out_shape=jax.ShapeDtypeStruct((B, 10), jnp.float32),
        grid=(1,),
        in_specs=[_full_spec(a.shape) for a in args],
        out_specs=_full_spec((B, 10)),
        scratch_shapes=[
            pltpu.VMEM((4, 8, S + HALO), jnp.float32),   # pool1 parity planes (+ zero halo)
            pltpu.VMEM((6, 48, S), jnp.float32),         # restacked pool1 for conv2
            pltpu.VMEM((BP, 1024), jnp.float32),         # fc1 input rows
        ],
        compiler_params=pltpu.CompilerParams(dimension_semantics=("arbitrary",)),
        cost_estimate=pl.CostEstimate(flops=int(flops), transcendentals=0,
                                      bytes_accessed=int(bytes_accessed)),
    )(*args)


# ---------------------------------------------------------------------------
# Parameters (deterministic, PyTorch-default-style uniform init) + kernel packing
# ---------------------------------------------------------------------------
def init_params(key):
    ks = jax.random.split(key, 10)

    def u(k, shape, fan_in):
        bound = 1.0 / jnp.sqrt(jnp.float32(fan_in))
        return jax.random.uniform(k, shape, jnp.float32, -bound, bound)

    return {
        "conv1_w": u(ks[0], (6, 3, 5, 5), 3 * 25),
        "conv1_b": u(ks[1], (6,), 3 * 25),
        "conv2_w": u(ks[2], (16, 6, 5, 5), 6 * 25),
        "conv2_b": u(ks[3], (16,), 6 * 25),
        "fc1_w": u(ks[4], (120, 400), 400),
        "fc1_b": u(ks[5], (120,), 400),
        "fc2_w": u(ks[6], (84, 120), 120),
        "fc2_b": u(ks[7], (84,), 120),
        "fc3_w": u(ks[8], (10, 84), 84),
        "fc3_b": u(ks[9], (10,), 84),
    }


def prepare_params(params):
    """One-time repacking of the PyTorch-layout weights into kernel layouts."""
    f32 = jnp.float32

    # conv1: single (8, 80) LHS, K = 15*dj + 3*di + ci (K padded 75->80, rows 6->8).
    w1f = jnp.transpose(params["conv1_w"], (0, 3, 2, 1)).reshape(6, 75)
    w1f = jnp.pad(w1f, ((0, 2), (0, 5))).astype(f32)
    b1c = jnp.pad(params["conv1_b"].reshape(6, 1), ((0, 2), (0, 0))).astype(f32)

    # conv2: per-dj (16, 40) LHS, K = 8*di + ci (ci padded 6->8 for aligned RHS slices).
    w2p = jnp.pad(params["conv2_w"], ((0, 0), (0, 2), (0, 0), (0, 0)))     # (16, 8, 5, 5)
    w2f = jnp.transpose(w2p, (3, 0, 2, 1)).reshape(5, 16, 40).astype(f32)
    b2c = params["conv2_b"].reshape(16, 1).astype(f32)

    # fc1: absorb x.view(-1, 400): rows indexed by c*64 + y2*8 + x2, zero rows for
    # y2 >= 5 or x2 >= 5 (they also neutralize garbage pool2 lanes); N padded 120 -> 128.
    f1 = params["fc1_w"].reshape(120, 16, 5, 5)
    f1 = jnp.pad(f1, ((0, 8), (0, 0), (0, 3), (0, 3)))                     # (128, 16, 8, 8)
    fc1_wp = jnp.transpose(f1, (1, 2, 3, 0)).reshape(1024, 128).astype(f32)
    fc1_bp = jnp.pad(params["fc1_b"], (0, 8)).reshape(1, 128).astype(f32)

    # fc2/fc3: pre-transposed (K, N) with K/N padded to 128 (zero pads stay exact zeros).
    fc2_wp = jnp.pad(params["fc2_w"].T, ((0, 8), (0, 44))).astype(f32)     # (128, 128)
    fc2_bp = jnp.pad(params["fc2_b"], (0, 44)).reshape(1, 128).astype(f32)
    fc3_wp = jnp.pad(params["fc3_w"].T, ((0, 44), (0, 118))).astype(f32)   # (128, 128)
    fc3_bp = jnp.pad(params["fc3_b"], (0, 118)).reshape(1, 128).astype(f32)

    return {"w1f": w1f, "b1c": b1c, "w2f": w2f, "b2c": b2c,
            "fc1_wp": fc1_wp, "fc1_bp": fc1_bp, "fc2_wp": fc2_wp, "fc2_bp": fc2_bp,
            "fc3_wp": fc3_wp, "fc3_bp": fc3_bp}


# ---------------------------------------------------------------------------
# Pure-JAX reference (exactly the PyTorch forward) for a correctness check
# ---------------------------------------------------------------------------
def lenet_reference(params, x):
    hi = jax.lax.Precision.HIGHEST
    dn = ("NCHW", "OIHW", "NCHW")

    def conv(z, w, b):
        z = jax.lax.conv_general_dilated(z, w, (1, 1), "VALID",
                                         dimension_numbers=dn, precision=hi)
        return jax.nn.relu(z + b[None, :, None, None])

    def pool(z):
        return jax.lax.reduce_window(z, -jnp.inf, jax.lax.max,
                                     (1, 1, 2, 2), (1, 1, 2, 2), "VALID")

    z = pool(conv(x, params["conv1_w"], params["conv1_b"]))
    z = pool(conv(z, params["conv2_w"], params["conv2_b"]))
    z = z.reshape(z.shape[0], -1)
    z = jax.nn.relu(jnp.dot(z, params["fc1_w"].T, precision=hi) + params["fc1_b"])
    z = jax.nn.relu(jnp.dot(z, params["fc2_w"].T, precision=hi) + params["fc2_b"])
    return jnp.dot(z, params["fc3_w"].T, precision=hi) + params["fc3_b"]


if __name__ == "__main__":
    key = jax.random.PRNGKey(0)
    pkey, xkey = jax.random.split(key)
    params = init_params(pkey)
    prep = prepare_params(params)

    # LeNet geometry requires 3x32x32 inputs (16*5*5 flatten); small batch = 2.
    x = jax.random.normal(xkey, (2, 3, 32, 32), jnp.float32)

    out = jax.jit(lenet_forward)(prep, x)
    jax.block_until_ready(out)
    assert out.shape == (2, 10) and out.dtype == jnp.float32

    ref = jax.jit(lenet_reference)(params, x)
    err = jnp.max(jnp.abs(out - ref))
    assert jnp.allclose(out, ref, rtol=2e-2, atol=2e-2), f"max abs err {err}"
    print("KERNEL_OK")
</pallas_src>

<mosaic_0001>
module attributes {stable_mosaic.version = 11 : i64} {
  func.func @_lenet_kernel(%arg0: i32, %arg1: memref<16x80x128xf32, #tpu.memory_space<vmem>>, %arg2: memref<8x80xf32, #tpu.memory_space<vmem>>, %arg3: memref<8x1xf32, #tpu.memory_space<vmem>>, %arg4: memref<5x16x40xf32, #tpu.memory_space<vmem>>, %arg5: memref<16x1xf32, #tpu.memory_space<vmem>>, %arg6: memref<1024x128xf32, #tpu.memory_space<vmem>>, %arg7: memref<1x128xf32, #tpu.memory_space<vmem>>, %arg8: memref<128x128xf32, #tpu.memory_space<vmem>>, %arg9: memref<1x128xf32, #tpu.memory_space<vmem>>, %arg10: memref<128x128xf32, #tpu.memory_space<vmem>>, %arg11: memref<1x128xf32, #tpu.memory_space<vmem>>, %arg12: memref<2x10xf32, #tpu.memory_space<vmem>>, %arg13: memref<4x8x152xf32, #tpu.memory_space<vmem>>, %arg14: memref<6x48x128xf32, #tpu.memory_space<vmem>>, %arg15: memref<8x1024xf32, #tpu.memory_space<vmem>>) attributes {dimension_semantics = [#tpu.dimension_semantics<arbitrary>], iteration_bounds = array<i64: 1>, scalar_prefetch = 0 : i64, scratch_operands = 3 : i64, tpu.core_type = #tpu.core_type<tc>, window_params = [{pipeline_mode = #tpu.pipeline_mode<synchronous>, transform_indices = @transform_0, window_bounds = array<i64: 16, 80, 128>}, {pipeline_mode = #tpu.pipeline_mode<synchronous>, transform_indices = @transform_1, window_bounds = array<i64: 8, 80>}, {pipeline_mode = #tpu.pipeline_mode<synchronous>, transform_indices = @transform_2, window_bounds = array<i64: 8, 1>}, {pipeline_mode = #tpu.pipeline_mode<synchronous>, transform_indices = @transform_3, window_bounds = array<i64: 5, 16, 40>}, {pipeline_mode = #tpu.pipeline_mode<synchronous>, transform_indices = @transform_4, window_bounds = array<i64: 16, 1>}, {pipeline_mode = #tpu.pipeline_mode<synchronous>, transform_indices = @transform_5, window_bounds = array<i64: 1024, 128>}, {pipeline_mode = #tpu.pipeline_mode<synchronous>, transform_indices = @transform_6, window_bounds = array<i64: 1, 128>}, {pipeline_mode = #tpu.pipeline_mode<synchronous>, transform_indices = @transform_7, window_bounds = array<i64: 128, 128>}, {pipeline_mode = #tpu.pipeline_mode<synchronous>, transform_indices = @transform_8, window_bounds = array<i64: 1, 128>}, {pipeline_mode = #tpu.pipeline_mode<synchronous>, transform_indices = @transform_9, window_bounds = array<i64: 128, 128>}, {pipeline_mode = #tpu.pipeline_mode<synchronous>, transform_indices = @transform_10, window_bounds = array<i64: 1, 128>}, {pipeline_mode = #tpu.pipeline_mode<synchronous>, transform_indices = @transform_11, window_bounds = array<i64: 2, 10>}]} {
    %c0 = arith.constant 0 : index
    %c0_0 = arith.constant 0 : index
    %0 = vector.load %arg2[%c0, %c0_0] : memref<8x80xf32, #tpu.memory_space<vmem>>, vector<8x80xf32>
    %c0_1 = arith.constant 0 : index
    %c0_2 = arith.constant 0 : index
    %1 = vector.load %arg3[%c0_1, %c0_2] : memref<8x1xf32, #tpu.memory_space<vmem>>, vector<8x1xf32>
    %c0_3 = arith.constant 0 : index
    %c0_4 = arith.constant 0 : index
    %c0_5 = arith.constant 0 : index
    %2 = vector.load %arg4[%c0_3, %c0_4, %c0_5] : memref<5x16x40xf32, #tpu.memory_space<vmem>>, vector<5x16x40xf32>
    %c0_6 = arith.constant 0 : index
    %c0_7 = arith.constant 0 : index
    %3 = vector.load %arg5[%c0_6, %c0_7] : memref<16x1xf32, #tpu.memory_space<vmem>>, vector<16x1xf32>
    %cst = arith.constant 0.000000e+00 : f32
    %4 = vector.broadcast %cst : f32 to vector<4x8x152xf32>
    %c0_8 = arith.constant 0 : index
    %c0_9 = arith.constant 0 : index
    %c0_10 = arith.constant 0 : index
    %5 = vector.load %arg13[%c0_8, %c0_9, %c0_10] : memref<4x8x152xf32, #tpu.memory_space<vmem>>, vector<4x8x152xf32>
    tpu.vector_store %arg13[%c0_8, %c0_9, %c0_10], %4 {strides = array<i32>} : memref<4x8x152xf32, #tpu.memory_space<vmem>>, vector<4x8x152xf32>,
    %c0_11 = arith.constant 0 : index
    %c0_12 = arith.constant 0 : index
    %c0_13 = arith.constant 0 : index
    %6 = vector.load %arg1[%c0_11, %c0_12, %c0_13] : memref<16x80x128xf32, #tpu.memory_space<vmem>>, vector<1x80x128xf32>
    %7 = vector.shape_cast %6 : vector<1x80x128xf32> to vector<80x128xf32>
    %cst_14 = arith.constant dense<0.000000e+00> : vector<8x128xf32>
    %8 = tpu.matmul %0, %7, %cst_14 {dimension_numbers = #tpu.dot_dimension_numbers<[1], [0], [0], [1], [0, 0, 1, 1], [], []>} : vector<8x80xf32>, vector<80x128xf32>, vector<8x128xf32> -> vector<8x128xf32>
    %c1 = arith.constant 1 : index
    %c0_15 = arith.constant 0 : index
    %c0_16 = arith.constant 0 : index
    %9 = vector.load %arg1[%c1, %c0_15, %c0_16] : memref<16x80x128xf32, #tpu.memory_space<vmem>>, vector<1x80x128xf32>
    %10 = vector.shape_cast %9 : vector<1x80x128xf32> to vector<80x128xf32>
    %cst_17 = arith.constant dense<0.000000e+00> : vector<8x128xf32>
    %11 = tpu.matmul %0, %10, %cst_17 {dimension_numbers = #tpu.dot_dimension_numbers<[1], [0], [0], [1], [0, 0, 1, 1], [], []>} : vector<8x80xf32>, vector<80x128xf32>, vector<8x128xf32> -> vector<8x128xf32>
    %12 = arith.maximumf %8, %11 : vector<8x128xf32>
    %c4 = arith.constant 4 : index
    %c0_18 = arith.constant 0 : index
    %c0_19 = arith.constant 0 : index
    %13 = vector.load %arg1[%c4, %c0_18, %c0_19] : memref<16x80x128xf32, #tpu.memory_space<vmem>>, vector<1x80x128xf32>
    %14 = vector.shape_cast %13 : vector<1x80x128xf32> to vector<80x128xf32>
    %cst_20 = arith.constant dense<0.000000e+00> : vector<8x128xf32>
    %15 = tpu.matmul %0, %14, %cst_20 {dimension_numbers = #tpu.dot_dimension_numbers<[1], [0], [0], [1], [0, 0, 1, 1], [], []>} : vector<8x80xf32>, vector<80x128xf32>, vector<8x128xf32> -> vector<8x128xf32>
    %16 = arith.maximumf %12, %15 : vector<8x128xf32>
    %c5 = arith.constant 5 : index
    %c0_21 = arith.constant 0 : index
    %c0_22 = arith.constant 0 : index
    %17 = vector.load %arg1[%c5, %c0_21, %c0_22] : memref<16x80x128xf32, #tpu.memory_space<vmem>>, vector<1x80x128xf32>
    %18 = vector.shape_cast %17 : vector<1x80x128xf32> to vector<80x128xf32>
    %cst_23 = arith.constant dense<0.000000e+00> : vector<8x128xf32>
    %19 = tpu.matmul %0, %18, %cst_23 {dimension_numbers = #tpu.dot_dimension_numbers<[1], [0], [0], [1], [0, 0, 1, 1], [], []>} : vector<8x80xf32>, vector<80x128xf32>, vector<8x128xf32> -> vector<8x128xf32>
    %20 = arith.maximumf %16, %19 : vector<8x128xf32>
    %21 = vector.broadcast %1 : vector<8x1xf32> to vector<8x128xf32>
    %22 = arith.addf %20, %21 : vector<8x128xf32>
    %cst_24 = arith.constant 0.000000e+00 : f32
    %23 = vector.broadcast %cst_24 : f32 to vector<8x128xf32>
    %24 = arith.maximumf %22, %23 : vector<8x128xf32>
    %c0_25 = arith.constant 0 : index
    %c0_26 = arith.constant 0 : index
    %c0_27 = arith.constant 0 : index
    %25 = vector.load %arg13[%c0_25, %c0_26, %c0_27] : memref<4x8x152xf32, #tpu.memory_space<vmem>>, vector<1x8x128xf32>
    %26 = vector.shape_cast %25 : vector<1x8x128xf32> to vector<8x128xf32>
    %27 = vector.shape_cast %24 : vector<8x128xf32> to vector<1x8x128xf32>
    tpu.vector_store %arg13[%c0_25, %c0_26, %c0_27], %27 {strides = array<i32>} : memref<4x8x152xf32, #tpu.memory_space<vmem>>, vector<1x8x128xf32>,
    %c2 = arith.constant 2 : index
    %c0_28 = arith.constant 0 : index
    %c0_29 = arith.constant 0 : index
    %28 = vector.load %arg1[%c2, %c0_28, %c0_29] : memref<16x80x128xf32, #tpu.memory_space<vmem>>, vector<1x80x128xf32>
    %29 = vector.shape_cast %28 : vector<1x80x128xf32> to vector<80x128xf32>
    %cst_30 = arith.constant dense<0.000000e+00> : vector<8x128xf32>
    %30 = tpu.matmul %0, %29, %cst_30 {dimension_numbers = #tpu.dot_dimension_numbers<[1], [0], [0], [1], [0, 0, 1, 1], [], []>} : vector<8x80xf32>, vector<80x128xf32>, vector<8x128xf32> -> vector<8x128xf32>
    %c3 = arith.constant 3 : index
    %c0_31 = arith.constant 0 : index
    %c0_32 = arith.constant 0 : index
    %31 = vector.load %arg1[%c3, %c0_31, %c0_32] : memref<16x80x128xf32, #tpu.memory_space<vmem>>, vector<1x80x128xf32>
    %32 = vector.shape_cast %31 : vector<1x80x128xf32> to vector<80x128xf32>
    %cst_33 = arith.constant dense<0.000000e+00> : vector<8x128xf32>
    %33 = tpu.matmul %0, %32, %cst_33 {dimension_numbers = #tpu.dot_dimension_numbers<[1], [0], [0], [1], [0, 0, 1, 1], [], []>} : vector<8x80xf32>, vector<80x128xf32>, vector<8x128xf32> -> vector<8x128xf32>
    %34 = arith.maximumf %30, %33 : vector<8x128xf32>
    %c6 = arith.constant 6 : index
    %c0_34 = arith.constant 0 : index
    %c0_35 = arith.constant 0 : index
    %35 = vector.load %arg1[%c6, %c0_34, %c0_35] : memref<16x80x128xf32, #tpu.memory_space<vmem>>, vector<1x80x128xf32>
    %36 = vector.shape_cast %35 : vector<1x80x128xf32> to vector<80x128xf32>
    %cst_36 = arith.constant dense<0.000000e+00> : vector<8x128xf32>
    %37 = tpu.matmul %0, %36, %cst_36 {dimension_numbers = #tpu.dot_dimension_numbers<[1], [0], [0], [1], [0, 0, 1, 1], [], []>} : vector<8x80xf32>, vector<80x128xf32>, vector<8x128xf32> -> vector<8x128xf32>
    %38 = arith.maximumf %34, %37 : vector<8x128xf32>
    %c7 = arith.constant 7 : index
    %c0_37 = arith.constant 0 : index
    %c0_38 = arith.constant 0 : index
    %39 = vector.load %arg1[%c7, %c0_37, %c0_38] : memref<16x80x128xf32, #tpu.memory_space<vmem>>, vector<1x80x128xf32>
    %40 = vector.shape_cast %39 : vector<1x80x128xf32> to vector<80x128xf32>
    %cst_39 = arith.constant dense<0.000000e+00> : vector<8x128xf32>
    %41 = tpu.matmul %0, %40, %cst_39 {dimension_numbers = #tpu.dot_dimension_numbers<[1], [0], [0], [1], [0, 0, 1, 1], [], []>} : vector<8x80xf32>, vector<80x128xf32>, vector<8x128xf32> -> vector<8x128xf32>
    %42 = arith.maximumf %38, %41 : vector<8x128xf32>
    %43 = vector.broadcast %1 : vector<8x1xf32> to vector<8x128xf32>
    %44 = arith.addf %42, %43 : vector<8x128xf32>
    %cst_40 = arith.constant 0.000000e+00 : f32
    %45 = vector.broadcast %cst_40 : f32 to vector<8x128xf32>
    %46 = arith.maximumf %44, %45 : vector<8x128xf32>
    %c1_41 = arith.constant 1 : index
    %c0_42 = arith.constant 0 : index
    %c0_43 = arith.constant 0 : index
    %47 = vector.load %arg13[%c1_41, %c0_42, %c0_43] : memref<4x8x152xf32, #tpu.memory_space<vmem>>, vector<1x8x128xf32>
    %48 = vector.shape_cast %47 : vector<1x8x128xf32> to vector<8x128xf32>
    %49 = vector.shape_cast %46 : vector<8x128xf32> to vector<1x8x128xf32>
    tpu.vector_store %arg13[%c1_41, %c0_42, %c0_43], %49 {strides = array<i32>} : memref<4x8x152xf32, #tpu.memory_space<vmem>>, vector<1x8x128xf32>,
    %c8 = arith.constant 8 : index
    %c0_44 = arith.constant 0 : index
    %c0_45 = arith.constant 0 : index
    %50 = vector.load %arg1[%c8, %c0_44, %c0_45] : memref<16x80x128xf32, #tpu.memory_space<vmem>>, vector<1x80x128xf32>
    %51 = vector.shape_cast %50 : vector<1x80x128xf32> to vector<80x128xf32>
    %cst_46 = arith.constant dense<0.000000e+00> : vector<8x128xf32>
    %52 = tpu.matmul %0, %51, %cst_46 {dimension_numbers = #tpu.dot_dimension_numbers<[1], [0], [0], [1], [0, 0, 1, 1], [], []>} : vector<8x80xf32>, vector<80x128xf32>, vector<8x128xf32> -> vector<8x128xf32>
    %c9 = arith.constant 9 : index
    %c0_47 = arith.constant 0 : index
    %c0_48 = arith.constant 0 : index
    %53 = vector.load %arg1[%c9, %c0_47, %c0_48] : memref<16x80x128xf32, #tpu.memory_space<vmem>>, vector<1x80x128xf32>
    %54 = vector.shape_cast %53 : vector<1x80x128xf32> to vector<80x128xf32>
    %cst_49 = arith.constant dense<0.000000e+00> : vector<8x128xf32>
    %55 = tpu.matmul %0, %54, %cst_49 {dimension_numbers = #tpu.dot_dimension_numbers<[1], [0], [0], [1], [0, 0, 1, 1], [], []>} : vector<8x80xf32>, vector<80x128xf32>, vector<8x128xf32> -> vector<8x128xf32>
    %56 = arith.maximumf %52, %55 : vector<8x128xf32>
    %c12 = arith.constant 12 : index
    %c0_50 = arith.constant 0 : index
    %c0_51 = arith.constant 0 : index
    %57 = vector.load %arg1[%c12, %c0_50, %c0_51] : memref<16x80x128xf32, #tpu.memory_space<vmem>>, vector<1x80x128xf32>
    %58 = vector.shape_cast %57 : vector<1x80x128xf32> to vector<80x128xf32>
    %cst_52 = arith.constant dense<0.000000e+00> : vector<8x128xf32>
    %59 = tpu.matmul %0, %58, %cst_52 {dimension_numbers = #tpu.dot_dimension_numbers<[1], [0], [0], [1], [0, 0, 1, 1], [], []>} : vector<8x80xf32>, vector<80x128xf32>, vector<8x128xf32> -> vector<8x128xf32>
    %60 = arith.maximumf %56, %59 : vector<8x128xf32>
    %c13 = arith.constant 13 : index
    %c0_53 = arith.constant 0 : index
    %c0_54 = arith.constant 0 : index
    %61 = vector.load %arg1[%c13, %c0_53, %c0_54] : memref<16x80x128xf32, #tpu.memory_space<vmem>>, vector<1x80x128xf32>
    %62 = vector.shape_cast %61 : vector<1x80x128xf32> to vector<80x128xf32>
    %cst_55 = arith.constant dense<0.000000e+00> : vector<8x128xf32>
    %63 = tpu.matmul %0, %62, %cst_55 {dimension_numbers = #tpu.dot_dimension_numbers<[1], [0], [0], [1], [0, 0, 1, 1], [], []>} : vector<8x80xf32>, vector<80x128xf32>, vector<8x128xf32> -> vector<8x128xf32>
    %64 = arith.maximumf %60, %63 : vector<8x128xf32>
    %65 = vector.broadcast %1 : vector<8x1xf32> to vector<8x128xf32>
    %66 = arith.addf %64, %65 : vector<8x128xf32>
    %cst_56 = arith.constant 0.000000e+00 : f32
    %67 = vector.broadcast %cst_56 : f32 to vector<8x128xf32>
    %68 = arith.maximumf %66, %67 : vector<8x128xf32>
    %c2_57 = arith.constant 2 : index
    %c0_58 = arith.constant 0 : index
    %c0_59 = arith.constant 0 : index
    %69 = vector.load %arg13[%c2_57, %c0_58, %c0_59] : memref<4x8x152xf32, #tpu.memory_space<vmem>>, vector<1x8x128xf32>
    %70 = vector.shape_cast %69 : vector<1x8x128xf32> to vector<8x128xf32>
    %71 = vector.shape_cast %68 : vector<8x128xf32> to vector<1x8x128xf32>
    tpu.vector_store %arg13[%c2_57, %c0_58, %c0_59], %71 {strides = array<i32>} : memref<4x8x152xf32, #tpu.memory_space<vmem>>, vector<1x8x128xf32>,
    %c10 = arith.constant 10 : index
    %c0_60 = arith.constant 0 : index
    %c0_61 = arith.constant 0 : index
    %72 = vector.load %arg1[%c10, %c0_60, %c0_61] : memref<16x80x128xf32, #tpu.memory_space<vmem>>, vector<1x80x128xf32>
    %73 = vector.shape_cast %72 : vector<1x80x128xf32> to vector<80x128xf32>
    %cst_62 = arith.constant dense<0.000000e+00> : vector<8x128xf32>
    %74 = tpu.matmul %0, %73, %cst_62 {dimension_numbers = #tpu.dot_dimension_numbers<[1], [0], [0], [1], [0, 0, 1, 1], [], []>} : vector<8x80xf32>, vector<80x128xf32>, vector<8x128xf32> -> vector<8x128xf32>
    %c11 = arith.constant 11 : index
    %c0_63 = arith.constant 0 : index
    %c0_64 = arith.constant 0 : index
    %75 = vector.load %arg1[%c11, %c0_63, %c0_64] : memref<16x80x128xf32, #tpu.memory_space<vmem>>, vector<1x80x128xf32>
    %76 = vector.shape_cast %75 : vector<1x80x128xf32> to vector<80x128xf32>
    %cst_65 = arith.constant dense<0.000000e+00> : vector<8x128xf32>
    %77 = tpu.matmul %0, %76, %cst_65 {dimension_numbers = #tpu.dot_dimension_numbers<[1], [0], [0], [1], [0, 0, 1, 1], [], []>} : vector<8x80xf32>, vector<80x128xf32>, vector<8x128xf32> -> vector<8x128xf32>
    %78 = arith.maximumf %74, %77 : vector<8x128xf32>
    %c14 = arith.constant 14 : index
    %c0_66 = arith.constant 0 : index
    %c0_67 = arith.constant 0 : index
    %79 = vector.load %arg1[%c14, %c0_66, %c0_67] : memref<16x80x128xf32, #tpu.memory_space<vmem>>, vector<1x80x128xf32>
    %80 = vector.shape_cast %79 : vector<1x80x128xf32> to vector<80x128xf32>
    %cst_68 = arith.constant dense<0.000000e+00> : vector<8x128xf32>
    %81 = tpu.matmul %0, %80, %cst_68 {dimension_numbers = #tpu.dot_dimension_numbers<[1], [0], [0], [1], [0, 0, 1, 1], [], []>} : vector<8x80xf32>, vector<80x128xf32>, vector<8x128xf32> -> vector<8x128xf32>
    %82 = arith.maximumf %78, %81 : vector<8x128xf32>
    %c15 = arith.constant 15 : index
    %c0_69 = arith.constant 0 : index
    %c0_70 = arith.constant 0 : index
    %83 = vector.load %arg1[%c15, %c0_69, %c0_70] : memref<16x80x128xf32, #tpu.memory_space<vmem>>, vector<1x80x128xf32>
    %84 = vector.shape_cast %83 : vector<1x80x128xf32> to vector<80x128xf32>
    %cst_71 = arith.constant dense<0.000000e+00> : vector<8x128xf32>
    %85 = tpu.matmul %0, %84, %cst_71 {dimension_numbers = #tpu.dot_dimension_numbers<[1], [0], [0], [1], [0, 0, 1, 1], [], []>} : vector<8x80xf32>, vector<80x128xf32>, vector<8x128xf32> -> vector<8x128xf32>
    %86 = arith.maximumf %82, %85 : vector<8x128xf32>
    %87 = vector.broadcast %1 : vector<8x1xf32> to vector<8x128xf32>
    %88 = arith.addf %86, %87 : vector<8x128xf32>
    %cst_72 = arith.constant 0.000000e+00 : f32
    %89 = vector.broadcast %cst_72 : f32 to vector<8x128xf32>
    %90 = arith.maximumf %88, %89 : vector<8x128xf32>
    %c3_73 = arith.constant 3 : index
    %c0_74 = arith.constant 0 : index
    %c0_75 = arith.constant 0 : index
    %91 = vector.load %arg13[%c3_73, %c0_74, %c0_75] : memref<4x8x152xf32, #tpu.memory_space<vmem>>, vector<1x8x128xf32>
    %92 = vector.shape_cast %91 : vector<1x8x128xf32> to vector<8x128xf32>
    %93 = vector.shape_cast %90 : vector<8x128xf32> to vector<1x8x128xf32>
    tpu.vector_store %arg13[%c3_73, %c0_74, %c0_75], %93 {strides = array<i32>} : memref<4x8x152xf32, #tpu.memory_space<vmem>>, vector<1x8x128xf32>,
    %c0_76 = arith.constant 0 : index
    %c0_77 = arith.constant 0 : index
    %c0_78 = arith.constant 0 : index
    %94 = vector.load %arg13[%c0_76, %c0_77, %c0_78] : memref<4x8x152xf32, #tpu.memory_space<vmem>>, vector<1x8x128xf32>
    %95 = vector.shape_cast %94 : vector<1x8x128xf32> to vector<8x128xf32>
    %c0_79 = arith.constant 0 : index
    %c0_80 = arith.constant 0 : index
    %c0_81 = arith.constant 0 : index
    %96 = vector.load %arg14[%c0_79, %c0_80, %c0_81] : memref<6x48x128xf32, #tpu.memory_space<vmem>>, vector<1x8x128xf32>
    %97 = vector.shape_cast %96 : vector<1x8x128xf32> to vector<8x128xf32>
    %98 = vector.shape_cast %95 : vector<8x128xf32> to vector<1x8x128xf32>
    tpu.vector_store %arg14[%c0_79, %c0_80, %c0_81], %98 {strides = array<i32>} : memref<6x48x128xf32, #tpu.memory_space<vmem>>, vector<1x8x128xf32>,
    %c2_82 = arith.constant 2 : index
    %c0_83 = arith.constant 0 : index
    %c0_84 = arith.constant 0 : index
    %99 = vector.load %arg13[%c2_82, %c0_83, %c0_84] : memref<4x8x152xf32, #tpu.memory_space<vmem>>, vector<1x8x128xf32>
    %100 = vector.shape_cast %99 : vector<1x8x128xf32> to vector<8x128xf32>
    %c0_85 = arith.constant 0 : index
    %c8_86 = arith.constant 8 : index
    %c0_87 = arith.constant 0 : index
    %101 = vector.load %arg14[%c0_85, %c8_86, %c0_87] : memref<6x48x128xf32, #tpu.memory_space<vmem>>, vector<1x8x128xf32>
    %102 = vector.shape_cast %101 : vector<1x8x128xf32> to vector<8x128xf32>
    %103 = vector.shape_cast %100 : vector<8x128xf32> to vector<1x8x128xf32>
    tpu.vector_store %arg14[%c0_85, %c8_86, %c0_87], %103 {strides = array<i32>} : memref<6x48x128xf32, #tpu.memory_space<vmem>>, vector<1x8x128xf32>,
    %c0_88 = arith.constant 0 : index
    %c0_89 = arith.constant 0 : index
    %c8_90 = arith.constant 8 : index
    %104 = vector.load %arg13[%c0_88, %c0_89, %c8_90] : memref<4x8x152xf32, #tpu.memory_space<vmem>>, vector<1x8x128xf32>
    %105 = vector.shape_cast %104 : vector<1x8x128xf32> to vector<8x128xf32>
    %c0_91 = arith.constant 0 : index
    %c16 = arith.constant 16 : index
    %c0_92 = arith.constant 0 : index
    %106 = vector.load %arg14[%c0_91, %c16, %c0_92] : memref<6x48x128xf32, #tpu.memory_space<vmem>>, vector<1x8x128xf32>
    %107 = vector.shape_cast %106 : vector<1x8x128xf32> to vector<8x128xf32>
    %108 = vector.shape_cast %105 : vector<8x128xf32> to vector<1x8x128xf32>
    tpu.vector_store %arg14[%c0_91, %c16, %c0_92], %108 {strides = array<i32>} : memref<6x48x128xf32, #tpu.memory_space<vmem>>, vector<1x8x128xf32>,
    %c2_93 = arith.constant 2 : index
    %c0_94 = arith.constant 0 : index
    %c8_95 = arith.constant 8 : index
    %109 = vector.load %arg13[%c2_93, %c0_94, %c8_95] : memref<4x8x152xf32, #tpu.memory_space<vmem>>, vector<1x8x128xf32>
    %110 = vector.shape_cast %109 : vector<1x8x128xf32> to vector<8x128xf32>
    %c0_96 = arith.constant 0 : index
    %c24 = arith.constant 24 : index
    %c0_97 = arith.constant 0 : index
    %111 = vector.load %arg14[%c0_96, %c24, %c0_97] : memref<6x48x128xf32, #tpu.memory_space<vmem>>, vector<1x8x128xf32>
    %112 = vector.shape_cast %111 : vector<1x8x128xf32> to vector<8x128xf32>
    %113 = vector.shape_cast %110 : vector<8x128xf32> to vector<1x8x128xf32>
    tpu.vector_store %arg14[%c0_96, %c24, %c0_97], %113 {strides = array<i32>} : memref<6x48x128xf32, #tpu.memory_space<vmem>>, vector<1x8x128xf32>,
    %c0_98 = arith.constant 0 : index
    %c0_99 = arith.constant 0 : index
    %c16_100 = arith.constant 16 : index
    %114 = vector.load %arg13[%c0_98, %c0_99, %c16_100] : memref<4x8x152xf32, #tpu.memory_space<vmem>>, vector<1x8x128xf32>
    %115 = vector.shape_cast %114 : vector<1x8x128xf32> to vector<8x128xf32>
    %c0_101 = arith.constant 0 : index
    %c32 = arith.constant 32 : index
    %c0_102 = arith.constant 0 : index
    %116 = vector.load %arg14[%c0_101, %c32, %c0_102] : memref<6x48x128xf32, #tpu.memory_space<vmem>>, vector<1x8x128xf32>
    %117 = vector.shape_cast %116 : vector<1x8x128xf32> to vector<8x128xf32>
    %118 = vector.shape_cast %115 : vector<8x128xf32> to vector<1x8x128xf32>
    tpu.vector_store %arg14[%c0_101, %c32, %c0_102], %118 {strides = array<i32>} : memref<6x48x128xf32, #tpu.memory_space<vmem>>, vector<1x8x128xf32>,
    %c2_103 = arith.constant 2 : index
    %c0_104 = arith.constant 0 : index
    %c16_105 = arith.constant 16 : index
    %119 = vector.load %arg13[%c2_103, %c0_104, %c16_105] : memref<4x8x152xf32, #tpu.memory_space<vmem>>, vector<1x8x128xf32>
    %120 = vector.shape_cast %119 : vector<1x8x128xf32> to vector<8x128xf32>
    %c0_106 = arith.constant 0 : index
    %c40 = arith.constant 40 : index
    %c0_107 = arith.constant 0 : index
    %121 = vector.load %arg14[%c0_106, %c40, %c0_107] : memref<6x48x128xf32, #tpu.memory_space<vmem>>, vector<1x8x128xf32>
    %122 = vector.shape_cast %121 : vector<1x8x128xf32> to vector<8x128xf32>
    %123 = vector.shape_cast %120 : vector<8x128xf32> to vector<1x8x128xf32>
    tpu.vector_store %arg14[%c0_106, %c40, %c0_107], %123 {strides = array<i32>} : memref<6x48x128xf32, #tpu.memory_space<vmem>>, vector<1x8x128xf32>,
    %c1_108 = arith.constant 1 : index
    %c0_109 = arith.constant 0 : index
    %c0_110 = arith.constant 0 : index
    %124 = vector.load %arg13[%c1_108, %c0_109, %c0_110] : memref<4x8x152xf32, #tpu.memory_space<vmem>>, vector<1x8x128xf32>
    %125 = vector.shape_cast %124 : vector<1x8x128xf32> to vector<8x128xf32>
    %c1_111 = arith.constant 1 : index
    %c0_112 = arith.constant 0 : index
    %c0_113 = arith.constant 0 : index
    %126 = vector.load %arg14[%c1_111, %c0_112, %c0_113] : memref<6x48x128xf32, #tpu.memory_space<vmem>>, vector<1x8x128xf32>
    %127 = vector.shape_cast %126 : vector<1x8x128xf32> to vector<8x128xf32>
    %128 = vector.shape_cast %125 : vector<8x128xf32> to vector<1x8x128xf32>
    tpu.vector_store %arg14[%c1_111, %c0_112, %c0_113], %128 {strides = array<i32>} : memref<6x48x128xf32, #tpu.memory_space<vmem>>, vector<1x8x128xf32>,
    %c3_114 = arith.constant 3 : index
    %c0_115 = arith.constant 0 : index
    %c0_116 = arith.constant 0 : index
    %129 = vector.load %arg13[%c3_114, %c0_115, %c0_116] : memref<4x8x152xf32, #tpu.memory_space<vmem>>, vector<1x8x128xf32>
    %130 = vector.shape_cast %129 : vector<1x8x128xf32> to vector<8x128xf32>
    %c1_117 = arith.constant 1 : index
    %c8_118 = arith.constant 8 : index
    %c0_119 = arith.constant 0 : index
    %131 = vector.load %arg14[%c1_117, %c8_118, %c0_119] : memref<6x48x128xf32, #tpu.memory_space<vmem>>, vector<1x8x128xf32>
    %132 = vector.shape_cast %131 : vector<1x8x128xf32> to vector<8x128xf32>
    %133 = vector.shape_cast %130 : vector<8x128xf32> to vector<1x8x128xf32>
    tpu.vector_store %arg14[%c1_117, %c8_118, %c0_119], %133 {strides = array<i32>} : memref<6x48x128xf32, #tpu.memory_space<vmem>>, vector<1x8x128xf32>,
    %c1_120 = arith.constant 1 : index
    %c0_121 = arith.constant 0 : index
    %c8_122 = arith.constant 8 : index
    %134 = vector.load %arg13[%c1_120, %c0_121, %c8_122] : memref<4x8x152xf32, #tpu.memory_space<vmem>>, vector<1x8x128xf32>
    %135 = vector.shape_cast %134 : vector<1x8x128xf32> to vector<8x128xf32>
    %c1_123 = arith.constant 1 : index
    %c16_124 = arith.constant 16 : index
    %c0_125 = arith.constant 0 : index
    %136 = vector.load %arg14[%c1_123, %c16_124, %c0_125] : memref<6x48x128xf32, #tpu.memory_space<vmem>>, vector<1x8x128xf32>
    %137 = vector.shape_cast %136 : vector<1x8x128xf32> to vector<8x128xf32>
    %138 = vector.shape_cast %135 : vector<8x128xf32> to vector<1x8x128xf32>
    tpu.vector_store %arg14[%c1_123, %c16_124, %c0_125], %138 {strides = array<i32>} : memref<6x48x128xf32, #tpu.memory_space<vmem>>, vector<1x8x128xf32>,
    %c3_126 = arith.constant 3 : index
    %c0_127 = arith.constant 0 : index
    %c8_128 = arith.constant 8 : index
    %139 = vector.load %arg13[%c3_126, %c0_127, %c8_128] : memref<4x8x152xf32, #tpu.memory_space<vmem>>, vector<1x8x128xf32>
    %140 = vector.shape_cast %139 : vector<1x8x128xf32> to vector<8x128xf32>
    %c1_129 = arith.constant 1 : index
    %c24_130 = arith.constant 24 : index
    %c0_131 = arith.constant 0 : index
    %141 = vector.load %arg14[%c1_129, %c24_130, %c0_131] : memref<6x48x128xf32, #tpu.memory_space<vmem>>, vector<1x8x128xf32>
    %142 = vector.shape_cast %141 : vector<1x8x128xf32> to vector<8x128xf32>
    %143 = vector.shape_cast %140 : vector<8x128xf32> to vector<1x8x128xf32>
    tpu.vector_store %arg14[%c1_129, %c24_130, %c0_131], %143 {strides = array<i32>} : memref<6x48x128xf32, #tpu.memory_space<vmem>>, vector<1x8x128xf32>,
    %c1_132 = arith.constant 1 : index
    %c0_133 = arith.constant 0 : index
    %c16_134 = arith.constant 16 : index
    %144 = vector.load %arg13[%c1_132, %c0_133, %c16_134] : memref<4x8x152xf32, #tpu.memory_space<vmem>>, vector<1x8x128xf32>
    %145 = vector.shape_cast %144 : vector<1x8x128xf32> to vector<8x128xf32>
    %c1_135 = arith.constant 1 : index
    %c32_136 = arith.constant 32 : index
    %c0_137 = arith.constant 0 : index
    %146 = vector.load %arg14[%c1_135, %c32_136, %c0_137] : memref<6x48x128xf32, #tpu.memory_space<vmem>>, vector<1x8x128xf32>
    %147 = vector.shape_cast %146 : vector<1x8x128xf32> to vector<8x128xf32>
    %148 = vector.shape_cast %145 : vector<8x128xf32> to vector<1x8x128xf32>
    tpu.vector_store %arg14[%c1_135, %c32_136, %c0_137], %148 {strides = array<i32>} : memref<6x48x128xf32, #tpu.memory_space<vmem>>, vector<1x8x128xf32>,
    %c3_138 = arith.constant 3 : index
    %c0_139 = arith.constant 0 : index
    %c16_140 = arith.constant 16 : index
    %149 = vector.load %arg13[%c3_138, %c0_139, %c16_140] : memref<4x8x152xf32, #tpu.memory_space<vmem>>, vector<1x8x128xf32>
    %150 = vector.shape_cast %149 : vector<1x8x128xf32> to vector<8x128xf32>
    %c1_141 = arith.constant 1 : index
    %c40_142 = arith.constant 40 : index
    %c0_143 = arith.constant 0 : index
    %151 = vector.load %arg14[%c1_141, %c40_142, %c0_143] : memref<6x48x128xf32, #tpu.memory_space<vmem>>, vector<1x8x128xf32>
    %152 = vector.shape_cast %151 : vector<1x8x128xf32> to vector<8x128xf32>
    %153 = vector.shape_cast %150 : vector<8x128xf32> to vector<1x8x128xf32>
    tpu.vector_store %arg14[%c1_141, %c40_142, %c0_143], %153 {strides = array<i32>} : memref<6x48x128xf32, #tpu.memory_space<vmem>>, vector<1x8x128xf32>,
    %c0_144 = arith.constant 0 : index
    %c0_145 = arith.constant 0 : index
    %c1_146 = arith.constant 1 : index
    %154 = vector.load %arg13[%c0_144, %c0_145, %c1_146] : memref<4x8x152xf32, #tpu.memory_space<vmem>>, vector<1x8x128xf32>
    %155 = vector.shape_cast %154 : vector<1x8x128xf32> to vector<8x128xf32>
    %c2_147 = arith.constant 2 : index
    %c0_148 = arith.constant 0 : index
    %c0_149 = arith.constant 0 : index
    %156 = vector.load %arg14[%c2_147, %c0_148, %c0_149] : memref<6x48x128xf32, #tpu.memory_space<vmem>>, vector<1x8x128xf32>
    %157 = vector.shape_cast %156 : vector<1x8x128xf32> to vector<8x128xf32>
    %158 = vector.shape_cast %155 : vector<8x128xf32> to vector<1x8x128xf32>
    tpu.vector_store %arg14[%c2_147, %c0_148, %c0_149], %158 {strides = array<i32>} : memref<6x48x128xf32, #tpu.memory_space<vmem>>, vector<1x8x128xf32>,
    %c2_150 = arith.constant 2 : index
    %c0_151 = arith.constant 0 : index
    %c1_152 = arith.constant 1 : index
    %159 = vector.load %arg13[%c2_150, %c0_151, %c1_152] : memref<4x8x152xf32, #tpu.memory_space<vmem>>, vector<1x8x128xf32>
    %160 = vector.shape_cast %159 : vector<1x8x128xf32> to vector<8x128xf32>
    %c2_153 = arith.constant 2 : index
    %c8_154 = arith.constant 8 : index
    %c0_155 = arith.constant 0 : index
    %161 = vector.load %arg14[%c2_153, %c8_154, %c0_155] : memref<6x48x128xf32, #tpu.memory_space<vmem>>, vector<1x8x128xf32>
    %162 = vector.shape_cast %161 : vector<1x8x128xf32> to vector<8x128xf32>
    %163 = vector.shape_cast %160 : vector<8x128xf32> to vector<1x8x128xf32>
    tpu.vector_store %arg14[%c2_153, %c8_154, %c0_155], %163 {strides = array<i32>} : memref<6x48x128xf32, #tpu.memory_space<vmem>>, vector<1x8x128xf32>,
    %c0_156 = arith.constant 0 : index
    %c0_157 = arith.constant 0 : index
    %c9_158 = arith.constant 9 : index
    %164 = vector.load %arg13[%c0_156, %c0_157, %c9_158] : memref<4x8x152xf32, #tpu.memory_space<vmem>>, vector<1x8x128xf32>
    %165 = vector.shape_cast %164 : vector<1x8x128xf32> to vector<8x128xf32>
    %c2_159 = arith.constant 2 : index
    %c16_160 = arith.constant 16 : index
    %c0_161 = arith.constant 0 : index
    %166 = vector.load %arg14[%c2_159, %c16_160, %c0_161] : memref<6x48x128xf32, #tpu.memory_space<vmem>>, vector<1x8x128xf32>
    %167 = vector.shape_cast %166 : vector<1x8x128xf32> to vector<8x128xf32>
    %168 = vector.shape_cast %165 : vector<8x128xf32> to vector<1x8x128xf32>
    tpu.vector_store %arg14[%c2_159, %c16_160, %c0_161], %168 {strides = array<i32>} : memref<6x48x128xf32, #tpu.memory_space<vmem>>, vector<1x8x128xf32>,
    %c2_162 = arith.constant 2 : index
    %c0_163 = arith.constant 0 : index
    %c9_164 = arith.constant 9 : index
    %169 = vector.load %arg13[%c2_162, %c0_163, %c9_164] : memref<4x8x152xf32, #tpu.memory_space<vmem>>, vector<1x8x128xf32>
    %170 = vector.shape_cast %169 : vector<1x8x128xf32> to vector<8x128xf32>
    %c2_165 = arith.constant 2 : index
    %c24_166 = arith.constant 24 : index
    %c0_167 = arith.constant 0 : index
    %171 = vector.load %arg14[%c2_165, %c24_166, %c0_167] : memref<6x48x128xf32, #tpu.memory_space<vmem>>, vector<1x8x128xf32>
    %172 = vector.shape_cast %171 : vector<1x8x128xf32> to vector<8x128xf32>
    %173 = vector.shape_cast %170 : vector<8x128xf32> to vector<1x8x128xf32>
    tpu.vector_store %arg14[%c2_165, %c24_166, %c0_167], %173 {strides = array<i32>} : memref<6x48x128xf32, #tpu.memory_space<vmem>>, vector<1x8x128xf32>,
    %c0_168 = arith.constant 0 : index
    %c0_169 = arith.constant 0 : index
    %c17 = arith.constant 17 : index
    %174 = vector.load %arg13[%c0_168, %c0_169, %c17] : memref<4x8x152xf32, #tpu.memory_space<vmem>>, vector<1x8x128xf32>
    %175 = vector.shape_cast %174 : vector<1x8x128xf32> to vector<8x128xf32>
    %c2_170 = arith.constant 2 : index
    %c32_171 = arith.constant 32 : index
    %c0_172 = arith.constant 0 : index
    %176 = vector.load %arg14[%c2_170, %c32_171, %c0_172] : memref<6x48x128xf32, #tpu.memory_space<vmem>>, vector<1x8x128xf32>
    %177 = vector.shape_cast %176 : vector<1x8x128xf32> to vector<8x128xf32>
    %178 = vector.shape_cast %175 : vector<8x128xf32> to vector<1x8x128xf32>
    tpu.vector_store %arg14[%c2_170, %c32_171, %c0_172], %178 {strides = array<i32>} : memref<6x48x128xf32, #tpu.memory_space<vmem>>, vector<1x8x128xf32>,
    %c2_173 = arith.constant 2 : index
    %c0_174 = arith.constant 0 : index
    %c17_175 = arith.constant 17 : index
    %179 = vector.load %arg13[%c2_173, %c0_174, %c17_175] : memref<4x8x152xf32, #tpu.memory_space<vmem>>, vector<1x8x128xf32>
    %180 = vector.shape_cast %179 : vector<1x8x128xf32> to vector<8x128xf32>
    %c2_176 = arith.constant 2 : index
    %c40_177 = arith.constant 40 : index
    %c0_178 = arith.constant 0 : index
    %181 = vector.load %arg14[%c2_176, %c40_177, %c0_178] : memref<6x48x128xf32, #tpu.memory_space<vmem>>, vector<1x8x128xf32>
    %182 = vector.shape_cast %181 : vector<1x8x128xf32> to vector<8x128xf32>
    %183 = vector.shape_cast %180 : vector<8x128xf32> to vector<1x8x128xf32>
    tpu.vector_store %arg14[%c2_176, %c40_177, %c0_178], %183 {strides = array<i32>} : memref<6x48x128xf32, #tpu.memory_space<vmem>>, vector<1x8x128xf32>,
    %c1_179 = arith.constant 1 : index
    %c0_180 = arith.constant 0 : index
    %c1_181 = arith.constant 1 : index
    %184 = vector.load %arg13[%c1_179, %c0_180, %c1_181] : memref<4x8x152xf32, #tpu.memory_space<vmem>>, vector<1x8x128xf32>
    %185 = vector.shape_cast %184 : vector<1x8x128xf32> to vector<8x128xf32>
    %c3_182 = arith.constant 3 : index
    %c0_183 = arith.constant 0 : index
    %c0_184 = arith.constant 0 : index
    %186 = vector.load %arg14[%c3_182, %c0_183, %c0_184] : memref<6x48x128xf32, #tpu.memory_space<vmem>>, vector<1x8x128xf32>
    %187 = vector.shape_cast %186 : vector<1x8x128xf32> to vector<8x128xf32>
    %188 = vector.shape_cast %185 : vector<8x128xf32> to vector<1x8x128xf32>
    tpu.vector_store %arg14[%c3_182, %c0_183, %c0_184], %188 {strides = array<i32>} : memref<6x48x128xf32, #tpu.memory_space<vmem>>, vector<1x8x128xf32>,
    %c3_185 = arith.constant 3 : index
    %c0_186 = arith.constant 0 : index
    %c1_187 = arith.constant 1 : index
    %189 = vector.load %arg13[%c3_185, %c0_186, %c1_187] : memref<4x8x152xf32, #tpu.memory_space<vmem>>, vector<1x8x128xf32>
    %190 = vector.shape_cast %189 : vector<1x8x128xf32> to vector<8x128xf32>
    %c3_188 = arith.constant 3 : index
    %c8_189 = arith.constant 8 : index
    %c0_190 = arith.constant 0 : index
    %191 = vector.load %arg14[%c3_188, %c8_189, %c0_190] : memref<6x48x128xf32, #tpu.memory_space<vmem>>, vector<1x8x128xf32>
    %192 = vector.shape_cast %191 : vector<1x8x128xf32> to vector<8x128xf32>
    %193 = vector.shape_cast %190 : vector<8x128xf32> to vector<1x8x128xf32>
    tpu.vector_store %arg14[%c3_188, %c8_189, %c0_190], %193 {strides = array<i32>} : memref<6x48x128xf32, #tpu.memory_space<vmem>>, vector<1x8x128xf32>,
    %c1_191 = arith.constant 1 : index
    %c0_192 = arith.constant 0 : index
    %c9_193 = arith.constant 9 : index
    %194 = vector.load %arg13[%c1_191, %c0_192, %c9_193] : memref<4x8x152xf32, #tpu.memory_space<vmem>>, vector<1x8x128xf32>
    %195 = vector.shape_cast %194 : vector<1x8x128xf32> to vector<8x128xf32>
    %c3_194 = arith.constant 3 : index
    %c16_195 = arith.constant 16 : index
    %c0_196 = arith.constant 0 : index
    %196 = vector.load %arg14[%c3_194, %c16_195, %c0_196] : memref<6x48x128xf32, #tpu.memory_space<vmem>>, vector<1x8x128xf32>
    %197 = vector.shape_cast %196 : vector<1x8x128xf32> to vector<8x128xf32>
    %198 = vector.shape_cast %195 : vector<8x128xf32> to vector<1x8x128xf32>
    tpu.vector_store %arg14[%c3_194, %c16_195, %c0_196], %198 {strides = array<i32>} : memref<6x48x128xf32, #tpu.memory_space<vmem>>, vector<1x8x128xf32>,
    %c3_197 = arith.constant 3 : index
    %c0_198 = arith.constant 0 : index
    %c9_199 = arith.constant 9 : index
    %199 = vector.load %arg13[%c3_197, %c0_198, %c9_199] : memref<4x8x152xf32, #tpu.memory_space<vmem>>, vector<1x8x128xf32>
    %200 = vector.shape_cast %199 : vector<1x8x128xf32> to vector<8x128xf32>
    %c3_200 = arith.constant 3 : index
    %c24_201 = arith.constant 24 : index
    %c0_202 = arith.constant 0 : index
    %201 = vector.load %arg14[%c3_200, %c24_201, %c0_202] : memref<6x48x128xf32, #tpu.memory_space<vmem>>, vector<1x8x128xf32>
    %202 = vector.shape_cast %201 : vector<1x8x128xf32> to vector<8x128xf32>
    %203 = vector.shape_cast %200 : vector<8x128xf32> to vector<1x8x128xf32>
    tpu.vector_store %arg14[%c3_200, %c24_201, %c0_202], %203 {strides = array<i32>} : memref<6x48x128xf32, #tpu.memory_space<vmem>>, vector<1x8x128xf32>,
    %c1_203 = arith.constant 1 : index
    %c0_204 = arith.constant 0 : index
    %c17_205 = arith.constant 17 : index
    %204 = vector.load %arg13[%c1_203, %c0_204, %c17_205] : memref<4x8x152xf32, #tpu.memory_space<vmem>>, vector<1x8x128xf32>
    %205 = vector.shape_cast %204 : vector<1x8x128xf32> to vector<8x128xf32>
    %c3_206 = arith.constant 3 : index
    %c32_207 = arith.constant 32 : index
    %c0_208 = arith.constant 0 : index
    %206 = vector.load %arg14[%c3_206, %c32_207, %c0_208] : memref<6x48x128xf32, #tpu.memory_space<vmem>>, vector<1x8x128xf32>
    %207 = vector.shape_cast %206 : vector<1x8x128xf32> to vector<8x128xf32>
    %208 = vector.shape_cast %205 : vector<8x128xf32> to vector<1x8x128xf32>
    tpu.vector_store %arg14[%c3_206, %c32_207, %c0_208], %208 {strides = array<i32>} : memref<6x48x128xf32, #tpu.memory_space<vmem>>, vector<1x8x128xf32>,
    %c3_209 = arith.constant 3 : index
    %c0_210 = arith.constant 0 : index
    %c17_211 = arith.constant 17 : index
    %209 = vector.load %arg13[%c3_209, %c0_210, %c17_211] : memref<4x8x152xf32, #tpu.memory_space<vmem>>, vector<1x8x128xf32>
    %210 = vector.shape_cast %209 : vector<1x8x128xf32> to vector<8x128xf32>
    %c3_212 = arith.constant 3 : index
    %c40_213 = arith.constant 40 : index
    %c0_214 = arith.constant 0 : index
    %211 = vector.load %arg14[%c3_212, %c40_213, %c0_214] : memref<6x48x128xf32, #tpu.memory_space<vmem>>, vector<1x8x128xf32>
    %212 = vector.shape_cast %211 : vector<1x8x128xf32> to vector<8x128xf32>
    %213 = vector.shape_cast %210 : vector<8x128xf32> to vector<1x8x128xf32>
    tpu.vector_store %arg14[%c3_212, %c40_213, %c0_214], %213 {strides = array<i32>} : memref<6x48x128xf32, #tpu.memory_space<vmem>>, vector<1x8x128xf32>,
    %c0_215 = arith.constant 0 : index
    %c0_216 = arith.constant 0 : index
    %c2_217 = arith.constant 2 : index
    %214 = vector.load %arg13[%c0_215, %c0_216, %c2_217] : memref<4x8x152xf32, #tpu.memory_space<vmem>>, vector<1x8x128xf32>
    %215 = vector.shape_cast %214 : vector<1x8x128xf32> to vector<8x128xf32>
    %c4_218 = arith.constant 4 : index
    %c0_219 = arith.constant 0 : index
    %c0_220 = arith.constant 0 : index
    %216 = vector.load %arg14[%c4_218, %c0_219, %c0_220] : memref<6x48x128xf32, #tpu.memory_space<vmem>>, vector<1x8x128xf32>
    %217 = vector.shape_cast %216 : vector<1x8x128xf32> to vector<8x128xf32>
    %218 = vector.shape_cast %215 : vector<8x128xf32> to vector<1x8x128xf32>
    tpu.vector_store %arg14[%c4_218, %c0_219, %c0_220], %218 {strides = array<i32>} : memref<6x48x128xf32, #tpu.memory_space<vmem>>, vector<1x8x128xf32>,
    %c2_221 = arith.constant 2 : index
    %c0_222 = arith.constant 0 : index
    %c2_223 = arith.constant 2 : index
    %219 = vector.load %arg13[%c2_221, %c0_222, %c2_223] : memref<4x8x152xf32, #tpu.memory_space<vmem>>, vector<1x8x128xf32>
    %220 = vector.shape_cast %219 : vector<1x8x128xf32> to vector<8x128xf32>
    %c4_224 = arith.constant 4 : index
    %c8_225 = arith.constant 8 : index
    %c0_226 = arith.constant 0 : index
    %221 = vector.load %arg14[%c4_224, %c8_225, %c0_226] : memref<6x48x128xf32, #tpu.memory_space<vmem>>, vector<1x8x128xf32>
    %222 = vector.shape_cast %221 : vector<1x8x128xf32> to vector<8x128xf32>
    %223 = vector.shape_cast %220 : vector<8x128xf32> to vector<1x8x128xf32>
    tpu.vector_store %arg14[%c4_224, %c8_225, %c0_226], %223 {strides = array<i32>} : memref<6x48x128xf32, #tpu.memory_space<vmem>>, vector<1x8x128xf32>,
    %c0_227 = arith.constant 0 : index
    %c0_228 = arith.constant 0 : index
    %c10_229 = arith.constant 10 : index
    %224 = vector.load %arg13[%c0_227, %c0_228, %c10_229] : memref<4x8x152xf32, #tpu.memory_space<vmem>>, vector<1x8x128xf32>
    %225 = vector.shape_cast %224 : vector<1x8x128xf32> to vector<8x128xf32>
    %c4_230 = arith.constant 4 : index
    %c16_231 = arith.constant 16 : index
    %c0_232 = arith.constant 0 : index
    %226 = vector.load %arg14[%c4_230, %c16_231, %c0_232] : memref<6x48x128xf32, #tpu.memory_space<vmem>>, vector<1x8x128xf32>
    %227 = vector.shape_cast %226 : vector<1x8x128xf32> to vector<8x128xf32>
    %228 = vector.shape_cast %225 : vector<8x128xf32> to vector<1x8x128xf32>
    tpu.vector_store %arg14[%c4_230, %c16_231, %c0_232], %228 {strides = array<i32>} : memref<6x48x128xf32, #tpu.memory_space<vmem>>, vector<1x8x128xf32>,
    %c2_233 = arith.constant 2 : index
    %c0_234 = arith.constant 0 : index
    %c10_235 = arith.constant 10 : index
    %229 = vector.load %arg13[%c2_233, %c0_234, %c10_235] : memref<4x8x152xf32, #tpu.memory_space<vmem>>, vector<1x8x128xf32>
    %230 = vector.shape_cast %229 : vector<1x8x128xf32> to vector<8x128xf32>
    %c4_236 = arith.constant 4 : index
    %c24_237 = arith.constant 24 : index
    %c0_238 = arith.constant 0 : index
    %231 = vector.load %arg14[%c4_236, %c24_237, %c0_238] : memref<6x48x128xf32, #tpu.memory_space<vmem>>, vector<1x8x128xf32>
    %232 = vector.shape_cast %231 : vector<1x8x128xf32> to vector<8x128xf32>
    %233 = vector.shape_cast %230 : vector<8x128xf32> to vector<1x8x128xf32>
    tpu.vector_store %arg14[%c4_236, %c24_237, %c0_238], %233 {strides = array<i32>} : memref<6x48x128xf32, #tpu.memory_space<vmem>>, vector<1x8x128xf32>,
    %c0_239 = arith.constant 0 : index
    %c0_240 = arith.constant 0 : index
    %c18 = arith.constant 18 : index
    %234 = vector.load %arg13[%c0_239, %c0_240, %c18] : memref<4x8x152xf32, #tpu.memory_space<vmem>>, vector<1x8x128xf32>
    %235 = vector.shape_cast %234 : vector<1x8x128xf32> to vector<8x128xf32>
    %c4_241 = arith.constant 4 : index
    %c32_242 = arith.constant 32 : index
    %c0_243 = arith.constant 0 : index
    %236 = vector.load %arg14[%c4_241, %c32_242, %c0_243] : memref<6x48x128xf32, #tpu.memory_space<vmem>>, vector<1x8x128xf32>
    %237 = vector.shape_cast %236 : vector<1x8x128xf32> to vector<8x128xf32>
    %238 = vector.shape_cast %235 : vector<8x128xf32> to vector<1x8x128xf32>
    tpu.vector_store %arg14[%c4_241, %c32_242, %c0_243], %238 {strides = array<i32>} : memref<6x48x128xf32, #tpu.memory_space<vmem>>, vector<1x8x128xf32>,
    %c2_244 = arith.constant 2 : index
    %c0_245 = arith.constant 0 : index
    %c18_246 = arith.constant 18 : index
    %239 = vector.load %arg13[%c2_244, %c0_245, %c18_246] : memref<4x8x152xf32, #tpu.memory_space<vmem>>, vector<1x8x128xf32>
    %240 = vector.shape_cast %239 : vector<1x8x128xf32> to vector<8x128xf32>
    %c4_247 = arith.constant 4 : index
    %c40_248 = arith.constant 40 : index
    %c0_249 = arith.constant 0 : index
    %241 = vector.load %arg14[%c4_247, %c40_248, %c0_249] : memref<6x48x128xf32, #tpu.memory_space<vmem>>, vector<1x8x128xf32>
    %242 = vector.shape_cast %241 : vector<1x8x128xf32> to vector<8x128xf32>
    %243 = vector.shape_cast %240 : vector<8x128xf32> to vector<1x8x128xf32>
    tpu.vector_store %arg14[%c4_247, %c40_248, %c0_249], %243 {strides = array<i32>} : memref<6x48x128xf32, #tpu.memory_space<vmem>>, vector<1x8x128xf32>,
    %c1_250 = arith.constant 1 : index
    %c0_251 = arith.constant 0 : index
    %c2_252 = arith.constant 2 : index
    %244 = vector.load %arg13[%c1_250, %c0_251, %c2_252] : memref<4x8x152xf32, #tpu.memory_space<vmem>>, vector<1x8x128xf32>
    %245 = vector.shape_cast %244 : vector<1x8x128xf32> to vector<8x128xf32>
    %c5_253 = arith.constant 5 : index
    %c0_254 = arith.constant 0 : index
    %c0_255 = arith.constant 0 : index
    %246 = vector.load %arg14[%c5_253, %c0_254, %c0_255] : memref<6x48x128xf32, #tpu.memory_space<vmem>>, vector<1x8x128xf32>
    %247 = vector.shape_cast %246 : vector<1x8x128xf32> to vector<8x128xf32>
    %248 = vector.shape_cast %245 : vector<8x128xf32> to vector<1x8x128xf32>
    tpu.vector_store %arg14[%c5_253, %c0_254, %c0_255], %248 {strides = array<i32>} : memref<6x48x128xf32, #tpu.memory_space<vmem>>, vector<1x8x128xf32>,
    %c3_256 = arith.constant 3 : index
    %c0_257 = arith.constant 0 : index
    %c2_258 = arith.constant 2 : index
    %249 = vector.load %arg13[%c3_256, %c0_257, %c2_258] : memref<4x8x152xf32, #tpu.memory_space<vmem>>, vector<1x8x128xf32>
    %250 = vector.shape_cast %249 : vector<1x8x128xf32> to vector<8x128xf32>
    %c5_259 = arith.constant 5 : index
    %c8_260 = arith.constant 8 : index
    %c0_261 = arith.constant 0 : index
    %251 = vector.load %arg14[%c5_259, %c8_260, %c0_261] : memref<6x48x128xf32, #tpu.memory_space<vmem>>, vector<1x8x128xf32>
    %252 = vector.shape_cast %251 : vector<1x8x128xf32> to vector<8x128xf32>
    %253 = vector.shape_cast %250 : vector<8x128xf32> to vector<1x8x128xf32>
    tpu.vector_store %arg14[%c5_259, %c8_260, %c0_261], %253 {strides = array<i32>} : memref<6x48x128xf32, #tpu.memory_space<vmem>>, vector<1x8x128xf32>,
    %c1_262 = arith.constant 1 : index
    %c0_263 = arith.constant 0 : index
    %c10_264 = arith.constant 10 : index
    %254 = vector.load %arg13[%c1_262, %c0_263, %c10_264] : memref<4x8x152xf32, #tpu.memory_space<vmem>>, vector<1x8x128xf32>
    %255 = vector.shape_cast %254 : vector<1x8x128xf32> to vector<8x128xf32>
    %c5_265 = arith.constant 5 : index
    %c16_266 = arith.constant 16 : index
    %c0_267 = arith.constant 0 : index
    %256 = vector.load %arg14[%c5_265, %c16_266, %c0_267] : memref<6x48x128xf32, #tpu.memory_space<vmem>>, vector<1x8x128xf32>
    %257 = vector.shape_cast %256 : vector<1x8x128xf32> to vector<8x128xf32>
    %258 = vector.shape_cast %255 : vector<8x128xf32> to vector<1x8x128xf32>
    tpu.vector_store %arg14[%c5_265, %c16_266, %c0_267], %258 {strides = array<i32>} : memref<6x48x128xf32, #tpu.memory_space<vmem>>, vector<1x8x128xf32>,
    %c3_268 = arith.constant 3 : index
    %c0_269 = arith.constant 0 : index
    %c10_270 = arith.constant 10 : index
    %259 = vector.load %arg13[%c3_268, %c0_269, %c10_270] : memref<4x8x152xf32, #tpu.memory_space<vmem>>, vector<1x8x128xf32>
    %260 = vector.shape_cast %259 : vector<1x8x128xf32> to vector<8x128xf32>
    %c5_271 = arith.constant 5 : index
    %c24_272 = arith.constant 24 : index
    %c0_273 = arith.constant 0 : index
    %261 = vector.load %arg14[%c5_271, %c24_272, %c0_273] : memref<6x48x128xf32, #tpu.memory_space<vmem>>, vector<1x8x128xf32>
    %262 = vector.shape_cast %261 : vector<1x8x128xf32> to vector<8x128xf32>
    %263 = vector.shape_cast %260 : vector<8x128xf32> to vector<1x8x128xf32>
    tpu.vector_store %arg14[%c5_271, %c24_272, %c0_273], %263 {strides = array<i32>} : memref<6x48x128xf32, #tpu.memory_space<vmem>>, vector<1x8x128xf32>,
    %c1_274 = arith.constant 1 : index
    %c0_275 = arith.constant 0 : index
    %c18_276 = arith.constant 18 : index
    %264 = vector.load %arg13[%c1_274, %c0_275, %c18_276] : memref<4x8x152xf32, #tpu.memory_space<vmem>>, vector<1x8x128xf32>
    %265 = vector.shape_cast %264 : vector<1x8x128xf32> to vector<8x128xf32>
    %c5_277 = arith.constant 5 : index
    %c32_278 = arith.constant 32 : index
    %c0_279 = arith.constant 0 : index
    %266 = vector.load %arg14[%c5_277, %c32_278, %c0_279] : memref<6x48x128xf32, #tpu.memory_space<vmem>>, vector<1x8x128xf32>
    %267 = vector.shape_cast %266 : vector<1x8x128xf32> to vector<8x128xf32>
    %268 = vector.shape_cast %265 : vector<8x128xf32> to vector<1x8x128xf32>
    tpu.vector_store %arg14[%c5_277, %c32_278, %c0_279], %268 {strides = array<i32>} : memref<6x48x128xf32, #tpu.memory_space<vmem>>, vector<1x8x128xf32>,
    %c3_280 = arith.constant 3 : index
    %c0_281 = arith.constant 0 : index
    %c18_282 = arith.constant 18 : index
    %269 = vector.load %arg13[%c3_280, %c0_281, %c18_282] : memref<4x8x152xf32, #tpu.memory_space<vmem>>, vector<1x8x128xf32>
    %270 = vector.shape_cast %269 : vector<1x8x128xf32> to vector<8x128xf32>
    %c5_283 = arith.constant 5 : index
    %c40_284 = arith.constant 40 : index
    %c0_285 = arith.constant 0 : index
    %271 = vector.load %arg14[%c5_283, %c40_284, %c0_285] : memref<6x48x128xf32, #tpu.memory_space<vmem>>, vector<1x8x128xf32>
    %272 = vector.shape_cast %271 : vector<1x8x128xf32> to vector<8x128xf32>
    %273 = vector.shape_cast %270 : vector<8x128xf32> to vector<1x8x128xf32>
    tpu.vector_store %arg14[%c5_283, %c40_284, %c0_285], %273 {strides = array<i32>} : memref<6x48x128xf32, #tpu.memory_space<vmem>>, vector<1x8x128xf32>,
    %274 = vector.extract_strided_slice %2 {offsets = [0, 0, 0], sizes = [1, 16, 40], strides = [1, 1, 1]} : vector<5x16x40xf32> to vector<1x16x40xf32>
    %275 = vector.shape_cast %274 : vector<1x16x40xf32> to vector<16x40xf32>
    %c0_286 = arith.constant 0 : index
    %c0_287 = arith.constant 0 : index
    %c0_288 = arith.constant 0 : index
    %276 = vector.load %arg14[%c0_286, %c0_287, %c0_288] : memref<6x48x128xf32, #tpu.memory_space<vmem>>, vector<1x40x128xf32>
    %277 = vector.shape_cast %276 : vector<1x40x128xf32> to vector<40x128xf32>
    %cst_289 = arith.constant dense<0.000000e+00> : vector<16x128xf32>
    %278 = tpu.matmul %275, %277, %cst_289 {dimension_numbers = #tpu.dot_dimension_numbers<[1], [0], [0], [1], [0, 0, 1, 1], [], []>} : vector<16x40xf32>, vector<40x128xf32>, vector<16x128xf32> -> vector<16x128xf32>
    %279 = vector.extract_strided_slice %2 {offsets = [1, 0, 0], sizes = [1, 16, 40], strides = [1, 1, 1]} : vector<5x16x40xf32> to vector<1x16x40xf32>
    %280 = vector.shape_cast %279 : vector<1x16x40xf32> to vector<16x40xf32>
    %c1_290 = arith.constant 1 : index
    %c0_291 = arith.constant 0 : index
    %c0_292 = arith.constant 0 : index
    %281 = vector.load %arg14[%c1_290, %c0_291, %c0_292] : memref<6x48x128xf32, #tpu.memory_space<vmem>>, vector<1x40x128xf32>
    %282 = vector.shape_cast %281 : vector<1x40x128xf32> to vector<40x128xf32>
    %cst_293 = arith.constant dense<0.000000e+00> : vector<16x128xf32>
    %283 = tpu.matmul %280, %282, %cst_293 {dimension_numbers = #tpu.dot_dimension_numbers<[1], [0], [0], [1], [0, 0, 1, 1], [], []>} : vector<16x40xf32>, vector<40x128xf32>, vector<16x128xf32> -> vector<16x128xf32>
    %284 = arith.addf %278, %283 : vector<16x128xf32>
    %285 = vector.extract_strided_slice %2 {offsets = [2, 0, 0], sizes = [1, 16, 40], strides = [1, 1, 1]} : vector<5x16x40xf32> to vector<1x16x40xf32>
    %286 = vector.shape_cast %285 : vector<1x16x40xf32> to vector<16x40xf32>
    %c2_294 = arith.constant 2 : index
    %c0_295 = arith.constant 0 : index
    %c0_296 = arith.constant 0 : index
    %287 = vector.load %arg14[%c2_294, %c0_295, %c0_296] : memref<6x48x128xf32, #tpu.memory_space<vmem>>, vector<1x40x128xf32>
    %288 = vector.shape_cast %287 : vector<1x40x128xf32> to vector<40x128xf32>
    %cst_297 = arith.constant dense<0.000000e+00> : vector<16x128xf32>
    %289 = tpu.matmul %286, %288, %cst_297 {dimension_numbers = #tpu.dot_dimension_numbers<[1], [0], [0], [1], [0, 0, 1, 1], [], []>} : vector<16x40xf32>, vector<40x128xf32>, vector<16x128xf32> -> vector<16x128xf32>
    %290 = arith.addf %284, %289 : vector<16x128xf32>
    %291 = vector.extract_strided_slice %2 {offsets = [3, 0, 0], sizes = [1, 16, 40], strides = [1, 1, 1]} : vector<5x16x40xf32> to vector<1x16x40xf32>
    %292 = vector.shape_cast %291 : vector<1x16x40xf32> to vector<16x40xf32>
    %c3_298 = arith.constant 3 : index
    %c0_299 = arith.constant 0 : index
    %c0_300 = arith.constant 0 : index
    %293 = vector.load %arg14[%c3_298, %c0_299, %c0_300] : memref<6x48x128xf32, #tpu.memory_space<vmem>>, vector<1x40x128xf32>
    %294 = vector.shape_cast %293 : vector<1x40x128xf32> to vector<40x128xf32>
    %cst_301 = arith.constant dense<0.000000e+00> : vector<16x128xf32>
    %295 = tpu.matmul %292, %294, %cst_301 {dimension_numbers = #tpu.dot_dimension_numbers<[1], [0], [0], [1], [0, 0, 1, 1], [], []>} : vector<16x40xf32>, vector<40x128xf32>, vector<16x128xf32> -> vector<16x128xf32>
    %296 = arith.addf %290, %295 : vector<16x128xf32>
    %297 = vector.extract_strided_slice %2 {offsets = [4, 0, 0], sizes = [1, 16, 40], strides = [1, 1, 1]} : vector<5x16x40xf32> to vector<1x16x40xf32>
    %298 = vector.shape_cast %297 : vector<1x16x40xf32> to vector<16x40xf32>
    %c4_302 = arith.constant 4 : index
    %c0_303 = arith.constant 0 : index
    %c0_304 = arith.constant 0 : index
    %299 = vector.load %arg14[%c4_302, %c0_303, %c0_304] : memref<6x48x128xf32, #tpu.memory_space<vmem>>, vector<1x40x128xf32>
    %300 = vector.shape_cast %299 : vector<1x40x128xf32> to vector<40x128xf32>
    %cst_305 = arith.constant dense<0.000000e+00> : vector<16x128xf32>
    %301 = tpu.matmul %298, %300, %cst_305 {dimension_numbers = #tpu.dot_dimension_numbers<[1], [0], [0], [1], [0, 0, 1, 1], [], []>} : vector<16x40xf32>, vector<40x128xf32>, vector<16x128xf32> -> vector<16x128xf32>
    %302 = arith.addf %296, %301 : vector<16x128xf32>
    %303 = vector.extract_strided_slice %2 {offsets = [0, 0, 0], sizes = [1, 16, 40], strides = [1, 1, 1]} : vector<5x16x40xf32> to vector<1x16x40xf32>
    %304 = vector.shape_cast %303 : vector<1x16x40xf32> to vector<16x40xf32>
    %c1_306 = arith.constant 1 : index
    %c0_307 = arith.constant 0 : index
    %c0_308 = arith.constant 0 : index
    %305 = vector.load %arg14[%c1_306, %c0_307, %c0_308] : memref<6x48x128xf32, #tpu.memory_space<vmem>>, vector<1x40x128xf32>
    %306 = vector.shape_cast %305 : vector<1x40x128xf32> to vector<40x128xf32>
    %cst_309 = arith.constant dense<0.000000e+00> : vector<16x128xf32>
    %307 = tpu.matmul %304, %306, %cst_309 {dimension_numbers = #tpu.dot_dimension_numbers<[1], [0], [0], [1], [0, 0, 1, 1], [], []>} : vector<16x40xf32>, vector<40x128xf32>, vector<16x128xf32> -> vector<16x128xf32>
    %308 = vector.extract_strided_slice %2 {offsets = [1, 0, 0], sizes = [1, 16, 40], strides = [1, 1, 1]} : vector<5x16x40xf32> to vector<1x16x40xf32>
    %309 = vector.shape_cast %308 : vector<1x16x40xf32> to vector<16x40xf32>
    %c2_310 = arith.constant 2 : index
    %c0_311 = arith.constant 0 : index
    %c0_312 = arith.constant 0 : index
    %310 = vector.load %arg14[%c2_310, %c0_311, %c0_312] : memref<6x48x128xf32, #tpu.memory_space<vmem>>, vector<1x40x128xf32>
    %311 = vector.shape_cast %310 : vector<1x40x128xf32> to vector<40x128xf32>
    %cst_313 = arith.constant dense<0.000000e+00> : vector<16x128xf32>
    %312 = tpu.matmul %309, %311, %cst_313 {dimension_numbers = #tpu.dot_dimension_numbers<[1], [0], [0], [1], [0, 0, 1, 1], [], []>} : vector<16x40xf32>, vector<40x128xf32>, vector<16x128xf32> -> vector<16x128xf32>
    %313 = arith.addf %307, %312 : vector<16x128xf32>
    %314 = vector.extract_strided_slice %2 {offsets = [2, 0, 0], sizes = [1, 16, 40], strides = [1, 1, 1]} : vector<5x16x40xf32> to vector<1x16x40xf32>
    %315 = vector.shape_cast %314 : vector<1x16x40xf32> to vector<16x40xf32>
    %c3_314 = arith.constant 3 : index
    %c0_315 = arith.constant 0 : index
    %c0_316 = arith.constant 0 : index
    %316 = vector.load %arg14[%c3_314, %c0_315, %c0_316] : memref<6x48x128xf32, #tpu.memory_space<vmem>>, vector<1x40x128xf32>
    %317 = vector.shape_cast %316 : vector<1x40x128xf32> to vector<40x128xf32>
    %cst_317 = arith.constant dense<0.000000e+00> : vector<16x128xf32>
    %318 = tpu.matmul %315, %317, %cst_317 {dimension_numbers = #tpu.dot_dimension_numbers<[1], [0], [0], [1], [0, 0, 1, 1], [], []>} : vector<16x40xf32>, vector<40x128xf32>, vector<16x128xf32> -> vector<16x128xf32>
    %319 = arith.addf %313, %318 : vector<16x128xf32>
    %320 = vector.extract_strided_slice %2 {offsets = [3, 0, 0], sizes = [1, 16, 40], strides = [1, 1, 1]} : vector<5x16x40xf32> to vector<1x16x40xf32>
    %321 = vector.shape_cast %320 : vector<1x16x40xf32> to vector<16x40xf32>
    %c4_318 = arith.constant 4 : index
    %c0_319 = arith.constant 0 : index
    %c0_320 = arith.constant 0 : index
    %322 = vector.load %arg14[%c4_318, %c0_319, %c0_320] : memref<6x48x128xf32, #tpu.memory_space<vmem>>, vector<1x40x128xf32>
    %323 = vector.shape_cast %322 : vector<1x40x128xf32> to vector<40x128xf32>
    %cst_321 = arith.constant dense<0.000000e+00> : vector<16x128xf32>
    %324 = tpu.matmul %321, %323, %cst_321 {dimension_numbers = #tpu.dot_dimension_numbers<[1], [0], [0], [1], [0, 0, 1, 1], [], []>} : vector<16x40xf32>, vector<40x128xf32>, vector<16x128xf32> -> vector<16x128xf32>
    %325 = arith.addf %319, %324 : vector<16x128xf32>
    %326 = vector.extract_strided_slice %2 {offsets = [4, 0, 0], sizes = [1, 16, 40], strides = [1, 1, 1]} : vector<5x16x40xf32> to vector<1x16x40xf32>
    %327 = vector.shape_cast %326 : vector<1x16x40xf32> to vector<16x40xf32>
    %c5_322 = arith.constant 5 : index
    %c0_323 = arith.constant 0 : index
    %c0_324 = arith.constant 0 : index
    %328 = vector.load %arg14[%c5_322, %c0_323, %c0_324] : memref<6x48x128xf32, #tpu.memory_space<vmem>>, vector<1x40x128xf32>
    %329 = vector.shape_cast %328 : vector<1x40x128xf32> to vector<40x128xf32>
    %cst_325 = arith.constant dense<0.000000e+00> : vector<16x128xf32>
    %330 = tpu.matmul %327, %329, %cst_325 {dimension_numbers = #tpu.dot_dimension_numbers<[1], [0], [0], [1], [0, 0, 1, 1], [], []>} : vector<16x40xf32>, vector<40x128xf32>, vector<16x128xf32> -> vector<16x128xf32>
    %331 = arith.addf %325, %330 : vector<16x128xf32>
    %332 = arith.maximumf %302, %331 : vector<16x128xf32>
    %333 = vector.extract_strided_slice %2 {offsets = [0, 0, 0], sizes = [1, 16, 40], strides = [1, 1, 1]} : vector<5x16x40xf32> to vector<1x16x40xf32>
    %334 = vector.shape_cast %333 : vector<1x16x40xf32> to vector<16x40xf32>
    %c0_326 = arith.constant 0 : index
    %c8_327 = arith.constant 8 : index
    %c0_328 = arith.constant 0 : index
    %335 = vector.load %arg14[%c0_326, %c8_327, %c0_328] : memref<6x48x128xf32, #tpu.memory_space<vmem>>, vector<1x40x128xf32>
    %336 = vector.shape_cast %335 : vector<1x40x128xf32> to vector<40x128xf32>
    %cst_329 = arith.constant dense<0.000000e+00> : vector<16x128xf32>
    %337 = tpu.matmul %334, %336, %cst_329 {dimension_numbers = #tpu.dot_dimension_numbers<[1], [0], [0], [1], [0, 0, 1, 1], [], []>} : vector<16x40xf32>, vector<40x128xf32>, vector<16x128xf32> -> vector<16x128xf32>
    %338 = vector.extract_strided_slice %2 {offsets = [1, 0, 0], sizes = [1, 16, 40], strides = [1, 1, 1]} : vector<5x16x40xf32> to vector<1x16x40xf32>
    %339 = vector.shape_cast %338 : vector<1x16x40xf32> to vector<16x40xf32>
    %c1_330 = arith.constant 1 : index
    %c8_331 = arith.constant 8 : index
    %c0_332 = arith.constant 0 : index
    %340 = vector.load %arg14[%c1_330, %c8_331, %c0_332] : memref<6x48x128xf32, #tpu.memory_space<vmem>>, vector<1x40x128xf32>
    %341 = vector.shape_cast %340 : vector<1x40x128xf32> to vector<40x128xf32>
    %cst_333 = arith.constant dense<0.000000e+00> : vector<16x128xf32>
    %342 = tpu.matmul %339, %341, %cst_333 {dimension_numbers = #tpu.dot_dimension_numbers<[1], [0], [0], [1], [0, 0, 1, 1], [], []>} : vector<16x40xf32>, vector<40x128xf32>, vector<16x128xf32> -> vector<16x128xf32>
    %343 = arith.addf %337, %342 : vector<16x128xf32>
    %344 = vector.extract_strided_slice %2 {offsets = [2, 0, 0], sizes = [1, 16, 40], strides = [1, 1, 1]} : vector<5x16x40xf32> to vector<1x16x40xf32>
    %345 = vector.shape_cast %344 : vector<1x16x40xf32> to vector<16x40xf32>
    %c2_334 = arith.constant 2 : index
    %c8_335 = arith.constant 8 : index
    %c0_336 = arith.constant 0 : index
    %346 = vector.load %arg14[%c2_334, %c8_335, %c0_336] : memref<6x48x128xf32, #tpu.memory_space<vmem>>, vector<1x40x128xf32>
    %347 = vector.shape_cast %346 : vector<1x40x128xf32> to vector<40x128xf32>
    %cst_337 = arith.constant dense<0.000000e+00> : vector<16x128xf32>
    %348 = tpu.matmul %345, %347, %cst_337 {dimension_numbers = #tpu.dot_dimension_numbers<[1], [0], [0], [1], [0, 0, 1, 1], [], []>} : vector<16x40xf32>, vector<40x128xf32>, vector<16x128xf32> -> vector<16x128xf32>
    %349 = arith.addf %343, %348 : vector<16x128xf32>
    %350 = vector.extract_strided_slice %2 {offsets = [3, 0, 0], sizes = [1, 16, 40], strides = [1, 1, 1]} : vector<5x16x40xf32> to vector<1x16x40xf32>
    %351 = vector.shape_cast %350 : vector<1x16x40xf32> to vector<16x40xf32>
    %c3_338 = arith.constant 3 : index
    %c8_339 = arith.constant 8 : index
    %c0_340 = arith.constant 0 : index
    %352 = vector.load %arg14[%c3_338, %c8_339, %c0_340] : memref<6x48x128xf32, #tpu.memory_space<vmem>>, vector<1x40x128xf32>
    %353 = vector.shape_cast %352 : vector<1x40x128xf32> to vector<40x128xf32>
    %cst_341 = arith.constant dense<0.000000e+00> : vector<16x128xf32>
    %354 = tpu.matmul %351, %353, %cst_341 {dimension_numbers = #tpu.dot_dimension_numbers<[1], [0], [0], [1], [0, 0, 1, 1], [], []>} : vector<16x40xf32>, vector<40x128xf32>, vector<16x128xf32> -> vector<16x128xf32>
    %355 = arith.addf %349, %354 : vector<16x128xf32>
    %356 = vector.extract_strided_slice %2 {offsets = [4, 0, 0], sizes = [1, 16, 40], strides = [1, 1, 1]} : vector<5x16x40xf32> to vector<1x16x40xf32>
    %357 = vector.shape_cast %356 : vector<1x16x40xf32> to vector<16x40xf32>
    %c4_342 = arith.constant 4 : index
    %c8_343 = arith.constant 8 : index
    %c0_344 = arith.constant 0 : index
    %358 = vector.load %arg14[%c4_342, %c8_343, %c0_344] : memref<6x48x128xf32, #tpu.memory_space<vmem>>, vector<1x40x128xf32>
    %359 = vector.shape_cast %358 : vector<1x40x128xf32> to vector<40x128xf32>
    %cst_345 = arith.constant dense<0.000000e+00> : vector<16x128xf32>
    %360 = tpu.matmul %357, %359, %cst_345 {dimension_numbers = #tpu.dot_dimension_numbers<[1], [0], [0], [1], [0, 0, 1, 1], [], []>} : vector<16x40xf32>, vector<40x128xf32>, vector<16x128xf32> -> vector<16x128xf32>
    %361 = arith.addf %355, %360 : vector<16x128xf32>
    %362 = arith.maximumf %332, %361 : vector<16x128xf32>
    %363 = vector.extract_strided_slice %2 {offsets = [0, 0, 0], sizes = [1, 16, 40], strides = [1, 1, 1]} : vector<5x16x40xf32> to vector<1x16x40xf32>
    %364 = vector.shape_cast %363 : vector<1x16x40xf32> to vector<16x40xf32>
    %c1_346 = arith.constant 1 : index
    %c8_347 = arith.constant 8 : index
    %c0_348 = arith.constant 0 : index
    %365 = vector.load %arg14[%c1_346, %c8_347, %c0_348] : memref<6x48x128xf32, #tpu.memory_space<vmem>>, vector<1x40x128xf32>
    %366 = vector.shape_cast %365 : vector<1x40x128xf32> to vector<40x128xf32>
    %cst_349 = arith.constant dense<0.000000e+00> : vector<16x128xf32>
    %367 = tpu.matmul %364, %366, %cst_349 {dimension_numbers = #tpu.dot_dimension_numbers<[1], [0], [0], [1], [0, 0, 1, 1], [], []>} : vector<16x40xf32>, vector<40x128xf32>, vector<16x128xf32> -> vector<16x128xf32>
    %368 = vector.extract_strided_slice %2 {offsets = [1, 0, 0], sizes = [1, 16, 40], strides = [1, 1, 1]} : vector<5x16x40xf32> to vector<1x16x40xf32>
    %369 = vector.shape_cast %368 : vector<1x16x40xf32> to vector<16x40xf32>
    %c2_350 = arith.constant 2 : index
    %c8_351 = arith.constant 8 : index
    %c0_352 = arith.constant 0 : index
    %370 = vector.load %arg14[%c2_350, %c8_351, %c0_352] : memref<6x48x128xf32, #tpu.memory_space<vmem>>, vector<1x40x128xf32>
    %371 = vector.shape_cast %370 : vector<1x40x128xf32> to vector<40x128xf32>
    %cst_353 = arith.constant dense<0.000000e+00> : vector<16x128xf32>
    %372 = tpu.matmul %369, %371, %cst_353 {dimension_numbers = #tpu.dot_dimension_numbers<[1], [0], [0], [1], [0, 0, 1, 1], [], []>} : vector<16x40xf32>, vector<40x128xf32>, vector<16x128xf32> -> vector<16x128xf32>
    %373 = arith.addf %367, %372 : vector<16x128xf32>
    %374 = vector.extract_strided_slice %2 {offsets = [2, 0, 0], sizes = [1, 16, 40], strides = [1, 1, 1]} : vector<5x16x40xf32> to vector<1x16x40xf32>
    %375 = vector.shape_cast %374 : vector<1x16x40xf32> to vector<16x40xf32>
    %c3_354 = arith.constant 3 : index
    %c8_355 = arith.constant 8 : index
    %c0_356 = arith.constant 0 : index
    %376 = vector.load %arg14[%c3_354, %c8_355, %c0_356] : memref<6x48x128xf32, #tpu.memory_space<vmem>>, vector<1x40x128xf32>
    %377 = vector.shape_cast %376 : vector<1x40x128xf32> to vector<40x128xf32>
    %cst_357 = arith.constant dense<0.000000e+00> : vector<16x128xf32>
    %378 = tpu.matmul %375, %377, %cst_357 {dimension_numbers = #tpu.dot_dimension_numbers<[1], [0], [0], [1], [0, 0, 1, 1], [], []>} : vector<16x40xf32>, vector<40x128xf32>, vector<16x128xf32> -> vector<16x128xf32>
    %379 = arith.addf %373, %378 : vector<16x128xf32>
    %380 = vector.extract_strided_slice %2 {offsets = [3, 0, 0], sizes = [1, 16, 40], strides = [1, 1, 1]} : vector<5x16x40xf32> to vector<1x16x40xf32>
    %381 = vector.shape_cast %380 : vector<1x16x40xf32> to vector<16x40xf32>
    %c4_358 = arith.constant 4 : index
    %c8_359 = arith.constant 8 : index
    %c0_360 = arith.constant 0 : index
    %382 = vector.load %arg14[%c4_358, %c8_359, %c0_360] : memref<6x48x128xf32, #tpu.memory_space<vmem>>, vector<1x40x128xf32>
    %383 = vector.shape_cast %382 : vector<1x40x128xf32> to vector<40x128xf32>
    %cst_361 = arith.constant dense<0.000000e+00> : vector<16x128xf32>
    %384 = tpu.matmul %381, %383, %cst_361 {dimension_numbers = #tpu.dot_dimension_numbers<[1], [0], [0], [1], [0, 0, 1, 1], [], []>} : vector<16x40xf32>, vector<40x128xf32>, vector<16x128xf32> -> vector<16x128xf32>
    %385 = arith.addf %379, %384 : vector<16x128xf32>
    %386 = vector.extract_strided_slice %2 {offsets = [4, 0, 0], sizes = [1, 16, 40], strides = [1, 1, 1]} : vector<5x16x40xf32> to vector<1x16x40xf32>
    %387 = vector.shape_cast %386 : vector<1x16x40xf32> to vector<16x40xf32>
    %c5_362 = arith.constant 5 : index
    %c8_363 = arith.constant 8 : index
    %c0_364 = arith.constant 0 : index
    %388 = vector.load %arg14[%c5_362, %c8_363, %c0_364] : memref<6x48x128xf32, #tpu.memory_space<vmem>>, vector<1x40x128xf32>
    %389 = vector.shape_cast %388 : vector<1x40x128xf32> to vector<40x128xf32>
    %cst_365 = arith.constant dense<0.000000e+00> : vector<16x128xf32>
    %390 = tpu.matmul %387, %389, %cst_365 {dimension_numbers = #tpu.dot_dimension_numbers<[1], [0], [0], [1], [0, 0, 1, 1], [], []>} : vector<16x40xf32>, vector<40x128xf32>, vector<16x128xf32> -> vector<16x128xf32>
    %391 = arith.addf %385, %390 : vector<16x128xf32>
    %392 = arith.maximumf %362, %391 : vector<16x128xf32>
    %393 = vector.broadcast %3 : vector<16x1xf32> to vector<16x128xf32>
    %394 = arith.addf %392, %393 : vector<16x128xf32>
    %cst_366 = arith.constant 0.000000e+00 : f32
    %395 = vector.broadcast %cst_366 : f32 to vector<16x128xf32>
    %396 = arith.maximumf %394, %395 : vector<16x128xf32>
    %cst_367 = arith.constant 0.000000e+00 : f32
    %397 = vector.broadcast %cst_367 : f32 to vector<8x1024xf32>
    %c0_368 = arith.constant 0 : index
    %c0_369 = arith.constant 0 : index
    %398 = vector.load %arg15[%c0_368, %c0_369] : memref<8x1024xf32, #tpu.memory_space<vmem>>, vector<8x1024xf32>
    tpu.vector_store %arg15[%c0_368, %c0_369], %397 {strides = array<i32>} : memref<8x1024xf32, #tpu.memory_space<vmem>>, vector<8x1024xf32>,
    %399 = vector.extract_strided_slice %396 {offsets = [0, 0], sizes = [1, 64], strides = [1, 1]} : vector<16x128xf32> to vector<1x64xf32>
    %c0_370 = arith.constant 0 : index
    %c0_371 = arith.constant 0 : index
    %400 = vector.load %arg15[%c0_370, %c0_371] : memref<8x1024xf32, #tpu.memory_space<vmem>>, vector<1x64xf32>
    tpu.vector_store %arg15[%c0_370, %c0_371], %399 {strides = array<i32>} : memref<8x1024xf32, #tpu.memory_space<vmem>>, vector<1x64xf32>,
    %401 = vector.extract_strided_slice %396 {offsets = [0, 64], sizes = [1, 64], strides = [1, 1]} : vector<16x128xf32> to vector<1x64xf32>
    %c1_372 = arith.constant 1 : index
    %c0_373 = arith.constant 0 : index
    %402 = vector.load %arg15[%c1_372, %c0_373] : memref<8x1024xf32, #tpu.memory_space<vmem>>, vector<1x64xf32>
    tpu.vector_store %arg15[%c1_372, %c0_373], %401 {strides = array<i32>} : memref<8x1024xf32, #tpu.memory_space<vmem>>, vector<1x64xf32>,
    %403 = vector.extract_strided_slice %396 {offsets = [1, 0], sizes = [1, 64], strides = [1, 1]} : vector<16x128xf32> to vector<1x64xf32>
    %c0_374 = arith.constant 0 : index
    %c64 = arith.constant 64 : index
    %404 = vector.load %arg15[%c0_374, %c64] : memref<8x1024xf32, #tpu.memory_space<vmem>>, vector<1x64xf32>
    tpu.vector_store %arg15[%c0_374, %c64], %403 {strides = array<i32>} : memref<8x1024xf32, #tpu.memory_space<vmem>>, vector<1x64xf32>,
    %405 = vector.extract_strided_slice %396 {offsets = [1, 64], sizes = [1, 64], strides = [1, 1]} : vector<16x128xf32> to vector<1x64xf32>
    %c1_375 = arith.constant 1 : index
    %c64_376 = arith.constant 64 : index
    %406 = vector.load %arg15[%c1_375, %c64_376] : memref<8x1024xf32, #tpu.memory_space<vmem>>, vector<1x64xf32>
    tpu.vector_store %arg15[%c1_375, %c64_376], %405 {strides = array<i32>} : memref<8x1024xf32, #tpu.memory_space<vmem>>, vector<1x64xf32>,
    %407 = vector.extract_strided_slice %396 {offsets = [2, 0], sizes = [1, 64], strides = [1, 1]} : vector<16x128xf32> to vector<1x64xf32>
    %c0_377 = arith.constant 0 : index
    %c128 = arith.constant 128 : index
    %408 = vector.load %arg15[%c0_377, %c128] : memref<8x1024xf32, #tpu.memory_space<vmem>>, vector<1x64xf32>
    tpu.vector_store %arg15[%c0_377, %c128], %407 {strides = array<i32>} : memref<8x1024xf32, #tpu.memory_space<vmem>>, vector<1x64xf32>,
    %409 = vector.extract_strided_slice %396 {offsets = [2, 64], sizes = [1, 64], strides = [1, 1]} : vector<16x128xf32> to vector<1x64xf32>
    %c1_378 = arith.constant 1 : index
    %c128_379 = arith.constant 128 : index
    %410 = vector.load %arg15[%c1_378, %c128_379] : memref<8x1024xf32, #tpu.memory_space<vmem>>, vector<1x64xf32>
    tpu.vector_store %arg15[%c1_378, %c128_379], %409 {strides = array<i32>} : memref<8x1024xf32, #tpu.memory_space<vmem>>, vector<1x64xf32>,
    %411 = vector.extract_strided_slice %396 {offsets = [3, 0], sizes = [1, 64], strides = [1, 1]} : vector<16x128xf32> to vector<1x64xf32>
    %c0_380 = arith.constant 0 : index
    %c192 = arith.constant 192 : index
    %412 = vector.load %arg15[%c0_380, %c192] : memref<8x1024xf32, #tpu.memory_space<vmem>>, vector<1x64xf32>
    tpu.vector_store %arg15[%c0_380, %c192], %411 {strides = array<i32>} : memref<8x1024xf32, #tpu.memory_space<vmem>>, vector<1x64xf32>,
    %413 = vector.extract_strided_slice %396 {offsets = [3, 64], sizes = [1, 64], strides = [1, 1]} : vector<16x128xf32> to vector<1x64xf32>
    %c1_381 = arith.constant 1 : index
    %c192_382 = arith.constant 192 : index
    %414 = vector.load %arg15[%c1_381, %c192_382] : memref<8x1024xf32, #tpu.memory_space<vmem>>, vector<1x64xf32>
    tpu.vector_store %arg15[%c1_381, %c192_382], %413 {strides = array<i32>} : memref<8x1024xf32, #tpu.memory_space<vmem>>, vector<1x64xf32>,
    %415 = vector.extract_strided_slice %396 {offsets = [4, 0], sizes = [1, 64], strides = [1, 1]} : vector<16x128xf32> to vector<1x64xf32>
    %c0_383 = arith.constant 0 : index
    %c256 = arith.constant 256 : index
    %416 = vector.load %arg15[%c0_383, %c256] : memref<8x1024xf32, #tpu.memory_space<vmem>>, vector<1x64xf32>
    tpu.vector_store %arg15[%c0_383, %c256], %415 {strides = array<i32>} : memref<8x1024xf32, #tpu.memory_space<vmem>>, vector<1x64xf32>,
    %417 = vector.extract_strided_slice %396 {offsets = [4, 64], sizes = [1, 64], strides = [1, 1]} : vector<16x128xf32> to vector<1x64xf32>
    %c1_384 = arith.constant 1 : index
    %c256_385 = arith.constant 256 : index
    %418 = vector.load %arg15[%c1_384, %c256_385] : memref<8x1024xf32, #tpu.memory_space<vmem>>, vector<1x64xf32>
    tpu.vector_store %arg15[%c1_384, %c256_385], %417 {strides = array<i32>} : memref<8x1024xf32, #tpu.memory_space<vmem>>, vector<1x64xf32>,
    %419 = vector.extract_strided_slice %396 {offsets = [5, 0], sizes = [1, 64], strides = [1, 1]} : vector<16x128xf32> to vector<1x64xf32>
    %c0_386 = arith.constant 0 : index
    %c320 = arith.constant 320 : index
    %420 = vector.load %arg15[%c0_386, %c320] : memref<8x1024xf32, #tpu.memory_space<vmem>>, vector<1x64xf32>
    tpu.vector_store %arg15[%c0_386, %c320], %419 {strides = array<i32>} : memref<8x1024xf32, #tpu.memory_space<vmem>>, vector<1x64xf32>,
    %421 = vector.extract_strided_slice %396 {offsets = [5, 64], sizes = [1, 64], strides = [1, 1]} : vector<16x128xf32> to vector<1x64xf32>
    %c1_387 = arith.constant 1 : index
    %c320_388 = arith.constant 320 : index
    %422 = vector.load %arg15[%c1_387, %c320_388] : memref<8x1024xf32, #tpu.memory_space<vmem>>, vector<1x64xf32>
    tpu.vector_store %arg15[%c1_387, %c320_388], %421 {strides = array<i32>} : memref<8x1024xf32, #tpu.memory_space<vmem>>, vector<1x64xf32>,
    %423 = vector.extract_strided_slice %396 {offsets = [6, 0], sizes = [1, 64], strides = [1, 1]} : vector<16x128xf32> to vector<1x64xf32>
    %c0_389 = arith.constant 0 : index
    %c384 = arith.constant 384 : index
    %424 = vector.load %arg15[%c0_389, %c384] : memref<8x1024xf32, #tpu.memory_space<vmem>>, vector<1x64xf32>
    tpu.vector_store %arg15[%c0_389, %c384], %423 {strides = array<i32>} : memref<8x1024xf32, #tpu.memory_space<vmem>>, vector<1x64xf32>,
    %425 = vector.extract_strided_slice %396 {offsets = [6, 64], sizes = [1, 64], strides = [1, 1]} : vector<16x128xf32> to vector<1x64xf32>
    %c1_390 = arith.constant 1 : index
    %c384_391 = arith.constant 384 : index
    %426 = vector.load %arg15[%c1_390, %c384_391] : memref<8x1024xf32, #tpu.memory_space<vmem>>, vector<1x64xf32>
    tpu.vector_store %arg15[%c1_390, %c384_391], %425 {strides = array<i32>} : memref<8x1024xf32, #tpu.memory_space<vmem>>, vector<1x64xf32>,
    %427 = vector.extract_strided_slice %396 {offsets = [7, 0], sizes = [1, 64], strides = [1, 1]} : vector<16x128xf32> to vector<1x64xf32>
    %c0_392 = arith.constant 0 : index
    %c448 = arith.constant 448 : index
    %428 = vector.load %arg15[%c0_392, %c448] : memref<8x1024xf32, #tpu.memory_space<vmem>>, vector<1x64xf32>
    tpu.vector_store %arg15[%c0_392, %c448], %427 {strides = array<i32>} : memref<8x1024xf32, #tpu.memory_space<vmem>>, vector<1x64xf32>,
    %429 = vector.extract_strided_slice %396 {offsets = [7, 64], sizes = [1, 64], strides = [1, 1]} : vector<16x128xf32> to vector<1x64xf32>
    %c1_393 = arith.constant 1 : index
    %c448_394 = arith.constant 448 : index
    %430 = vector.load %arg15[%c1_393, %c448_394] : memref<8x1024xf32, #tpu.memory_space<vmem>>, vector<1x64xf32>
    tpu.vector_store %arg15[%c1_393, %c448_394], %429 {strides = array<i32>} : memref<8x1024xf32, #tpu.memory_space<vmem>>, vector<1x64xf32>,
    %431 = vector.extract_strided_slice %396 {offsets = [8, 0], sizes = [1, 64], strides = [1, 1]} : vector<16x128xf32> to vector<1x64xf32>
    %c0_395 = arith.constant 0 : index
    %c512 = arith.constant 512 : index
    %432 = vector.load %arg15[%c0_395, %c512] : memref<8x1024xf32, #tpu.memory_space<vmem>>, vector<1x64xf32>
    tpu.vector_store %arg15[%c0_395, %c512], %431 {strides = array<i32>} : memref<8x1024xf32, #tpu.memory_space<vmem>>, vector<1x64xf32>,
    %433 = vector.extract_strided_slice %396 {offsets = [8, 64], sizes = [1, 64], strides = [1, 1]} : vector<16x128xf32> to vector<1x64xf32>
    %c1_396 = arith.constant 1 : index
    %c512_397 = arith.constant 512 : index
    %434 = vector.load %arg15[%c1_396, %c512_397] : memref<8x1024xf32, #tpu.memory_space<vmem>>, vector<1x64xf32>
    tpu.vector_store %arg15[%c1_396, %c512_397], %433 {strides = array<i32>} : memref<8x1024xf32, #tpu.memory_space<vmem>>, vector<1x64xf32>,
    %435 = vector.extract_strided_slice %396 {offsets = [9, 0], sizes = [1, 64], strides = [1, 1]} : vector<16x128xf32> to vector<1x64xf32>
    %c0_398 = arith.constant 0 : index
    %c576 = arith.constant 576 : index
    %436 = vector.load %arg15[%c0_398, %c576] : memref<8x1024xf32, #tpu.memory_space<vmem>>, vector<1x64xf32>
    tpu.vector_store %arg15[%c0_398, %c576], %435 {strides = array<i32>} : memref<8x1024xf32, #tpu.memory_space<vmem>>, vector<1x64xf32>,
    %437 = vector.extract_strided_slice %396 {offsets = [9, 64], sizes = [1, 64], strides = [1, 1]} : vector<16x128xf32> to vector<1x64xf32>
    %c1_399 = arith.constant 1 : index
    %c576_400 = arith.constant 576 : index
    %438 = vector.load %arg15[%c1_399, %c576_400] : memref<8x1024xf32, #tpu.memory_space<vmem>>, vector<1x64xf32>
    tpu.vector_store %arg15[%c1_399, %c576_400], %437 {strides = array<i32>} : memref<8x1024xf32, #tpu.memory_space<vmem>>, vector<1x64xf32>,
    %439 = vector.extract_strided_slice %396 {offsets = [10, 0], sizes = [1, 64], strides = [1, 1]} : vector<16x128xf32> to vector<1x64xf32>
    %c0_401 = arith.constant 0 : index
    %c640 = arith.constant 640 : index
    %440 = vector.load %arg15[%c0_401, %c640] : memref<8x1024xf32, #tpu.memory_space<vmem>>, vector<1x64xf32>
    tpu.vector_store %arg15[%c0_401, %c640], %439 {strides = array<i32>} : memref<8x1024xf32, #tpu.memory_space<vmem>>, vector<1x64xf32>,
    %441 = vector.extract_strided_slice %396 {offsets = [10, 64], sizes = [1, 64], strides = [1, 1]} : vector<16x128xf32> to vector<1x64xf32>
    %c1_402 = arith.constant 1 : index
    %c640_403 = arith.constant 640 : index
    %442 = vector.load %arg15[%c1_402, %c640_403] : memref<8x1024xf32, #tpu.memory_space<vmem>>, vector<1x64xf32>
    tpu.vector_store %arg15[%c1_402, %c640_403], %441 {strides = array<i32>} : memref<8x1024xf32, #tpu.memory_space<vmem>>, vector<1x64xf32>,
    %443 = vector.extract_strided_slice %396 {offsets = [11, 0], sizes = [1, 64], strides = [1, 1]} : vector<16x128xf32> to vector<1x64xf32>
    %c0_404 = arith.constant 0 : index
    %c704 = arith.constant 704 : index
    %444 = vector.load %arg15[%c0_404, %c704] : memref<8x1024xf32, #tpu.memory_space<vmem>>, vector<1x64xf32>
    tpu.vector_store %arg15[%c0_404, %c704], %443 {strides = array<i32>} : memref<8x1024xf32, #tpu.memory_space<vmem>>, vector<1x64xf32>,
    %445 = vector.extract_strided_slice %396 {offsets = [11, 64], sizes = [1, 64], strides = [1, 1]} : vector<16x128xf32> to vector<1x64xf32>
    %c1_405 = arith.constant 1 : index
    %c704_406 = arith.constant 704 : index
    %446 = vector.load %arg15[%c1_405, %c704_406] : memref<8x1024xf32, #tpu.memory_space<vmem>>, vector<1x64xf32>
    tpu.vector_store %arg15[%c1_405, %c704_406], %445 {strides = array<i32>} : memref<8x1024xf32, #tpu.memory_space<vmem>>, vector<1x64xf32>,
    %447 = vector.extract_strided_slice %396 {offsets = [12, 0], sizes = [1, 64], strides = [1, 1]} : vector<16x128xf32> to vector<1x64xf32>
    %c0_407 = arith.constant 0 : index
    %c768 = arith.constant 768 : index
    %448 = vector.load %arg15[%c0_407, %c768] : memref<8x1024xf32, #tpu.memory_space<vmem>>, vector<1x64xf32>
    tpu.vector_store %arg15[%c0_407, %c768], %447 {strides = array<i32>} : memref<8x1024xf32, #tpu.memory_space<vmem>>, vector<1x64xf32>,
    %449 = vector.extract_strided_slice %396 {offsets = [12, 64], sizes = [1, 64], strides = [1, 1]} : vector<16x128xf32> to vector<1x64xf32>
    %c1_408 = arith.constant 1 : index
    %c768_409 = arith.constant 768 : index
    %450 = vector.load %arg15[%c1_408, %c768_409] : memref<8x1024xf32, #tpu.memory_space<vmem>>, vector<1x64xf32>
    tpu.vector_store %arg15[%c1_408, %c768_409], %449 {strides = array<i32>} : memref<8x1024xf32, #tpu.memory_space<vmem>>, vector<1x64xf32>,
    %451 = vector.extract_strided_slice %396 {offsets = [13, 0], sizes = [1, 64], strides = [1, 1]} : vector<16x128xf32> to vector<1x64xf32>
    %c0_410 = arith.constant 0 : index
    %c832 = arith.constant 832 : index
    %452 = vector.load %arg15[%c0_410, %c832] : memref<8x1024xf32, #tpu.memory_space<vmem>>, vector<1x64xf32>
    tpu.vector_store %arg15[%c0_410, %c832], %451 {strides = array<i32>} : memref<8x1024xf32, #tpu.memory_space<vmem>>, vector<1x64xf32>,
    %453 = vector.extract_strided_slice %396 {offsets = [13, 64], sizes = [1, 64], strides = [1, 1]} : vector<16x128xf32> to vector<1x64xf32>
    %c1_411 = arith.constant 1 : index
    %c832_412 = arith.constant 832 : index
    %454 = vector.load %arg15[%c1_411, %c832_412] : memref<8x1024xf32, #tpu.memory_space<vmem>>, vector<1x64xf32>
    tpu.vector_store %arg15[%c1_411, %c832_412], %453 {strides = array<i32>} : memref<8x1024xf32, #tpu.memory_space<vmem>>, vector<1x64xf32>,
    %455 = vector.extract_strided_slice %396 {offsets = [14, 0], sizes = [1, 64], strides = [1, 1]} : vector<16x128xf32> to vector<1x64xf32>
    %c0_413 = arith.constant 0 : index
    %c896 = arith.constant 896 : index
    %456 = vector.load %arg15[%c0_413, %c896] : memref<8x1024xf32, #tpu.memory_space<vmem>>, vector<1x64xf32>
    tpu.vector_store %arg15[%c0_413, %c896], %455 {strides = array<i32>} : memref<8x1024xf32, #tpu.memory_space<vmem>>, vector<1x64xf32>,
    %457 = vector.extract_strided_slice %396 {offsets = [14, 64], sizes = [1, 64], strides = [1, 1]} : vector<16x128xf32> to vector<1x64xf32>
    %c1_414 = arith.constant 1 : index
    %c896_415 = arith.constant 896 : index
    %458 = vector.load %arg15[%c1_414, %c896_415] : memref<8x1024xf32, #tpu.memory_space<vmem>>, vector<1x64xf32>
    tpu.vector_store %arg15[%c1_414, %c896_415], %457 {strides = array<i32>} : memref<8x1024xf32, #tpu.memory_space<vmem>>, vector<1x64xf32>,
    %459 = vector.extract_strided_slice %396 {offsets = [15, 0], sizes = [1, 64], strides = [1, 1]} : vector<16x128xf32> to vector<1x64xf32>
    %c0_416 = arith.constant 0 : index
    %c960 = arith.constant 960 : index
    %460 = vector.load %arg15[%c0_416, %c960] : memref<8x1024xf32, #tpu.memory_space<vmem>>, vector<1x64xf32>
    tpu.vector_store %arg15[%c0_416, %c960], %459 {strides = array<i32>} : memref<8x1024xf32, #tpu.memory_space<vmem>>, vector<1x64xf32>,
    %461 = vector.extract_strided_slice %396 {offsets = [15, 64], sizes = [1, 64], strides = [1, 1]} : vector<16x128xf32> to vector<1x64xf32>
    %c1_417 = arith.constant 1 : index
    %c960_418 = arith.constant 960 : index
    %462 = vector.load %arg15[%c1_417, %c960_418] : memref<8x1024xf32, #tpu.memory_space<vmem>>, vector<1x64xf32>
    tpu.vector_store %arg15[%c1_417, %c960_418], %461 {strides = array<i32>} : memref<8x1024xf32, #tpu.memory_space<vmem>>, vector<1x64xf32>,
    %c0_419 = arith.constant 0 : index
    %c0_420 = arith.constant 0 : index
    %463 = vector.load %arg15[%c0_419, %c0_420] : memref<8x1024xf32, #tpu.memory_space<vmem>>, vector<8x1024xf32>
    %c0_421 = arith.constant 0 : index
    %c0_422 = arith.constant 0 : index
    %464 = vector.load %arg6[%c0_421, %c0_422] : memref<1024x128xf32, #tpu.memory_space<vmem>>, vector<1024x128xf32>
    %cst_423 = arith.constant dense<0.000000e+00> : vector<8x128xf32>
    %465 = tpu.matmul %463, %464, %cst_423 {dimension_numbers = #tpu.dot_dimension_numbers<[1], [0], [0], [1], [0, 0, 1, 1], [], []>} : vector<8x1024xf32>, vector<1024x128xf32>, vector<8x128xf32> -> vector<8x128xf32>
    %c0_424 = arith.constant 0 : index
    %c0_425 = arith.constant 0 : index
    %466 = vector.load %arg7[%c0_424, %c0_425] : memref<1x128xf32, #tpu.memory_space<vmem>>, vector<1x128xf32>
    %467 = vector.broadcast %466 : vector<1x128xf32> to vector<8x128xf32>
    %468 = arith.addf %465, %467 : vector<8x128xf32>
    %cst_426 = arith.constant 0.000000e+00 : f32
    %469 = vector.broadcast %cst_426 : f32 to vector<8x128xf32>
    %470 = arith.maximumf %468, %469 : vector<8x128xf32>
    %c0_427 = arith.constant 0 : index
    %c0_428 = arith.constant 0 : index
    %471 = vector.load %arg8[%c0_427, %c0_428] : memref<128x128xf32, #tpu.memory_space<vmem>>, vector<128x128xf32>
    %cst_429 = arith.constant dense<0.000000e+00> : vector<8x128xf32>
    %472 = tpu.matmul %470, %471, %cst_429 {dimension_numbers = #tpu.dot_dimension_numbers<[1], [0], [0], [1], [0, 0, 1, 1], [], []>} : vector<8x128xf32>, vector<128x128xf32>, vector<8x128xf32> -> vector<8x128xf32>
    %c0_430 = arith.constant 0 : index
    %c0_431 = arith.constant 0 : index
    %473 = vector.load %arg9[%c0_430, %c0_431] : memref<1x128xf32, #tpu.memory_space<vmem>>, vector<1x128xf32>
    %474 = vector.broadcast %473 : vector<1x128xf32> to vector<8x128xf32>
    %475 = arith.addf %472, %474 : vector<8x128xf32>
    %cst_432 = arith.constant 0.000000e+00 : f32
    %476 = vector.broadcast %cst_432 : f32 to vector<8x128xf32>
    %477 = arith.maximumf %475, %476 : vector<8x128xf32>
    %c0_433 = arith.constant 0 : index
    %c0_434 = arith.constant 0 : index
    %478 = vector.load %arg10[%c0_433, %c0_434] : memref<128x128xf32, #tpu.memory_space<vmem>>, vector<128x128xf32>
    %cst_435 = arith.constant dense<0.000000e+00> : vector<8x128xf32>
    %479 = tpu.matmul %477, %478, %cst_435 {dimension_numbers = #tpu.dot_dimension_numbers<[1], [0], [0], [1], [0, 0, 1, 1], [], []>} : vector<8x128xf32>, vector<128x128xf32>, vector<8x128xf32> -> vector<8x128xf32>
    %c0_436 = arith.constant 0 : index
    %c0_437 = arith.constant 0 : index
    %480 = vector.load %arg11[%c0_436, %c0_437] : memref<1x128xf32, #tpu.memory_space<vmem>>, vector<1x128xf32>
    %481 = vector.broadcast %480 : vector<1x128xf32> to vector<8x128xf32>
    %482 = arith.addf %479, %481 : vector<8x128xf32>
    %483 = vector.extract_strided_slice %482 {offsets = [0, 0], sizes = [2, 10], strides = [1, 1]} : vector<8x128xf32> to vector<2x10xf32>
    %c0_438 = arith.constant 0 : index
    %c0_439 = arith.constant 0 : index
    %484 = vector.load %arg12[%c0_438, %c0_439] : memref<2x10xf32, #tpu.memory_space<vmem>>, vector<2x10xf32>
    tpu.vector_store %arg12[%c0_438, %c0_439], %483 {strides = array<i32>} : memref<2x10xf32, #tpu.memory_space<vmem>>, vector<2x10xf32>,
    return
  }
  func.func @transform_0(%arg0: i32) -> (i32, i32, i32) {
    %c0_i32 = arith.constant 0 : i32
    %c0_i32_0 = arith.constant 0 : i32
    %c0_i32_1 = arith.constant 0 : i32
    %c0_i32_2 = arith.constant 0 : i32
    return %c0_i32, %c0_i32_0, %c0_i32_1 : i32, i32, i32
  }
  func.func @transform_1(%arg0: i32) -> (i32, i32) {
    %c0_i32 = arith.constant 0 : i32
    %c0_i32_0 = arith.constant 0 : i32
    %c0_i32_1 = arith.constant 0 : i32
    return %c0_i32, %c0_i32_0 : i32, i32
  }
  func.func @transform_2(%arg0: i32) -> (i32, i32) {
    %c0_i32 = arith.constant 0 : i32
    %c0_i32_0 = arith.constant 0 : i32
    %c0_i32_1 = arith.constant 0 : i32
    return %c0_i32, %c0_i32_0 : i32, i32
  }
  func.func @transform_3(%arg0: i32) -> (i32, i32, i32) {
    %c0_i32 = arith.constant 0 : i32
    %c0_i32_0 = arith.constant 0 : i32
    %c0_i32_1 = arith.constant 0 : i32
    %c0_i32_2 = arith.constant 0 : i32
    return %c0_i32, %c0_i32_0, %c0_i32_1 : i32, i32, i32
  }
  func.func @transform_4(%arg0: i32) -> (i32, i32) {
    %c0_i32 = arith.constant 0 : i32
    %c0_i32_0 = arith.constant 0 : i32
    %c0_i32_1 = arith.constant 0 : i32
    return %c0_i32, %c0_i32_0 : i32, i32
  }
  func.func @transform_5(%arg0: i32) -> (i32, i32) {
    %c0_i32 = arith.constant 0 : i32
    %c0_i32_0 = arith.constant 0 : i32
    %c0_i32_1 = arith.constant 0 : i32
    return %c0_i32, %c0_i32_0 : i32, i32
  }
  func.func @transform_6(%arg0: i32) -> (i32, i32) {
    %c0_i32 = arith.constant 0 : i32
    %c0_i32_0 = arith.constant 0 : i32
    %c0_i32_1 = arith.constant 0 : i32
    return %c0_i32, %c0_i32_0 : i32, i32
  }
  func.func @transform_7(%arg0: i32) -> (i32, i32) {
    %c0_i32 = arith.constant 0 : i32
    %c0_i32_0 = arith.constant 0 : i32
    %c0_i32_1 = arith.constant 0 : i32
    return %c0_i32, %c0_i32_0 : i32, i32
  }
  func.func @transform_8(%arg0: i32) -> (i32, i32) {
    %c0_i32 = arith.constant 0 : i32
    %c0_i32_0 = arith.constant 0 : i32
    %c0_i32_1 = arith.constant 0 : i32
    return %c0_i32, %c0_i32_0 : i32, i32
  }
  func.func @transform_9(%arg0: i32) -> (i32, i32) {
    %c0_i32 = arith.constant 0 : i32
    %c0_i32_0 = arith.constant 0 : i32
    %c0_i32_1 = arith.constant 0 : i32
    return %c0_i32, %c0_i32_0 : i32, i32
  }
  func.func @transform_10(%arg0: i32) -> (i32, i32) {
    %c0_i32 = arith.constant 0 : i32
    %c0_i32_0 = arith.constant 0 : i32
    %c0_i32_1 = arith.constant 0 : i32
    return %c0_i32, %c0_i32_0 : i32, i32
  }
  func.func @transform_11(%arg0: i32) -> (i32, i32) {
    %c0_i32 = arith.constant 0 : i32
    %c0_i32_0 = arith.constant 0 : i32
    %c0_i32_1 = arith.constant 0 : i32
    return %c0_i32, %c0_i32_0 : i32, i32
  }
}

</mosaic_0001>

<bundles_post_ra>
// kernel: lenet_forward.1
= control target key start
LH: loop header
LB: loop body
LE: loop exit
PB: predicated region body
PF: predicated region fallthrough
CT: control target
= control target key end

     0   :  { %vm72_vm0 = vcmask 654336   ;;  %s3996_s0 = inlined_call_operand.vmem [shape: f32[16,80,128], index: 0, kind: input, shape index: {}]   ;;  %s3997_s1 = inlined_call_operand.vmem [shape: f32[8,80], index: 1, kind: input, shape index: {}]   ;;  %s3998_s2 = inlined_call_operand.vmem [shape: f32[8,1], index: 2, kind: input, shape index: {}]   ;;  %s3999_s3 = inlined_call_operand.vmem [shape: f32[5,16,40], index: 3, kind: input, shape index: {}]   ;;  %s4000_s4 = inlined_call_operand.vmem [shape: f32[16,1], index: 4, kind: input, shape index: {}]   ;;  %s4001_s5 = inlined_call_operand.vmem [shape: f32[1024,128], index: 5, kind: input, shape index: {}]   ;;  %s4002_s6 = inlined_call_operand.vmem [shape: f32[1,128], index: 6, kind: input, shape index: {}]   ;;  %s4003_s7 = inlined_call_operand.vmem [shape: f32[128,128], index: 7, kind: input, shape index: {}]   ;;  %s4004_s8 = inlined_call_operand.vmem [shape: f32[1,128], index: 8, kind: input, shape index: {}]   ;;  %s4005_s9 = inlined_call_operand.vmem [shape: f32[128,128], index: 9, kind: input, shape index: {}]   ;;  %s4006_s10 = inlined_call_operand.vmem [shape: f32[1,128], index: 10, kind: input, shape index: {}]   ;;  %s4007_s11 = inlined_call_operand.hbm [shape: f32[2,10], index: 11, kind: output, shape index: {}]  }
   0x1   :  { %v2102_v0 = vld [vmem:[%s3996_s0 + $0x188] sm:$0xff]  ;;  %v2101_v1 = vld [vmem:[%s3996_s0 + $0x180] sm:$0xff]  ;;  %v2113_v2 = vld [vmem:[%s3996_s0 + $0x1d8] sm:$0xff] }
   0x2   :  { %145 = vmatpush.msra.mxu2 %v2102_v0  ;;  %177 = vmatpush.msra.mxu3 %v2113_v2  ;;  %v71_v3 = vld [vmem:[%s3996_s0 + $0x48] sm:$0xff]  ;;  %v2091_v4 = vld [vmem:[%s3996_s0 + $0x98] sm:$0xff]  ;;  %v2112_v6 = vld [vmem:[%s3996_s0 + $0x1d0] sm:$0xff] }
   0x3   :  { %v2100_v5 = vld [vmem:[%s3996_s0 + $0x178] sm:$0xff]  ;;  %82 = vmatpush.msra.mxu0 %v71_v3  ;;  %113 = vmatpush.msra.mxu1 %v2091_v4  ;;  %v70_v7 = vld [vmem:[%s3996_s0 + $0x40] sm:$0xff]  ;;  %v2090_v8 = vld [vmem:[%s3996_s0 + $0x90] sm:$0xff] }
   0x4   :  { %146 = vmatpush.msra.mxu2 %v2101_v1  ;;  %178 = vmatpush.msra.mxu3 %v2112_v6  ;;  %v2111_v9 = vld [vmem:[%s3996_s0 + $0x1c8] sm:$0xff]  ;;  %v69_v10 = vld [vmem:[%s3996_s0 + $0x38] sm:$0xff]  ;;  %v2099_v11 = vld [vmem:[%s3996_s0 + $0x170] sm:$0xff] }
   0x5   :  { %83 = vmatpush.msra.mxu0 %v70_v7  ;;  %114 = vmatpush.msra.mxu1 %v2090_v8  ;;  %v2089_v12 = vld [vmem:[%s3996_s0 + $0x88] sm:$0xff]  ;;  %v2110_v13 = vld [vmem:[%s3996_s0 + $0x1c0] sm:$0xff]  ;;  %v68_v14 = vld [vmem:[%s3996_s0 + $0x30] sm:$0xff] }
   0x6   :  { %147 = vmatpush.msra.mxu2 %v2100_v5  ;;  %179 = vmatpush.msra.mxu3 %v2111_v9  ;;  %v2088_v15 = vld [vmem:[%s3996_s0 + $0x80] sm:$0xff]  ;;  %v2098_v16 = vld [vmem:[%s3996_s0 + $0x168] sm:$0xff]  ;;  %v2109_v17 = vld [vmem:[%s3996_s0 + $0x1b8] sm:$0xff] }
   0x7   :  { %84 = vmatpush.msra.mxu0 %v69_v10  ;;  %115 = vmatpush.msra.mxu1 %v2089_v12  ;;  %v67_v18 = vld [vmem:[%s3996_s0 + $0x28] sm:$0xff]  ;;  %v2087_v19 = vld [vmem:[%s3996_s0 + $0x78] sm:$0xff]  ;;  %v2097_v20 = vld [vmem:[%s3996_s0 + $0x160] sm:$0xff] }
   0x8   :  { %148 = vmatpush.msra.mxu2 %v2099_v11  ;;  %180 = vmatpush.msra.mxu3 %v2110_v13  ;;  %v2108_v21 = vld [vmem:[%s3996_s0 + $0x1b0] sm:$0xff]  ;;  %v66_v22 = vld [vmem:[%s3996_s0 + $0x20] sm:$0xff]  ;;  %v2096_v24 = vld [vmem:[%s3996_s0 + $0x158] sm:$0xff] }
   0x9   :  { %85 = vmatpush.msra.mxu0 %v68_v14  ;;  %116 = vmatpush.msra.mxu1 %v2088_v15  ;;  %v2086_v23 = vld [vmem:[%s3996_s0 + $0x70] sm:$0xff]  ;;  %v2107_v25 = vld [vmem:[%s3996_s0 + $0x1a8] sm:$0xff]  ;;  %v65_v26 = vld [vmem:[%s3996_s0 + $0x18] sm:$0xff] }
   0xa   :  { %149 = vmatpush.msra.mxu2 %v2098_v16  ;;  %181 = vmatpush.msra.mxu3 %v2109_v17  ;;  %v2085_v27 = vld [vmem:[%s3996_s0 + $0x68] sm:$0xff]  ;;  %v2095_v28 = vld [vmem:[%s3996_s0 + $0x150] sm:$0xff]  ;;  %v2106_v29 = vld [vmem:[%s3996_s0 + $0x1a0] sm:$0xff] }
   0xb   :  { %86 = vmatpush.msra.mxu0 %v67_v18  ;;  %117 = vmatpush.msra.mxu1 %v2087_v19  ;;  %v64_v30 = vld [vmem:[%s3996_s0 + $0x10] sm:$0xff]  ;;  %v2084_v31 = vld [vmem:[%s3996_s0 + $0x60] sm:$0xff]  ;;  %v2094_v32 = vld [vmem:[%s3996_s0 + $0x148] sm:$0xff] }
   0xc   :  { %150 = vmatpush.msra.mxu2 %v2097_v20  ;;  %182 = vmatpush.msra.mxu3 %v2108_v21  ;;  %v2105_v33 = vld [vmem:[%s3996_s0 + $0x198] sm:$0xff]  ;;  %v63_v34 = vld [vmem:[%s3996_s0 + $0x8] sm:$0xff]  ;;  %v2093_v36 = vld [vmem:[%s3996_s0 + $0x140] sm:$0xff] }
   0xd   :  { %87 = vmatpush.msra.mxu0 %v66_v22  ;;  %118 = vmatpush.msra.mxu1 %v2086_v23  ;;  %v2083_v35 = vld [vmem:[%s3996_s0 + $0x58] sm:$0xff]  ;;  %v2104_v37 = vld [vmem:[%s3996_s0 + $0x190] sm:$0xff]  ;;  %v2146_v38 = vld [vmem:[%s3996_s0 + $0x228] sm:$0xff] }
   0xe   :  { %151 = vmatpush.msra.mxu2 %v2096_v24  ;;  %183 = vmatpush.msra.mxu3 %v2107_v25  ;;  %v2157_v39 = vld [vmem:[%s3996_s0 + $0x278] sm:$0xff]  ;;  %v62_v40 = vld [vmem:[%s3996_s0] sm:$0xff]  ;;  %v2082_v41 = vld [vmem:[%s3996_s0 + $0x50] sm:$0xff] }
   0xf   :  { %88 = vmatpush.msra.mxu0 %v65_v26  ;;  %119 = vmatpush.msra.mxu1 %v2085_v27  ;;  %v2145_v42 = vld [vmem:[%s3996_s0 + $0x220] sm:$0xff]  ;;  %v2124_v43 = vld [vmem:[%s3996_s0 + $0xe8] sm:$0xff]  ;;  %v2135_v44 = vld [vmem:[%s3996_s0 + $0x138] sm:$0xff] }
  0x10   :  { %152 = vmatpush.msra.mxu2 %v2095_v28  ;;  %184 = vmatpush.msra.mxu3 %v2106_v29  ;;  %v2156_v45 = vld [vmem:[%s3996_s0 + $0x270] sm:$0xff]  ;;  %v2144_v46 = vld [vmem:[%s3996_s0 + $0x218] sm:$0xff]  ;;  %v2123_v47 = vld [vmem:[%s3996_s0 + $0xe0] sm:$0xff] }
  0x11   :  { %89 = vmatpush.msra.mxu0 %v64_v30  ;;  %120 = vmatpush.msra.mxu1 %v2084_v31  ;;  %v2134_v48 = vld [vmem:[%s3996_s0 + $0x130] sm:$0xff]  ;;  %v2155_v49 = vld [vmem:[%s3996_s0 + $0x268] sm:$0xff]  ;;  %v2122_v51 = vld [vmem:[%s3996_s0 + $0xd8] sm:$0xff] }
  0x12   :  { %153 = vmatpush.msra.mxu2 %v2094_v32  ;;  %185 = vmatpush.msra.mxu3 %v2105_v33  ;;  %v2143_v50 = vld [vmem:[%s3996_s0 + $0x210] sm:$0xff]  ;;  %v2133_v52 = vld [vmem:[%s3996_s0 + $0x128] sm:$0xff]  ;;  %v2154_v53 = vld [vmem:[%s3996_s0 + $0x260] sm:$0xff] }
  0x13   :  { %90 = vmatpush.msra.mxu0 %v63_v34  ;;  %121 = vmatpush.msra.mxu1 %v2083_v35  ;;  %v2142_v54 = vld [vmem:[%s3996_s0 + $0x208] sm:$0xff]  ;;  %v2121_v55 = vld [vmem:[%s3996_s0 + $0xd0] sm:$0xff]  ;;  %v2132_v56 = vld [vmem:[%s3996_s0 + $0x120] sm:$0xff] }
  0x14   :  { %154 = vmatpush.msra.mxu2 %v2093_v36  ;;  %186 = vmatpush.msra.mxu3 %v2104_v37  ;;  %v2153_v57 = vld [vmem:[%s3996_s0 + $0x258] sm:$0xff]  ;;  %v2141_v58 = vld [vmem:[%s3996_s0 + $0x200] sm:$0xff]  ;;  %v2120_v59 = vld [vmem:[%s3996_s0 + $0xc8] sm:$0xff] }
  0x15   :  { %91 = vmatpush.msra.mxu0 %v62_v40  ;;  %122 = vmatpush.msra.mxu1 %v2082_v41  ;;  %v2745_v60 = vld [vmem:[%s3997_s1] sm:$0xff]  ;;  %v2131_v61 = vld [vmem:[%s3996_s0 + $0x118] sm:$0xff]  ;;  %v2152_v63 = vld [vmem:[%s3996_s0 + $0x250] sm:$0xff] }
  0x16   :  { %280 = vmatpush.msrb.mxu2 %v2146_v38  ;;  %312 = vmatpush.msrb.mxu3 %v2157_v39  ;;  %v2140_v62 = vld [vmem:[%s3996_s0 + $0x1f8] sm:$0xff]  ;;  %v2119_v0 = vld [vmem:[%s3996_s0 + $0xc0] sm:$0xff]  ;;  %v2130_v1 = vld [vmem:[%s3996_s0 + $0x110] sm:$0xff] }
  0x17   :  { %217 = vmatpush.msrb.mxu0 %v2124_v43  ;;  %248 = vmatpush.msrb.mxu1 %v2135_v44  ;;  %v2139_v2 = vld [vmem:[%s3996_s0 + $0x1f0] sm:$0xff]  ;;  %v2151_v3 = vld [vmem:[%s3996_s0 + $0x248] sm:$0xff]  ;;  %v2118_v4 = vld [vmem:[%s3996_s0 + $0xb8] sm:$0xff] }
  0x18   :  { %281 = vmatpush.msrb.mxu2 %v2145_v42  ;;  %313 = vmatpush.msrb.mxu3 %v2156_v45  ;;  %v2129_v5 = vld [vmem:[%s3996_s0 + $0x108] sm:$0xff]  ;;  %v2150_v7 = vld [vmem:[%s3996_s0 + $0x240] sm:$0xff]  ;;  %v2117_v8 = vld [vmem:[%s3996_s0 + $0xb0] sm:$0xff] }
  0x19   :  { %218 = vmatpush.msrb.mxu0 %v2123_v47  ;;  %249 = vmatpush.msrb.mxu1 %v2134_v48  ;;  %v2138_v6 = vld [vmem:[%s3996_s0 + $0x1e8] sm:$0xff]  ;;  %v2128_v9 = vld [vmem:[%s3996_s0 + $0x100] sm:$0xff]  ;;  %v2149_v11 = vld [vmem:[%s3996_s0 + $0x238] sm:$0xff] }
  0x1a   :  { %282 = vmatpush.msrb.mxu2 %v2144_v46  ;;  %314 = vmatpush.msrb.mxu3 %v2155_v49  ;;  %v2137_v10 = vld [vmem:[%s3996_s0 + $0x1e0] sm:$0xff]  ;;  %v2190_v12 = vld [vmem:[%s3996_s0 + $0x408] sm:$0xff]  ;;  %v2127_v14 = vld [vmem:[%s3996_s0 + $0xf8] sm:$0xff] }
  0x1b   :  { %219 = vmatpush.msrb.mxu0 %v2122_v51  ;;  %250 = vmatpush.msrb.mxu1 %v2133_v52  ;;  %v2116_v13 = vld [vmem:[%s3996_s0 + $0xa8] sm:$0xff]  ;;  %v2148_v15 = vld [vmem:[%s3996_s0 + $0x230] sm:$0xff]  ;;  %v2189_v16 = vld [vmem:[%s3996_s0 + $0x400] sm:$0xff] }
  0x1c   :  { %283 = vmatpush.msrb.mxu2 %v2143_v50  ;;  %315 = vmatpush.msrb.mxu3 %v2154_v53  ;;  %v2201_v17 = vld [vmem:[%s3996_s0 + $0x458] sm:$0xff]  ;;  %v2115_v18 = vld [vmem:[%s3996_s0 + $0xa0] sm:$0xff]  ;;  %v2126_v19 = vld [vmem:[%s3996_s0 + $0xf0] sm:$0xff] }
  0x1d   :  { %220 = vmatpush.msrb.mxu0 %v2121_v55  ;;  %251 = vmatpush.msrb.mxu1 %v2132_v56  ;;  %v2168_v20 = vld [vmem:[%s3996_s0 + $0x2c8] sm:$0xff]  ;;  %v2179_v21 = vld [vmem:[%s3996_s0 + $0x318] sm:$0xff]  ;;  %v2200_v23 = vld [vmem:[%s3996_s0 + $0x450] sm:$0xff] }
  0x1e   :  { %284 = vmatpush.msrb.mxu2 %v2142_v54  ;;  %316 = vmatpush.msrb.mxu3 %v2153_v57  ;;  %v2188_v22 = vld [vmem:[%s3996_s0 + $0x3f8] sm:$0xff]  ;;  %v2167_v24 = vld [vmem:[%s3996_s0 + $0x2c0] sm:$0xff]  ;;  %v2178_v25 = vld [vmem:[%s3996_s0 + $0x310] sm:$0xff] }
  0x1f   :  { %221 = vmatpush.msrb.mxu0 %v2120_v59  ;;  %2103 = vmatmul.msk.f32.vlgmr.msra.gmra.mxu2 %vm72_vm0, %v2745_v60  ;;  %v2187_v26 = vld [vmem:[%s3996_s0 + $0x3f0] sm:$0xff]  ;;  %v2199_v27 = vld [vmem:[%s3996_s0 + $0x448] sm:$0xff]  ;;  %v2166_v28 = vld [vmem:[%s3996_s0 + $0x2b8] sm:$0xff] }
  0x20   :  { %285 = vmatpush.msrb.mxu2 %v2141_v58  ;;  %252 = vmatpush.msrb.mxu1 %v2131_v61  ;;  %v2177_v29 = vld [vmem:[%s3996_s0 + $0x308] sm:$0xff]  ;;  %v2198_v31 = vld [vmem:[%s3996_s0 + $0x440] sm:$0xff]  ;;  %v2165_v32 = vld [vmem:[%s3996_s0 + $0x2b0] sm:$0xff] }
  0x21   :  { %317 = vmatpush.msrb.mxu3 %v2152_v63  ;;  %222 = vmatpush.msrb.mxu0 %v2119_v0  ;;  %v2186_v30 = vld [vmem:[%s3996_s0 + $0x3e8] sm:$0xff]  ;;  %v2176_v33 = vld [vmem:[%s3996_s0 + $0x300] sm:$0xff]  ;;  %v2197_v35 = vld [vmem:[%s3996_s0 + $0x438] sm:$0xff] }
  0x22   :  { %286 = vmatpush.msrb.mxu2 %v2140_v62  ;;  %2114 = vmatmul.msk.f32.vlgmr.msra.gmra.mxu3 %vm72_vm0, %v2745_v60  ;;  %v2185_v34 = vld [vmem:[%s3996_s0 + $0x3e0] sm:$0xff]  ;;  %v2164_v36 = vld [vmem:[%s3996_s0 + $0x2a8] sm:$0xff]  ;;  %v2175_v37 = vld [vmem:[%s3996_s0 + $0x2f8] sm:$0xff] }
  0x23   :  { %253 = vmatpush.msrb.mxu1 %v2130_v1  ;;  %318 = vmatpush.msrb.mxu3 %v2151_v3  ;;  %v2184_v38 = vld [vmem:[%s3996_s0 + $0x3d8] sm:$0xff]  ;;  %v2196_v39 = vld [vmem:[%s3996_s0 + $0x430] sm:$0xff] }
  0x24   :  { %287 = vmatpush.msrb.mxu2 %v2139_v2  ;;  %2081 = vmatmul.msk.f32.vlgmr.msra.gmra.mxu0 %vm72_vm0, %v2745_v60 }
  0x25   :  { %2092 = vmatmul.msk.f32.vlgmr.msra.gmra.mxu1 %vm72_vm0, %v2745_v60  ;;  %223 = vmatpush.msrb.mxu0 %v2118_v4 }
  0x26   :  { %254 = vmatpush.msrb.mxu1 %v2129_v5  ;;  %288 = vmatpush.msrb.mxu2 %v2138_v6 }
  0x27   :  { %319 = vmatpush.msrb.mxu3 %v2150_v7  ;;  %224 = vmatpush.msrb.mxu0 %v2117_v8 }
  0x28   :  { %255 = vmatpush.msrb.mxu1 %v2128_v9  ;;  %289 = vmatpush.msrb.mxu2 %v2137_v10 }
  0x29   :  { %320 = vmatpush.msrb.mxu3 %v2149_v11  ;;  %225 = vmatpush.msrb.mxu0 %v2116_v13 }
  0x2a   :  { %411 = vmatpush.msra.mxu2 %v2190_v12  ;;  %256 = vmatpush.msrb.mxu1 %v2127_v14 }
  0x2b   :  { %321 = vmatpush.msrb.mxu3 %v2148_v15  ;;  %226 = vmatpush.msrb.mxu0 %v2115_v18 }
  0x2c   :  { %412 = vmatpush.msra.mxu2 %v2189_v16  ;;  %257 = vmatpush.msrb.mxu1 %v2126_v19 }
  0x2d   :  { %443 = vmatpush.msra.mxu3 %v2201_v17  ;;  %2147 = vmatmul.msk.f32.vlgmr.msrb.gmra.mxu2 %vm72_vm0, %v2745_v60 }
  0x2e   :  { %348 = vmatpush.msra.mxu0 %v2168_v20  ;;  %379 = vmatpush.msra.mxu1 %v2179_v21 }
  0x2f   :  { %413 = vmatpush.msra.mxu2 %v2188_v22  ;;  %444 = vmatpush.msra.mxu3 %v2200_v23 }
  0x30   :  { %2158 = vmatmul.msk.f32.vlgmr.msrb.gmra.mxu3 %vm72_vm0, %v2745_v60  ;;  %349 = vmatpush.msra.mxu0 %v2167_v24 }
  0x31   :  { %380 = vmatpush.msra.mxu1 %v2178_v25  ;;  %414 = vmatpush.msra.mxu2 %v2187_v26 }
  0x32   :  { %445 = vmatpush.msra.mxu3 %v2199_v27  ;;  %2125 = vmatmul.msk.f32.vlgmr.msrb.gmra.mxu0 %vm72_vm0, %v2745_v60 }
  0x33   :  { %2136 = vmatmul.msk.f32.vlgmr.msrb.gmra.mxu1 %vm72_vm0, %v2745_v60  ;;  %350 = vmatpush.msra.mxu0 %v2166_v28 }
  0x34   :  { %381 = vmatpush.msra.mxu1 %v2177_v29  ;;  %415 = vmatpush.msra.mxu2 %v2186_v30 }
  0x35   :  { %446 = vmatpush.msra.mxu3 %v2198_v31  ;;  %351 = vmatpush.msra.mxu0 %v2165_v32 }
  0x36   :  { %382 = vmatpush.msra.mxu1 %v2176_v33  ;;  %416 = vmatpush.msra.mxu2 %v2185_v34 }
  0x37   :  { %16 = vsyncpa [#allocation6], 0  ;;  %447 = vmatpush.msra.mxu3 %v2197_v35  ;;  %v2490_v40 = vmov 0   ;;  %v40_v41 = vld [vmem:[%s3998_s2] sm:$0xff]  ;;  %352 = vmatpush.msra.mxu0 %v2164_v36  ;;  %v2174_v43 = vld [vmem:[%s3996_s0 + $0x2f0] sm:$0xff]  ;;  %v2491_v36 = vmov 0.0  }
  0x38   :  { %2299 = vset.pattern.permute.xlu0 %v2490_v40  ;;  %v2163_v42 = vld [vmem:[%s3996_s0 + $0x2a0] sm:$0xff]  ;;  %383 = vmatpush.msra.mxu1 %v2175_v37  ;;  %v2183_v44 = vld [vmem:[%s3996_s0 + $0x3d0] sm:$0xff]  ;;  %v2195_v45 = vld [vmem:[%s3996_s0 + $0x428] sm:$0xff]  ;;  %1561 = vst [vmem:[#allocation4] sm:$0xff] %v2491_v36  ;;  %vm54_vm1 = vcmask 195584   ;;  %s2493_s21 = smov 120  }
  0x39   :  { %417 = vmatpush.msra.mxu2 %v2184_v38  ;;  %448 = vmatpush.msra.mxu3 %v2196_v39  ;;  %v2162_v46 = vld [vmem:[%s3996_s0 + $0x298] sm:$0xff]  ;;  %v2173_v47 = vld [vmem:[%s3996_s0 + $0x2e8] sm:$0xff]  ;;  %v2194_v49 = vld [vmem:[%s3996_s0 + $0x420] sm:$0xff]  ;;  %1562 = vst [vmem:[#allocation4 + $0x8] sm:$0xff] %v2491_v36  ;;  %s2494_s22 = smov 111   ;;  %s2495_s23 = smov 127  }
  0x3a   :  { %194 = vperm.xlu0 %2299, %v40_v41   ;;  %353 = vmatpush.msra.mxu0 %v2163_v42  ;;  %v2182_v48 = vld [vmem:[%s3996_s0 + $0x3c8] sm:$0xff]  ;;  %v2161_v50 = vld [vmem:[%s3996_s0 + $0x290] sm:$0xff]  ;;  %v2172_v51 = vld [vmem:[%s3996_s0 + $0x2e0] sm:$0xff]  ;;  %1563 = vst [vmem:[#allocation4 + $0x10] sm:$0xff] %v2491_v36  ;;  %s2496_s24 = smov 119   ;;  %s2497_s25 = smov 118  }
  0x3b   :  { %384 = vmatpush.msra.mxu1 %v2174_v43  ;;  %418 = vmatpush.msra.mxu2 %v2183_v44  ;;  %v2181_v52 = vld [vmem:[%s3996_s0 + $0x3c0] sm:$0xff]  ;;  %v2193_v53 = vld [vmem:[%s3996_s0 + $0x418] sm:$0xff]  ;;  %v2234_v54 = vld [vmem:[%s3996_s0 + $0x4a8] sm:$0xff]  ;;  %1564 = vst [vmem:[#allocation4 + $0x18] sm:$0xff] %v2491_v36  ;;  %s2498_s26 = smov 110   ;;  %s2499_s27 = smov 126  }
  0x3c   :  { %449 = vmatpush.msra.mxu3 %v2195_v45  ;;  %354 = vmatpush.msra.mxu0 %v2162_v46  ;;  %v2160_v55 = vld [vmem:[%s3996_s0 + $0x288] sm:$0xff]  ;;  %v2171_v56 = vld [vmem:[%s3996_s0 + $0x2d8] sm:$0xff]  ;;  %v2192_v57 = vld [vmem:[%s3996_s0 + $0x410] sm:$0xff]  ;;  %1565 = vst [vmem:[#allocation4 + $0x20] sm:$0xff] %v2491_v36  ;;  %vm628_vm2 = vcmask 916480   ;;  %vm605_vm3 = vcmask 982016  }
  0x3d   :  { %385 = vmatpush.msra.mxu1 %v2173_v47  ;;  %419 = vmatpush.msra.mxu2 %v2182_v48  ;;  %v2233_v58 = vld [vmem:[%s3996_s0 + $0x4a0] sm:$0xff]  ;;  %v2245_v59 = vld [vmem:[%s3996_s0 + $0x4f8] sm:$0xff]  ;;  %v2170_v62 = vld [vmem:[%s3996_s0 + $0x2d0] sm:$0xff]  ;;  %1566 = vst [vmem:[#allocation4 + $0x28] sm:$0xff] %v2491_v36  ;;  %vm747_vm4 = vcmask 908288   ;;  %vm724_vm5 = vcmask 973824  }
  0x3e   :  { %450 = vmatpush.msra.mxu3 %v2194_v49  ;;  %355 = vmatpush.msra.mxu0 %v2161_v50  ;;  %v2159_v61 = vld [vmem:[%s3996_s0 + $0x280] sm:$0xff]  ;;  %v2212_v63 = vld [vmem:[%s3996_s0 + $0x368] sm:$0xff]  ;;  %v2223_v0 = vld [vmem:[%s3996_s0 + $0x3b8] sm:$0xff]  ;;  %1567 = vst [vmem:[#allocation4 + $0x30] sm:$0xff] %v2491_v36  ;;  %vm976_vm6 = vcmask 326656   ;;  %vm884_vm7 = vcmask 900096  }
  0x3f   :  { %386 = vmatpush.msra.mxu1 %v2172_v51  ;;  %420 = vmatpush.msra.mxu2 %v2181_v52  ;;  %v2232_v1 = vld [vmem:[%s3996_s0 + $0x498] sm:$0xff]  ;;  %v2244_v2 = vld [vmem:[%s3996_s0 + $0x4f0] sm:$0xff]  ;;  %v2211_v3 = vld [vmem:[%s3996_s0 + $0x360] sm:$0xff]  ;;  %1568 = vst [vmem:[#allocation4 + $0x38] sm:$0xff] %v2491_v36  ;;  %vm861_vm8 = vcmask 965632   ;;  %vm700_vm9 = vcmask 1039360  }
  0x40   :  { %451 = vmatpush.msra.mxu3 %v2193_v53  ;;  %2191 = vmatmul.msk.f32.vlgmr.msra.gmra.mxu2 %vm72_vm0, %v2745_v60  ;;  %v2222_v4 = vld [vmem:[%s3996_s0 + $0x3b0] sm:$0xff]  ;;  %v2243_v6 = vld [vmem:[%s3996_s0 + $0x4e8] sm:$0xff]  ;;  %v2210_v7 = vld [vmem:[%s3996_s0 + $0x358] sm:$0xff]  ;;  %55 = vst.msk [vmem:[#allocation2 + $0x8] sm:$0xff] %vm54_vm1, %v2491_v36  ;;  %vm837_vm10 = vcmask 1031168   ;;  %vm1569_vm11 = vcmask 516096  }
  0x41   :  { %542 = vmatpush.msrb.mxu2 %v2234_v54  ;;  %356 = vmatpush.msra.mxu0 %v2160_v55  ;;  %v2231_v5 = vld [vmem:[%s3996_s0 + $0x490] sm:$0xff]  ;;  %v2221_v8 = vld [vmem:[%s3996_s0 + $0x3a8] sm:$0xff]  ;;  %v2242_v10 = vld [vmem:[%s3996_s0 + $0x4e0] sm:$0xff]  ;;  %57 = vst.msk [vmem:[#allocation2 + $0x18] sm:$0xff] %vm54_vm1, %v2491_v36  ;;  %vm1580_vm12 = vcmask 1040896   ;;  %s2501_s17 = smov [#allocation5]  }
  0x42   :  { %387 = vmatpush.msra.mxu1 %v2171_v56  ;;  %452 = vmatpush.msra.mxu3 %v2192_v57  ;;  %v2230_v9 = vld [vmem:[%s3996_s0 + $0x488] sm:$0xff]  ;;  %v2209_v11 = vld [vmem:[%s3996_s0 + $0x350] sm:$0xff]  ;;  %v2220_v12 = vld [vmem:[%s3996_s0 + $0x3a0] sm:$0xff]  ;;  %59 = vst.msk [vmem:[#allocation2 + $0x28] sm:$0xff] %vm54_vm1, %v2491_v36  ;;  %s2070_s18 = sshll.u32 %s2501_s17, 4  ;;  %vm2063_vm13 = vcmask 74752   ;;  %s2071_s18 = int_to_ptr.vmem [resolvable:$true] %s2070_s18 }
  0x43   :  { %2202 = vmatmul.msk.f32.vlgmr.msra.gmra.mxu3 %vm72_vm0, %v2745_v60  ;;  %543 = vmatpush.msrb.mxu2 %v2233_v58  ;;  %v2229_v13 = vld [vmem:[%s3996_s0 + $0x480] sm:$0xff]  ;;  %v2241_v14 = vld [vmem:[%s3996_s0 + $0x4d8] sm:$0xff]  ;;  %v2208_v15 = vld [vmem:[%s3996_s0 + $0x348] sm:$0xff]  ;;  %61 = vst.msk [vmem:[#allocation2 + $0x38] sm:$0xff] %vm54_vm1, %v2491_v36 }
  0x44   :  { %574 = vmatpush.msrb.mxu3 %v2245_v59  ;;  %357 = vmatpush.msra.mxu0 %v2159_v61  ;;  %v2219_v16 = vld [vmem:[%s3996_s0 + $0x398] sm:$0xff]  ;;  %v2240_v18 = vld [vmem:[%s3996_s0 + $0x4d0] sm:$0xff]  ;;  %v2207_v19 = vld [vmem:[%s3996_s0 + $0x340] sm:$0xff] }
  0x45   :  { %388 = vmatpush.msra.mxu1 %v2170_v62  ;;  %2169 = vmatmul.msk.f32.vlgmr.msra.gmra.mxu0 %vm72_vm0, %v2745_v60  ;;  %v2228_v17 = vld [vmem:[%s3996_s0 + $0x478] sm:$0xff]  ;;  %v2218_v20 = vld [vmem:[%s3996_s0 + $0x390] sm:$0xff]  ;;  %v2239_v22 = vld [vmem:[%s3996_s0 + $0x4c8] sm:$0xff] }
  0x46   :  { %2180 = vmatmul.msk.f32.vlgmr.msra.gmra.mxu1 %vm72_vm0, %v2745_v60  ;;  %479 = vmatpush.msrb.mxu0 %v2212_v63  ;;  %v2227_v21 = vld [vmem:[%s3996_s0 + $0x470] sm:$0xff]  ;;  %v2206_v23 = vld [vmem:[%s3996_s0 + $0x338] sm:$0xff]  ;;  %v2217_v24 = vld [vmem:[%s3996_s0 + $0x388] sm:$0xff] }
  0x47   :  { %510 = vmatpush.msrb.mxu1 %v2223_v0  ;;  %544 = vmatpush.msrb.mxu2 %v2232_v1  ;;  %v2226_v25 = vld [vmem:[%s3996_s0 + $0x468] sm:$0xff]  ;;  %v2238_v26 = vld [vmem:[%s3996_s0 + $0x4c0] sm:$0xff]  ;;  %v2205_v27 = vld [vmem:[%s3996_s0 + $0x330] sm:$0xff] }
  0x48   :  { %575 = vmatpush.msrb.mxu3 %v2244_v2  ;;  %480 = vmatpush.msrb.mxu0 %v2211_v3  ;;  %v2216_v28 = vld [vmem:[%s3996_s0 + $0x380] sm:$0xff]  ;;  %v2237_v30 = vld [vmem:[%s3996_s0 + $0x4b8] sm:$0xff]  ;;  %v2204_v31 = vld [vmem:[%s3996_s0 + $0x328] sm:$0xff] }
  0x49   :  { %511 = vmatpush.msrb.mxu1 %v2222_v4  ;;  %545 = vmatpush.msrb.mxu2 %v2231_v5  ;;  %v2225_v29 = vld [vmem:[%s3996_s0 + $0x460] sm:$0xff]  ;;  %v2215_v32 = vld [vmem:[%s3996_s0 + $0x378] sm:$0xff]  ;;  %v2236_v33 = vld [vmem:[%s3996_s0 + $0x4b0] sm:$0xff] }
  0x4a   :  { %576 = vmatpush.msrb.mxu3 %v2243_v6  ;;  %481 = vmatpush.msrb.mxu0 %v2210_v7  ;;  %v2203_v34 = vld [vmem:[%s3996_s0 + $0x320] sm:$0xff]  ;;  %v2214_v35 = vld [vmem:[%s3996_s0 + $0x370] sm:$0xff]  ;;  %v621_v45 = vld [vmem:[#allocation2 + $0x8] sm:$0xff]  ;;  %s2492_s0 = smov 112  }
  0x4b   :  { %512 = vmatpush.msrb.mxu1 %v2221_v8  ;;  %546 = vmatpush.msrb.mxu2 %v2230_v9  ;;  %v671_v56 = vld [vmem:[#allocation2 + $0x18] sm:$0xff]  ;;  %v610_v4 = vld [vmem:[#allocation2 + $0x28] sm:$0xff] }
  0x4c   :  { %577 = vmatpush.msrb.mxu3 %v2242_v10  ;;  %482 = vmatpush.msrb.mxu0 %v2209_v11 }
  0x4d   :  { %513 = vmatpush.msrb.mxu1 %v2220_v12  ;;  %547 = vmatpush.msrb.mxu2 %v2229_v13 }
  0x4e   :  { %578 = vmatpush.msrb.mxu3 %v2241_v14  ;;  %483 = vmatpush.msrb.mxu0 %v2208_v15  ;;  %v797_v15 = vld [vmem:[#allocation2 + $0x38] sm:$0xff] }
  0x4f   :  { %514 = vmatpush.msrb.mxu1 %v2219_v16  ;;  %548 = vmatpush.msrb.mxu2 %v2228_v17 }
  0x50   :  { %579 = vmatpush.msrb.mxu3 %v2240_v18  ;;  %484 = vmatpush.msrb.mxu0 %v2207_v19  ;;  %v51_v18 = vld [vmem:[%s4000_s4] sm:$0xff] }
  0x51   :  { %515 = vmatpush.msrb.mxu1 %v2218_v20  ;;  %549 = vmatpush.msrb.mxu2 %v2227_v21 }
  0x52   :  { %580 = vmatpush.msrb.mxu3 %v2239_v22  ;;  %485 = vmatpush.msrb.mxu0 %v2206_v23 }
  0x53   :  { %516 = vmatpush.msrb.mxu1 %v2217_v24  ;;  %550 = vmatpush.msrb.mxu2 %v2226_v25 }
  0x54   :  { %581 = vmatpush.msrb.mxu3 %v2238_v26  ;;  %486 = vmatpush.msrb.mxu0 %v2205_v27 }
  0x55   :  { %517 = vmatpush.msrb.mxu1 %v2216_v28  ;;  %551 = vmatpush.msrb.mxu2 %v2225_v29 }
  0x56   :  { %582 = vmatpush.msrb.mxu3 %v2237_v30  ;;  %2235 = vmatmul.msk.f32.vlgmr.msrb.gmra.mxu2 %vm72_vm0, %v2745_v60 }
  0x57   :  { %487 = vmatpush.msrb.mxu0 %v2204_v31  ;;  %518 = vmatpush.msrb.mxu1 %v2215_v32 }
  0x58   :  { %583 = vmatpush.msrb.mxu3 %v2236_v33  ;;  %2460 = vset.pattern.permute.xlu1 %v2490_v40 }
  0x59   :  { %2246 = vmatmul.msk.f32.vlgmr.msrb.gmra.mxu3 %vm72_vm0, %v2745_v60  ;;  %488 = vmatpush.msrb.mxu0 %v2203_v34 }
  0x5a   :  { %519 = vmatpush.msrb.mxu1 %v2214_v35  ;;  %2213 = vmatmul.msk.f32.vlgmr.msrb.gmra.mxu0 %vm72_vm0, %v2745_v60 }
  0x5b   :  { %2224 = vmatmul.msk.f32.vlgmr.msrb.gmra.mxu1 %vm72_vm0, %v2745_v60 }
  0xa1   :  { %v93_v37 = vpop.f32.mrf.mxu0 }
  0xa2   :  { %v124_v38 = vpop.f32.mrf.mxu1  ;;  %v156_v40 = vpop.f32.mrf.mxu2 }
  0xa3   :  { %v127_v39 = vmax.f32 %v93_v37, %v124_v38 }
  0xa5   :  { %v159_v41 = vmax.f32 %v127_v39, %v156_v40  ;;  %v188_v60 = vpop.f32.mrf.mxu3 }
  0xa7   :  { %v191_v42 = vmax.f32 %v159_v41, %v188_v60 }
  0xac   :  { %v195_v43 = vpop.permute.xlu0 %194 }
  0xad   :  { %v3084_v44 = vadd.f32 %v195_v43, %v191_v42 }
  0xaf   :  { %v198_v46 = vmax.f32 %v3084_v44, 0.0  ;;  %v228_v47 = vpop.f32.mrf.mxu0 }
  0xb0   :  { %v259_v48 = vpop.f32.mrf.mxu1  ;;  %v291_v49 = vpop.f32.mrf.mxu2 }
  0xb1   :  { %v262_v50 = vmax.f32 %v228_v47, %v259_v48  ;;  %v2300_v51 = vpack.i.bf16 %v621_v45, %v198_v46 }
  0xb3   :  { %v294_v52 = vmax.f32 %v262_v50, %v291_v49  ;;  %v323_v53 = vpop.f32.mrf.mxu3  ;;  %2301 = vrot.lane.b32.xlu1 %v2300_v51, %s2492_s0  ;;  %2306 = vrot.lane.b32.xlu0 %v2300_v51, %s2493_s21 }
  0xb5   :  { %v326_v54 = vmax.f32 %v294_v52, %v323_v53  ;;  %v3160_v53 = vld [vmem:[%s3999_s3 + $0x8] sm:$0xff] }
  0xb7   :  { %v327_v55 = vadd.f32 %v326_v54, %v195_v43 }
  0xb9   :  { %v3091_v57 = vmax.f32 %v327_v55, 0.0 }
  0xbb   :  { %2311 = vrot.lane.b32.xlu1 %v2300_v51, %s2494_s22  ;;  %v2315_v58 = vpack.i.bf16 %v671_v56, %v3091_v57 }
  0xbd   :  { %2316 = vrot.lane.b32.xlu0 %v2315_v58, %s2492_s0  ;;  %2321 = vrot.lane.b32.xlu2 %v2315_v58, %s2493_s21 }
  0xc2   :  { %v359_v59 = vpop.f32.mrf.mxu0 }
  0xc3   :  { %v390_v61 = vpop.f32.mrf.mxu1  ;;  %v422_v62 = vpop.f32.mrf.mxu2 }
  0xc4   :  { %v393_v63 = vmax.f32 %v359_v59, %v390_v61 }
  0xc5   :  { %2326 = vrot.lane.b32.xlu0 %v2315_v58, %s2494_s22 }
  0xc6   :  { %v425_v0 = vmax.f32 %v393_v63, %v422_v62  ;;  %v454_v1 = vpop.f32.mrf.mxu3 }
  0xc8   :  { %v457_v2 = vmax.f32 %v425_v0, %v454_v1 }
  0xca   :  { %v458_v3 = vadd.f32 %v457_v2, %v195_v43 }
  0xcc   :  { %v3098_v5 = vmax.f32 %v458_v3, 0.0 }
  0xce   :  { %v2330_v6 = vpack.i.bf16 %v610_v4, %v3098_v5 }
  0xd0   :  { %2331 = vrot.lane.b32.xlu2 %v2330_v6, %s2493_s21  ;;  %2351 = vrot.lane.b32.xlu0 %v2330_v6, %s2495_s23 }
  0xd7   :  { %v490_v7 = vpop.f32.mrf.mxu0 }
  0xd8   :  { %v521_v8 = vpop.f32.mrf.mxu1  ;;  %2336 = vrot.lane.b32.xlu2 %v2330_v6, %s2496_s24 }
  0xd9   :  { %v524_v9 = vmax.f32 %v490_v7, %v521_v8  ;;  %v553_v10 = vpop.f32.mrf.mxu2  ;;  %v3182_v7 = vld [vmem:[%s3999_s3 + $0x10] sm:$0xff] }
  0xdb   :  { %v556_v11 = vmax.f32 %v524_v9, %v553_v10 }
  0xdc   :  { %v585_v12 = vpop.f32.mrf.mxu3 }
  0xdd   :  { %v588_v13 = vmax.f32 %v556_v11, %v585_v12 }
  0xdf   :  { %v589_v14 = vadd.f32 %v588_v13, %v195_v43 }
  0xe1   :  { %v3102_v16 = vmax.f32 %v589_v14, 0.0 }
  0xe3   :  { %v2360_v17 = vpack.i.bf16 %v797_v15, %v3102_v16 }
  0xe5   :  { %2361 = vrot.lane.b32.xlu2 %v2360_v17, %s2496_s24  ;;  %2341 = vrot.lane.b32.xlu1 %v2360_v17, %s2493_s21 }
  0xe6   :  { %2371 = vrot.lane.b32.xlu0 %v2360_v17, %s2495_s23 }
  0xed   :  { %2366 = vrot.lane.b32.xlu2 %v2300_v51, %s2495_s23  ;;  %2346 = vrot.lane.b32.xlu1 %v2300_v51, %s2496_s24 }
  0xee   :  { %2386 = vrot.lane.b32.xlu0 %v2330_v6, %s2497_s25 }
  0xf5   :  { %2381 = vrot.lane.b32.xlu2 %v2300_v51, %s2498_s26  ;;  %2356 = vrot.lane.b32.xlu1 %v2315_v58, %s2496_s24 }
  0xf6   :  { %2401 = vrot.lane.b32.xlu0 %v2300_v51, %s2499_s27 }
  0xfd   :  { %2396 = vrot.lane.b32.xlu2 %v2330_v6, %s2499_s27  ;;  %2376 = vrot.lane.b32.xlu1 %v2315_v58, %s2495_s23 }
  0xfe   :  { %2411 = vrot.lane.b32.xlu0 %v2315_v58, %s2498_s26 }
 0x105   :  { %2406 = vrot.lane.b32.xlu2 %v2330_v6, %s2492_s0  ;;  %2391 = vrot.lane.b32.xlu1 %v2300_v51, %s2497_s25 }
 0x106   :  { %2441 = vrot.lane.b32.xlu0 %v2360_v17, %s2499_s27 }
 0x10d   :  { %2416 = vrot.lane.b32.xlu2 %v2315_v58, %s2497_s25  ;;  %2421 = vrot.lane.b32.xlu1 %v2360_v17, %s2492_s0 }
 0x10e   :  { %2446 = vrot.lane.b32.xlu0 %v2330_v6, %s2494_s22 }
 0x115   :  { %2436 = vrot.lane.b32.xlu2 %v2330_v6, %s2498_s26  ;;  %2426 = vrot.lane.b32.xlu1 %v2360_v17, %s2497_s25 }
 0x116   :  { %1549 = vperm.xlu0 %2299, %v51_v18  }
 0x117   :  { %v3112_v19 = vpop.permute.xlu2 %2321 }
 0x118   :  { %v2324_v62 = vunpack.i.h.bf16 %v3112_v19  ;;  %v2323_v63 = vunpack.i.l.bf16 %v3112_v19 }
 0x11a   :  { %v3175_v4 = vsel %vm605_vm3, %v2323_v63, %v2324_v62 }
 0x11d   :  { %2456 = vrot.lane.b32.xlu2 %v2360_v17, %s2498_s26  ;;  %2431 = vrot.lane.b32.xlu1 %v2315_v58, %s2499_s27 }
 0x125   :  { %2451 = vrot.lane.b32.xlu1 %v2360_v17, %s2494_s22  ;;  %v2302_v20 = vpop.permute.xlu1 %2301  ;;  %v2307_v21 = vpop.permute.xlu0 %2306 }
 0x126   :  { %v2304_v22 = vunpack.i.h.bf16 %v2302_v20  ;;  %v2303_v23 = vunpack.i.l.bf16 %v2302_v20  ;;  %v2309_v25 = vunpack.i.h.bf16 %v2307_v21  ;;  %v2308_v26 = vunpack.i.l.bf16 %v2307_v21 }
 0x128   :  { %v3116_v24 = vsel %vm628_vm2, %v2303_v23, %v2304_v22  ;;  %v3123_v32 = vsel %vm605_vm3, %v2308_v26, %v2309_v25  ;;  %v3206_v23 = vld [vmem:[%s3999_s3 + $0x18] sm:$0xff] }
 0x129   :  { %1023 = vmatpush.msra.mxu3 %v3116_v24 }
 0x12a   :  { %v2332_v27 = vpop.permute.xlu2 %2331 }
 0x12b   :  { %v2334_v28 = vunpack.i.h.bf16 %v2332_v27  ;;  %v2333_v29 = vunpack.i.l.bf16 %v2332_v27 }
 0x12d   :  { %v3120_v30 = vsel %vm605_vm3, %v2333_v29, %v2334_v28  ;;  %v2312_v31 = vpop.permute.xlu1 %2311 }
 0x12e   :  { %1024 = vmatpush.msra.mxu3 %v3120_v30  ;;  %v2314_v33 = vunpack.i.h.bf16 %v2312_v31  ;;  %v2313_v34 = vunpack.i.l.bf16 %v2312_v31 }
 0x12f   :  { %v2317_v35 = vpop.permute.xlu0 %2316 }
 0x130   :  { %1025 = vmatpush.msra.mxu3 %v3123_v32  ;;  %v3128_v36 = vsel %vm747_vm4, %v2313_v34, %v2314_v33  ;;  %v2319_v37 = vunpack.i.h.bf16 %v2317_v35  ;;  %v2318_v38 = vunpack.i.l.bf16 %v2317_v35 }
 0x131   :  { %1154 = vmatpush.msra.mxu1 %v3128_v36 }
 0x132   :  { %v2337_v39 = vpop.permute.xlu2 %2336  ;;  %1026 = vmatpush.msra.mxu3 %v3098_v5  ;;  %v3133_v40 = vsel %vm628_vm2, %v2318_v38, %v2319_v37 }
 0x133   :  { %v2339_v41 = vunpack.i.h.bf16 %v2337_v39  ;;  %v2338_v60 = vunpack.i.l.bf16 %v2337_v39  ;;  %994 = vmatpush.msra.mxu2 %v3133_v40 }
 0x134   :  { %1027 = vmatpush.msra.mxu3 %v198_v46  ;;  %v3152_v46 = vld [vmem:[%s3999_s3] sm:$0xff] }
 0x135   :  { %v3139_v42 = vsel %vm724_vm5, %v2338_v60, %v2339_v41  ;;  %2249 = vmatmul.msk.f32.vlgmr.msra.gmra.mxu3 %vm976_vm6, %v3152_v46  ;;  %v3227_v41 = vld [vmem:[%s3999_s3 + $0x20] sm:$0xff] }
 0x136   :  { %1155 = vmatpush.msra.mxu1 %v3139_v42 }
 0x137   :  { %v2327_v43 = vpop.permute.xlu0 %2326 }
 0x138   :  { %v2329_v45 = vunpack.i.h.bf16 %v2327_v43  ;;  %v2328_v47 = vunpack.i.l.bf16 %v2327_v43 }
 0x13a   :  { %v3143_v48 = vsel %vm747_vm4, %v2328_v47, %v2329_v45 }
 0x13b   :  { %1093 = vmatpush.msrb.mxu3 %v3143_v48 }
 0x13d   :  { %2250 = vmatmul.msk.f32.gmra.mxu3 %vm976_vm6, %v3160_v53 }
 0x13f   :  { %v2362_v49 = vpop.permute.xlu2 %2361 }
 0x140   :  { %v2364_v50 = vunpack.i.h.bf16 %v2362_v49  ;;  %v2363_v51 = vunpack.i.l.bf16 %v2362_v49  ;;  %v3236_v49 = vld [vmem:[%s3999_s3 + $0x30] sm:$0xff] }
 0x142   :  { %v3147_v44 = vsel %vm724_vm5, %v2363_v51, %v2364_v50  ;;  %v2352_v55 = vpop.permute.xlu0 %2351 }
 0x143   :  { %1094 = vmatpush.msrb.mxu3 %v3147_v44  ;;  %v2354_v8 = vunpack.i.h.bf16 %v2352_v55  ;;  %v2353_v9 = vunpack.i.l.bf16 %v2352_v55 }
 0x145   :  { %v3197_v20 = vsel %vm700_vm9, %v2353_v9, %v2354_v8  ;;  %v3278_v9 = vld [vmem:[%s3999_s3 + $0x40] sm:$0xff] }
 0x147   :  { %v2367_v52 = vpop.permute.xlu2 %2366 }
 0x148   :  { %v2369_v15 = vunpack.i.h.bf16 %v2367_v52  ;;  %v2368_v17 = vunpack.i.l.bf16 %v2367_v52 }
 0x14a   :  { %v701_v21 = vsel %vm700_vm9, %v2368_v17, %v2369_v15 }
 0x14f   :  { %v2382_v54 = vpop.permute.xlu2 %2381 }
 0x150   :  { %v2384_v56 = vunpack.i.h.bf16 %v2382_v54  ;;  %v2383_v58 = vunpack.i.l.bf16 %v2382_v54 }
 0x152   :  { %v3165_v59 = vsel %vm884_vm7, %v2383_v58, %v2384_v56 }
 0x153   :  { %1129 = vmatpush.msra.mxu0 %v3165_v59 }
 0x157   :  { %v2342_v61 = vpop.permute.xlu1 %2341  ;;  %v2397_v25 = vpop.permute.xlu2 %2396 }
 0x158   :  { %v2344_v0 = vunpack.i.h.bf16 %v2342_v61  ;;  %v2343_v1 = vunpack.i.l.bf16 %v2342_v61  ;;  %v2372_v2 = vpop.permute.xlu0 %2371  ;;  %v2399_v52 = vunpack.i.h.bf16 %v2397_v25  ;;  %v2398_v54 = vunpack.i.l.bf16 %v2397_v25 }
 0x159   :  { %v2374_v26 = vunpack.i.h.bf16 %v2372_v2  ;;  %v2373_v27 = vunpack.i.l.bf16 %v2372_v2  ;;  %v3263_v2 = vld [vmem:[%s3999_s3 + $0x38] sm:$0xff] }
 0x15a   :  { %v3171_v3 = vsel %vm605_vm3, %v2343_v1, %v2344_v0  ;;  %v3270_v8 = vsel %vm837_vm10, %v2398_v54, %v2399_v52 }
 0x15b   :  { %995 = vmatpush.msra.mxu2 %v3171_v3  ;;  %v3219_v34 = vsel %vm700_vm9, %v2373_v27, %v2374_v26 }
 0x15d   :  { %996 = vmatpush.msra.mxu2 %v3175_v4 }
 0x15f   :  { %v2347_v6 = vpop.permute.xlu1 %2346  ;;  %997 = vmatpush.msra.mxu2 %v3102_v16  ;;  %v2407_v45 = vpop.permute.xlu2 %2406 }
 0x160   :  { %v2349_v10 = vunpack.i.h.bf16 %v2347_v6  ;;  %v2348_v11 = vunpack.i.l.bf16 %v2347_v6  ;;  %v2387_v12 = vpop.permute.xlu0 %2386  ;;  %v2409_v61 = vunpack.i.h.bf16 %v2407_v45  ;;  %v2408_v62 = vunpack.i.l.bf16 %v2407_v45 }
 0x161   :  { %v2389_v13 = vunpack.i.h.bf16 %v2387_v12  ;;  %v2388_v14 = vunpack.i.l.bf16 %v2387_v12  ;;  %998 = vmatpush.msra.mxu2 %v3091_v57 }
 0x162   :  { %2247 = vmatmul.msk.f32.vlgmr.msra.gmra.mxu2 %vm976_vm6, %v3182_v7  ;;  %v3188_v18 = vsel %vm724_vm5, %v2348_v11, %v2349_v10  ;;  %v640_v10 = vsel %vm628_vm2, %v2408_v62, %v2409_v61 }
 0x163   :  { %1057 = vmatpush.msrb.mxu2 %v3128_v36  ;;  %v3192_v19 = vsel %vm861_vm8, %v2388_v14, %v2389_v13  ;;  %1156 = vmatpush.msra.mxu1 %v3188_v18 }
 0x164   :  { %1130 = vmatpush.msra.mxu0 %v3192_v19 }
 0x165   :  { %1058 = vmatpush.msrb.mxu2 %v3139_v42  ;;  %1157 = vmatpush.msra.mxu1 %v3197_v20 }
 0x167   :  { %1059 = vmatpush.msrb.mxu2 %v3188_v18  ;;  %v2357_v22 = vpop.permute.xlu1 %2356  ;;  %1158 = vmatpush.msra.mxu1 %v701_v21  ;;  %v2417_v6 = vpop.permute.xlu2 %2416 }
 0x168   :  { %v2359_v28 = vunpack.i.h.bf16 %v2357_v22  ;;  %v2358_v29 = vunpack.i.l.bf16 %v2357_v22  ;;  %v2402_v31 = vpop.permute.xlu0 %2401  ;;  %2257 = vmatmul.msk.f32.vlgmr.msra.gmra.mxu1 %vm976_vm6, %v3182_v7 }
 0x169   :  { %1060 = vmatpush.msrb.mxu2 %v3197_v20  ;;  %v2404_v63 = vunpack.i.h.bf16 %v2402_v31  ;;  %v2403_v0 = vunpack.i.l.bf16 %v2402_v31  ;;  %v2419_v31 = vunpack.i.h.bf16 %v2417_v6 }
 0x16a   :  { %2248 = vmatmul.msk.f32.gmra.mxu2 %vm976_vm6, %v3206_v23  ;;  %v3214_v33 = vsel %vm724_vm5, %v2358_v29, %v2359_v28 }
 0x16b   :  { %1061 = vmatpush.msrb.mxu2 %v701_v21  ;;  %1095 = vmatpush.msrb.mxu3 %v3214_v33  ;;  %v838_v11 = vsel %vm837_vm10, %v2403_v0, %v2404_v63 }
 0x16d   :  { %1177 = vmatpush.msra.mxu2 %v3133_v40  ;;  %1096 = vmatpush.msrb.mxu3 %v3219_v34 }
 0x16f   :  { %1178 = vmatpush.msra.mxu2 %v3171_v3  ;;  %v2377_v35 = vpop.permute.xlu1 %2376  ;;  %v2437_v25 = vpop.permute.xlu2 %2436 }
 0x170   :  { %v2379_v37 = vunpack.i.h.bf16 %v2377_v35  ;;  %v2378_v38 = vunpack.i.l.bf16 %v2377_v35  ;;  %v2412_v39 = vpop.permute.xlu0 %2411  ;;  %2258 = vmatmul.msk.f32.gmra.mxu1 %vm976_vm6, %v3206_v23  ;;  %v2439_v28 = vunpack.i.h.bf16 %v2437_v25  ;;  %v2438_v29 = vunpack.i.l.bf16 %v2437_v25 }
 0x171   :  { %1179 = vmatpush.msra.mxu2 %v3175_v4  ;;  %v2414_v60 = vunpack.i.h.bf16 %v2412_v39  ;;  %v2413_v43 = vunpack.i.l.bf16 %v2412_v39  ;;  %v2418_v35 = vunpack.i.l.bf16 %v2417_v6 }
 0x172   :  { %v770_v47 = vsel %vm700_vm9, %v2378_v38, %v2379_v37  ;;  %2251 = vmatmul.msk.f32.vlgmr.msrb.gmra.mxu2 %vm976_vm6, %v3227_v41  ;;  %v896_v39 = vsel %vm884_vm7, %v2438_v29, %v2439_v28 }
 0x173   :  { %1180 = vmatpush.msra.mxu2 %v3102_v16  ;;  %1097 = vmatpush.msrb.mxu3 %v770_v47  ;;  %v3241_v50 = vsel %vm884_vm7, %v2413_v43, %v2414_v60  ;;  %v930_v60 = vsel %vm861_vm8, %v2418_v35, %v2419_v31 }
 0x174   :  { %1255 = vmatpush.msrb.mxu1 %v3241_v50  ;;  %2253 = vmatmul.msk.f32.vlgmr.msrb.gmra.mxu3 %vm976_vm6, %v3236_v49 }
 0x175   :  { %1181 = vmatpush.msra.mxu2 %v3091_v57  ;;  %1200 = vmatpush.msra.mxu3 %v3143_v48  ;;  %v3254_v57 = vld [vmem:[%s3999_s3 + $0x28] sm:$0xff] }
 0x177   :  { %v2392_v51 = vpop.permute.xlu1 %2391  ;;  %1201 = vmatpush.msra.mxu3 %v3147_v44  ;;  %v2457_v45 = vpop.permute.xlu2 %2456 }
 0x178   :  { %v2394_v55 = vunpack.i.h.bf16 %v2392_v51  ;;  %v2393_v56 = vunpack.i.l.bf16 %v2392_v51  ;;  %v3249_v58 = vpop.permute.xlu0 %2441  ;;  %v2459_v52 = vunpack.i.h.bf16 %v2457_v45  ;;  %v2458_v54 = vunpack.i.l.bf16 %v2457_v45 }
 0x179   :  { %1202 = vmatpush.msra.mxu3 %v3214_v33  ;;  %v2444_v37 = vunpack.i.h.bf16 %v3249_v58  ;;  %v2443_v38 = vunpack.i.l.bf16 %v3249_v58 }
 0x17a   :  { %v3258_v1 = vsel %vm861_vm8, %v2393_v56, %v2394_v55  ;;  %2252 = vmatmul.msk.f32.gmra.mxu2 %vm976_vm6, %v3254_v57 }
 0x17b   :  { %1131 = vmatpush.msra.mxu0 %v3258_v1  ;;  %1203 = vmatpush.msra.mxu3 %v3219_v34 }
 0x17c   :  { %2254 = vmatmul.msk.f32.gmra.mxu3 %vm976_vm6, %v3263_v2 }
 0x17d   :  { %1132 = vmatpush.msra.mxu0 %v3270_v8  ;;  %1204 = vmatpush.msra.mxu3 %v770_v47 }
 0x17f   :  { %1315 = vmatpush.msrb.mxu3 %v640_v10  ;;  %v2422_v12 = vpop.permute.xlu1 %2421  ;;  %1133 = vmatpush.msra.mxu0 %v838_v11 }
 0x180   :  { %v2424_v13 = vunpack.i.h.bf16 %v2422_v12  ;;  %v2423_v14 = vunpack.i.l.bf16 %v2422_v12  ;;  %v2447_v15 = vpop.permute.xlu0 %2446  ;;  %2255 = vmatmul.msk.f32.vlgmr.msra.gmra.mxu0 %vm976_vm6, %v3278_v9 }
 0x181   :  { %1316 = vmatpush.msrb.mxu3 %v3116_v24  ;;  %1225 = vmatpush.msrb.mxu0 %v3165_v59  ;;  %v2449_v21 = vunpack.i.h.bf16 %v2447_v15  ;;  %v2448_v22 = vunpack.i.l.bf16 %v2447_v15  ;;  %v3298_v24 = vld [vmem:[%s3999_s3 + $0x48] sm:$0xff] }
 0x182   :  { %v689_v17 = vsel %vm628_vm2, %v2423_v14, %v2424_v13  ;;  %2259 = vmatmul.msk.f32.vlgmr.msra.gmra.mxu2 %vm976_vm6, %v3152_v46 }
 0x183   :  { %1317 = vmatpush.msrb.mxu3 %v3120_v30  ;;  %1226 = vmatpush.msrb.mxu0 %v3192_v19  ;;  %v759_v30 = vsel %vm747_vm4, %v2448_v22, %v2449_v21 }
 0x184   :  { %1292 = vmatpush.msrb.mxu2 %v689_v17  ;;  %2261 = vmatmul.msk.f32.vlgmr.msra.gmra.mxu3 %vm976_vm6, %v3227_v41 }
 0x185   :  { %1318 = vmatpush.msrb.mxu3 %v3123_v32  ;;  %1227 = vmatpush.msrb.mxu0 %v3258_v1 }
 0x186   :  { %1293 = vmatpush.msrb.mxu2 %v3133_v40 }
 0x187   :  { %1319 = vmatpush.msrb.mxu3 %v3098_v5  ;;  %v2427_v26 = vpop.permute.xlu1 %2426  ;;  %1228 = vmatpush.msrb.mxu0 %v3270_v8 }
 0x188   :  { %v2429_v32 = vunpack.i.h.bf16 %v2427_v26  ;;  %v2428_v27 = vunpack.i.l.bf16 %v2427_v26  ;;  %1294 = vmatpush.msrb.mxu2 %v3171_v3  ;;  %2256 = vmatmul.msk.f32.gmra.mxu0 %vm976_vm6, %v3298_v24 }
 0x189   :  { %1430 = vmatpush.msra.mxu3 %v759_v30  ;;  %1229 = vmatpush.msrb.mxu0 %v838_v11 }
 0x18a   :  { %v941_v5 = vsel %vm861_vm8, %v2428_v27, %v2429_v32  ;;  %1295 = vmatpush.msrb.mxu2 %v3175_v4 }
 0x18b   :  { %1431 = vmatpush.msra.mxu3 %v3128_v36  ;;  %1343 = vmatpush.msra.mxu0 %v759_v30 }
 0x18c   :  { %2260 = vmatmul.msk.f32.gmra.mxu2 %vm976_vm6, %v3160_v53  ;;  %1256 = vmatpush.msrb.mxu1 %v941_v5 }
 0x18d   :  { %1432 = vmatpush.msra.mxu3 %v3139_v42  ;;  %1296 = vmatpush.msrb.mxu2 %v3102_v16 }
 0x18e   :  { %1344 = vmatpush.msra.mxu0 %v3128_v36  ;;  %2262 = vmatmul.msk.f32.gmra.mxu3 %vm976_vm6, %v3254_v57  ;;  %v919_v36 = vsel %vm837_vm10, %v2443_v38, %v2444_v37 }
 0x18f   :  { %1403 = vmatpush.msra.mxu2 %v896_v39  ;;  %1433 = vmatpush.msra.mxu3 %v3188_v18  ;;  %v2432_v43 = vpop.permute.xlu1 %2431 }
 0x190   :  { %1257 = vmatpush.msrb.mxu1 %v930_v60  ;;  %1345 = vmatpush.msra.mxu0 %v3139_v42  ;;  %v2434_v47 = vunpack.i.h.bf16 %v2432_v43  ;;  %v2433_v51 = vunpack.i.l.bf16 %v2432_v43 }
 0x191   :  { %1404 = vmatpush.msra.mxu2 %v3165_v59  ;;  %1434 = vmatpush.msra.mxu3 %v3197_v20 }
 0x192   :  { %1258 = vmatpush.msrb.mxu1 %v919_v36  ;;  %1346 = vmatpush.msra.mxu0 %v3188_v18  ;;  %v907_v42 = vsel %vm837_vm10, %v2433_v51, %v2434_v47  ;;  %v963_v18 = vsel %vm884_vm7, %v2458_v54, %v2459_v52 }
 0x193   :  { %2263 = vmatmul.msk.f32.vlgmr.msrb.gmra.mxu0 %vm976_vm6, %v3236_v49  ;;  %1405 = vmatpush.msra.mxu2 %v3192_v19 }
 0x194   :  { %1347 = vmatpush.msra.mxu0 %v3197_v20  ;;  %2267 = vmatmul.msk.f32.vlgmr.msrb.gmra.mxu2 %vm976_vm6, %v3182_v7 }
 0x195   :  { %1406 = vmatpush.msra.mxu2 %v3258_v1  ;;  %1259 = vmatpush.msrb.mxu1 %v907_v42 }
 0x196   :  { %1453 = vmatpush.msrb.mxu0 %v689_v17  ;;  %2269 = vmatmul.msk.f32.vlgmr.msrb.gmra.mxu3 %vm976_vm6, %v3152_v46 }
 0x197   :  { %2265 = vmatmul.msk.f32.vlgmr.msrb.gmra.mxu1 %vm976_vm6, %v3278_v9  ;;  %1407 = vmatpush.msra.mxu2 %v3270_v8  ;;  %v2452_v55 = vpop.permute.xlu1 %2451 }
 0x198   :  { %1454 = vmatpush.msrb.mxu0 %v3133_v40  ;;  %1531 = vmatpush.msrb.mxu3 %v963_v18  ;;  %v2454_v20 = vunpack.i.h.bf16 %v2452_v55  ;;  %v2453_v56 = vunpack.i.l.bf16 %v2452_v55  ;;  %v52_v40 = vld [vmem:[%s4000_s4 + $0x8] sm:$0xff]  ;;  %s2500_s4 = smov 64  }
 0x199   :  { %1501 = vmatpush.msrb.mxu2 %v896_v39  ;;  %1554 = vperm.xlu1 %2460, %v52_v40  }
 0x19a   :  { %1455 = vmatpush.msrb.mxu0 %v3171_v3  ;;  %1532 = vmatpush.msrb.mxu3 %v3241_v50  ;;  %v826_v58 = vsel %vm747_vm4, %v2453_v56, %v2454_v20 }
 0x19b   :  { %1502 = vmatpush.msrb.mxu2 %v3165_v59  ;;  %2264 = vmatmul.msk.f32.gmra.mxu0 %vm976_vm6, %v3263_v2 }
 0x19c   :  { %1456 = vmatpush.msrb.mxu0 %v3175_v4  ;;  %1533 = vmatpush.msrb.mxu3 %v941_v5 }
 0x19d   :  { %1503 = vmatpush.msrb.mxu2 %v3192_v19  ;;  %1373 = vmatpush.msra.mxu1 %v826_v58 }
 0x19e   :  { %2268 = vmatmul.msk.f32.gmra.mxu2 %vm976_vm6, %v3206_v23  ;;  %1457 = vmatpush.msrb.mxu0 %v3102_v16 }
 0x19f   :  { %1534 = vmatpush.msrb.mxu3 %v930_v60  ;;  %1504 = vmatpush.msrb.mxu2 %v3258_v1 }
 0x1a0   :  { %2266 = vmatmul.msk.f32.gmra.mxu1 %vm976_vm6, %v3298_v24  ;;  %2270 = vmatmul.msk.f32.gmra.mxu3 %vm976_vm6, %v3160_v53 }
 0x1a1   :  { %1535 = vmatpush.msrb.mxu3 %v919_v36  ;;  %1374 = vmatpush.msra.mxu1 %v3143_v48 }
 0x1a2   :  { %1505 = vmatpush.msrb.mxu2 %v3270_v8 }
 0x1a3   :  { %1375 = vmatpush.msra.mxu1 %v3147_v44  ;;  %2271 = vmatmul.msk.f32.vlgmr.msra.gmra.mxu0 %vm976_vm6, %v3227_v41 }
 0x1a5   :  { %1376 = vmatpush.msra.mxu1 %v3214_v33 }
 0x1a6   :  { %2275 = vmatmul.msk.f32.vlgmr.msra.gmra.mxu2 %vm976_vm6, %v3278_v9 }
 0x1a7   :  { %1377 = vmatpush.msra.mxu1 %v3219_v34 }
 0x1a8   :  { %2273 = vmatmul.msk.f32.vlgmr.msra.gmra.mxu1 %vm976_vm6, %v3236_v49  ;;  %2277 = vmatmul.msk.f32.vlgmr.msra.gmra.mxu3 %vm976_vm6, %v3182_v7 }
 0x1a9   :  { %1476 = vmatpush.msrb.mxu1 %v826_v58 }
 0x1ab   :  { %1477 = vmatpush.msrb.mxu1 %v3143_v48  ;;  %2272 = vmatmul.msk.f32.gmra.mxu0 %vm976_vm6, %v3254_v57 }
 0x1ad   :  { %1478 = vmatpush.msrb.mxu1 %v3147_v44 }
 0x1ae   :  { %2276 = vmatmul.msk.f32.gmra.mxu2 %vm976_vm6, %v3298_v24 }
 0x1af   :  { %1479 = vmatpush.msrb.mxu1 %v3214_v33 }
 0x1b0   :  { %2274 = vmatmul.msk.f32.gmra.mxu1 %vm976_vm6, %v3263_v2  ;;  %2278 = vmatmul.msk.f32.gmra.mxu3 %vm976_vm6, %v3206_v23 }
 0x1b1   :  { %1480 = vmatpush.msrb.mxu1 %v3219_v34 }
 0x1b3   :  { %2279 = vmatmul.msk.f32.vlgmr.msrb.gmra.mxu0 %vm976_vm6, %v3152_v46 }
 0x1b6   :  { %2283 = vmatmul.msk.f32.vlgmr.msrb.gmra.mxu2 %vm976_vm6, %v3236_v49 }
 0x1b8   :  { %2281 = vmatmul.msk.f32.vlgmr.msrb.gmra.mxu1 %vm976_vm6, %v3227_v41  ;;  %2285 = vmatmul.msk.f32.vlgmr.msrb.gmra.mxu3 %vm976_vm6, %v3278_v9  ;;  %v1029_v16 = vpop.f32.mrf.mxu3 }
 0x1bb   :  { %2280 = vmatmul.msk.f32.gmra.mxu0 %vm976_vm6, %v3160_v53 }
 0x1be   :  { %2284 = vmatmul.msk.f32.gmra.mxu2 %vm976_vm6, %v3263_v2 }
 0x1c0   :  { %2282 = vmatmul.msk.f32.gmra.mxu1 %vm976_vm6, %v3254_v57  ;;  %2286 = vmatmul.msk.f32.gmra.mxu3 %vm976_vm6, %v3298_v24  ;;  %v1032_v46 = vpop.f32.mrf.mxu3 }
 0x1e5   :  { %v1000_v48 = vpop.f32.mrf.mxu2  ;;  %v1160_v33 = vpop.f32.mrf.mxu1 }
 0x1e6   :  { %v1030_v44 = vadd.f32 %v1029_v16, %v1000_v48 }
 0x1ed   :  { %v1003_v59 = vpop.f32.mrf.mxu2  ;;  %v1163_v50 = vpop.f32.mrf.mxu1 }
 0x1ee   :  { %v1033_v3 = vadd.f32 %v1032_v46, %v1003_v59  ;;  %v1550_v59 = vpop.permute.xlu0 %1549 }
 0x1f5   :  { %v1063_v4 = vpop.f32.mrf.mxu2 }
 0x1f6   :  { %v1069_v21 = vadd.f32 %v1063_v4, %v1030_v44 }
 0x1f7   :  { %v1099_v7 = vpop.f32.mrf.mxu3 }
 0x1f8   :  { %v1105_v28 = vadd.f32 %v1099_v7, %v1069_v21  ;;  %v1703_v21 = vld [vmem:[%s4001_s5 + $0x70] sm:$0xff] }
 0x1fd   :  { %v1135_v19 = vpop.f32.mrf.mxu0  ;;  %v1066_v23 = vpop.f32.mrf.mxu2 }
 0x1fe   :  { %v1141_v38 = vadd.f32 %v1135_v19, %v1105_v28  ;;  %v1070_v43 = vadd.f32 %v1066_v23, %v1033_v3 }
 0x1ff   :  { %v1102_v53 = vpop.f32.mrf.mxu3 }
 0x200   :  { %v1106_v58 = vadd.f32 %v1102_v53, %v1070_v43  ;;  %v1719_v43 = vld [vmem:[%s4001_s5 + $0xf0] sm:$0xff] }
 0x205   :  { %v1138_v34 = vpop.f32.mrf.mxu0  ;;  %v1183_v41 = vpop.f32.mrf.mxu2 }
 0x206   :  { %v1184_v17 = vadd.f32 %v1183_v41, %v1160_v33  ;;  %v1142_v4 = vadd.f32 %v1138_v34, %v1106_v58  ;;  %v1716_v58 = vld [vmem:[%s4001_s5 + $0xd8] sm:$0xff] }
 0x207   :  { %v1206_v49 = vpop.f32.mrf.mxu3 }
 0x208   :  { %v1212_v24 = vadd.f32 %v1206_v49, %v1184_v17  ;;  %v1704_v17 = vld [vmem:[%s4001_s5 + $0x78] sm:$0xff] }
 0x209   :  { %1821 = vmatpush.msra.mxu0 %v1704_v17  ;;  %v1709_v17 = vld [vmem:[%s4001_s5 + $0xa0] sm:$0xff] }
 0x20b   :  { %1822 = vmatpush.msra.mxu0 %v1703_v21  ;;  %v1741_v21 = vld [vmem:[%s4001_s5 + $0x1a0] sm:$0xff] }
 0x20f   :  { %v1186_v57 = vpop.f32.mrf.mxu2 }
 0x210   :  { %v1231_v61 = vpop.f32.mrf.mxu0  ;;  %v1187_v5 = vadd.f32 %v1186_v57, %v1163_v50 }
 0x211   :  { %v1209_v62 = vpop.f32.mrf.mxu3  ;;  %v1237_v32 = vadd.f32 %v1231_v61, %v1212_v24 }
 0x212   :  { %v1213_v47 = vadd.f32 %v1209_v62, %v1187_v5  ;;  %v1555_v62 = vpop.permute.xlu1 %1554 }
 0x214   :  { %v1261_v63 = vpop.f32.mrf.mxu1 }
 0x215   :  { %v1267_v31 = vadd.f32 %v1261_v63, %v1237_v32  ;;  %v1730_v32 = vld [vmem:[%s4001_s5 + $0x148] sm:$0xff] }
 0x217   :  { %v1298_v0 = vpop.f32.mrf.mxu2  ;;  %v1269_v51 = vmax.f32 %v1141_v38, %v1267_v31  ;;  %v1728_v38 = vld [vmem:[%s4001_s5 + $0x138] sm:$0xff] }
 0x218   :  { %v1234_v1 = vpop.f32.mrf.mxu0 }
 0x219   :  { %v1321_v2 = vpop.f32.mrf.mxu3  ;;  %v1238_v18 = vadd.f32 %v1234_v1, %v1213_v47  ;;  %v1751_v47 = vld [vmem:[%s4001_s5 + $0x1f0] sm:$0xff] }
 0x21a   :  { %v1322_v30 = vadd.f32 %v1321_v2, %v1298_v0 }
 0x21d   :  { %v1264_v6 = vpop.f32.mrf.mxu1 }
 0x21e   :  { %v1268_v16 = vadd.f32 %v1264_v6, %v1238_v18  ;;  %v1717_v18 = vld [vmem:[%s4001_s5 + $0xe0] sm:$0xff] }
 0x220   :  { %v1349_v8 = vpop.f32.mrf.mxu0  ;;  %v1270_v33 = vmax.f32 %v1142_v4, %v1268_v16  ;;  %v1748_v16 = vld [vmem:[%s4001_s5 + $0x1d8] sm:$0xff]  ;;  %v1695_v4 = vld [vmem:[%s4001_s5 + $0x30] sm:$0xff] }
 0x221   :  { %v1301_v9 = vpop.f32.mrf.mxu2  ;;  %v1355_v27 = vadd.f32 %v1349_v8, %v1322_v30  ;;  %v1732_v30 = vld [vmem:[%s4001_s5 + $0x158] sm:$0xff] }
 0x223   :  { %v1324_v10 = vpop.f32.mrf.mxu3 }
 0x224   :  { %v1325_v36 = vadd.f32 %v1324_v10, %v1301_v9 }
 0x225   :  { %v1379_v11 = vpop.f32.mrf.mxu1 }
 0x226   :  { %v1385_v35 = vadd.f32 %v1379_v11, %v1355_v27  ;;  %v1729_v27 = vld [vmem:[%s4001_s5 + $0x140] sm:$0xff] }
 0x228   :  { %v1352_v12 = vpop.f32.mrf.mxu0 }
 0x229   :  { %v1409_v13 = vpop.f32.mrf.mxu2  ;;  %v1356_v55 = vadd.f32 %v1352_v12, %v1325_v36  ;;  %v1718_v36 = vld [vmem:[%s4001_s5 + $0xe8] sm:$0xff] }
 0x22a   :  { %v1415_v39 = vadd.f32 %v1409_v13, %v1385_v35  ;;  %v1736_v13 = vld [vmem:[%s4001_s5 + $0x178] sm:$0xff]  ;;  %v1701_v35 = vld [vmem:[%s4001_s5 + $0x60] sm:$0xff] }
 0x22b   :  { %v1436_v14 = vpop.f32.mrf.mxu3  ;;  %1861 = vmatpush.msra.mxu2 %v1736_v13  ;;  %v1742_v13 = vld [vmem:[%s4001_s5 + $0x1a8] sm:$0xff] }
 0x22c   :  { %v1417_v20 = vmax.f32 %v1269_v51, %v1415_v39  ;;  %v1752_v39 = vld [vmem:[%s4001_s5 + $0x1f8] sm:$0xff]  ;;  %v1699_v51 = vld [vmem:[%s4001_s5 + $0x50] sm:$0xff] }
 0x22d   :  { %v1382_v15 = vpop.f32.mrf.mxu1  ;;  %1881 = vmatpush.msra.mxu3 %v1752_v39  ;;  %v1794_v39 = vld [vmem:[%s4001_s5 + $0x348] sm:$0xff] }
 0x22e   :  { %v1386_v48 = vadd.f32 %v1382_v15, %v1356_v55  ;;  %v1734_v15 = vld [vmem:[%s4001_s5 + $0x168] sm:$0xff]  ;;  %v1725_v55 = vld [vmem:[%s4001_s5 + $0x120] sm:$0xff] }
 0x22f   :  { %1882 = vmatpush.msra.mxu3 %v1751_v47  ;;  %v1793_v47 = vld [vmem:[%s4001_s5 + $0x340] sm:$0xff] }
 0x230   :  { %v1459_v25 = vpop.f32.mrf.mxu0 }
 0x231   :  { %v1412_v22 = vpop.f32.mrf.mxu2  ;;  %v1460_v37 = vadd.f32 %v1459_v25, %v1436_v14  ;;  %v1735_v14 = vld [vmem:[%s4001_s5 + $0x170] sm:$0xff]  ;;  %v1702_v25 = vld [vmem:[%s4001_s5 + $0x68] sm:$0xff] }
 0x232   :  { %v1416_v3 = vadd.f32 %v1412_v22, %v1386_v48  ;;  %1862 = vmatpush.msra.mxu2 %v1735_v14  ;;  %v1733_v22 = vld [vmem:[%s4001_s5 + $0x160] sm:$0xff]  ;;  %1823 = vmatpush.msra.mxu0 %v1702_v25  ;;  %v1696_v48 = vld [vmem:[%s4001_s5 + $0x38] sm:$0xff] }
 0x233   :  { %v1439_v26 = vpop.f32.mrf.mxu3  ;;  %v1797_v14 = vld [vmem:[%s4001_s5 + $0x360] sm:$0xff] }
 0x234   :  { %v1418_v57 = vmax.f32 %v1270_v33, %v1416_v3  ;;  %1863 = vmatpush.msra.mxu2 %v1734_v15  ;;  %1824 = vmatpush.msra.mxu0 %v1701_v35  ;;  %v1714_v3 = vld [vmem:[%s4001_s5 + $0xc8] sm:$0xff]  ;;  %v1713_v33 = vld [vmem:[%s4001_s5 + $0xc0] sm:$0xff]  ;;  %v1707_v35 = vld [vmem:[%s4001_s5 + $0x90] sm:$0xff] }
 0x235   :  { %v1482_v29 = vpop.f32.mrf.mxu1  ;;  %v1690_v15 = vld [vmem:[%s4001_s5 + $0x8] sm:$0xff]  ;;  %v1689_v25 = vld [vmem:[%s4001_s5] sm:$0xff] }
 0x236   :  { %v1488_v60 = vadd.f32 %v1482_v29, %v1460_v37  ;;  %1864 = vmatpush.msra.mxu2 %v1733_v22  ;;  %v1720_v37 = vld [vmem:[%s4001_s5 + $0xf8] sm:$0xff] }
 0x237   :  { %1841 = vmatpush.msra.mxu1 %v1720_v37  ;;  %v1796_v22 = vld [vmem:[%s4001_s5 + $0x358] sm:$0xff]  ;;  %v1739_v37 = vld [vmem:[%s4001_s5 + $0x190] sm:$0xff] }
 0x238   :  { %v1462_v54 = vpop.f32.mrf.mxu0  ;;  %1865 = vmatpush.msra.mxu2 %v1732_v30  ;;  %v1708_v30 = vld [vmem:[%s4001_s5 + $0x98] sm:$0xff] }
 0x239   :  { %v1507_v45 = vpop.f32.mrf.mxu2  ;;  %v1463_v44 = vadd.f32 %v1462_v54, %v1439_v26  ;;  %v1731_v26 = vld [vmem:[%s4001_s5 + $0x150] sm:$0xff]  ;;  %1842 = vmatpush.msra.mxu1 %v1719_v43  ;;  %v1750_v54 = vld [vmem:[%s4001_s5 + $0x1e8] sm:$0xff] }
 0x23a   :  { %v1513_v52 = vadd.f32 %v1507_v45, %v1488_v60  ;;  %1866 = vmatpush.msra.mxu2 %v1731_v26  ;;  %v1700_v60 = vld [vmem:[%s4001_s5 + $0x58] sm:$0xff]  ;;  %v1727_v45 = vld [vmem:[%s4001_s5 + $0x130] sm:$0xff]  ;;  %1883 = vmatpush.msra.mxu3 %v1750_v54  ;;  %v1738_v43 = vld [vmem:[%s4001_s5 + $0x188] sm:$0xff] }
 0x23b   :  { %v1537_v42 = vpop.f32.mrf.mxu3  ;;  %1825 = vmatpush.msra.mxu0 %v1700_v60  ;;  %1843 = vmatpush.msra.mxu1 %v1718_v36  ;;  %v1740_v26 = vld [vmem:[%s4001_s5 + $0x198] sm:$0xff]  ;;  %v1706_v60 = vld [vmem:[%s4001_s5 + $0x88] sm:$0xff]  ;;  %v1705_v36 = vld [vmem:[%s4001_s5 + $0x80] sm:$0xff] }
 0x23c   :  { %v1543_v56 = vadd.f32 %v1537_v42, %v1513_v52  ;;  %1867 = vmatpush.msra.mxu2 %v1730_v32  ;;  %v1726_v52 = vld [vmem:[%s4001_s5 + $0x128] sm:$0xff]  ;;  %v1768_v32 = vld [vmem:[%s4001_s5 + $0x278] sm:$0xff]  ;;  %v1765_v54 = vld [vmem:[%s4001_s5 + $0x260] sm:$0xff] }
 0x23d   :  { %v1485_v40 = vpop.f32.mrf.mxu1  ;;  %v1698_v42 = vld [vmem:[%s4001_s5 + $0x48] sm:$0xff]  ;;  %1826 = vmatpush.msra.mxu0 %v1699_v51  ;;  %1844 = vmatpush.msra.mxu1 %v1717_v18  ;;  %v1816_v18 = vld [vmem:[%s4001_s5 + $0x3f8] sm:$0xff] }
 0x23e   :  { %v1545_v46 = vmax.f32 %v1417_v20, %v1543_v56  ;;  %v1489_v19 = vadd.f32 %v1485_v40, %v1463_v44  ;;  %1868 = vmatpush.msra.mxu2 %v1729_v27  ;;  %v1749_v20 = vld [vmem:[%s4001_s5 + $0x1e0] sm:$0xff]  ;;  %v1724_v40 = vld [vmem:[%s4001_s5 + $0x118] sm:$0xff]  ;;  %v1715_v44 = vld [vmem:[%s4001_s5 + $0xd0] sm:$0xff] }
 0x23f   :  { %1827 = vmatpush.msra.mxu0 %v1698_v42  ;;  %v1697_v56 = vld [vmem:[%s4001_s5 + $0x40] sm:$0xff]  ;;  %1884 = vmatpush.msra.mxu3 %v1749_v20  ;;  %v1795_v27 = vld [vmem:[%s4001_s5 + $0x350] sm:$0xff]  ;;  %v1784_v42 = vld [vmem:[%s4001_s5 + $0x2f8] sm:$0xff] }
 0x240   :  { %v1557_v7 = vadd.f32 %v1550_v59, %v1545_v46  ;;  %1869 = vmatpush.msra.mxu2 %v1728_v38  ;;  %1845 = vmatpush.msra.mxu1 %v1716_v58  ;;  %v1723_v46 = vld [vmem:[%s4001_s5 + $0x110] sm:$0xff] }
 0x241   :  { %v1510_v23 = vpop.f32.mrf.mxu2  ;;  %1828 = vmatpush.msra.mxu0 %v1697_v56  ;;  %v1747_v59 = vld [vmem:[%s4001_s5 + $0x1d0] sm:$0xff]  ;;  %1885 = vmatpush.msra.mxu3 %v1748_v16  ;;  %v1782_v16 = vld [vmem:[%s4001_s5 + $0x2e8] sm:$0xff] }
 0x242   :  { %v3402_v41 = vmax.f32 %v1557_v7, 0.0  ;;  %v1514_v49 = vadd.f32 %v1510_v23, %v1489_v19  ;;  %1870 = vmatpush.msra.mxu2 %v1727_v45  ;;  %v1722_v7 = vld [vmem:[%s4001_s5 + $0x108] sm:$0xff]  ;;  %1846 = vmatpush.msra.mxu1 %v1715_v44  ;;  %v1767_v38 = vld [vmem:[%s4001_s5 + $0x270] sm:$0xff] }
 0x243   :  { %v1540_v50 = vpop.f32.mrf.mxu3  ;;  %1829 = vmatpush.msra.mxu0 %v1696_v48  ;;  %v1746_v19 = vld [vmem:[%s4001_s5 + $0x1c8] sm:$0xff]  ;;  %1886 = vmatpush.msra.mxu3 %v1747_v59  ;;  %v1783_v20 = vld [vmem:[%s4001_s5 + $0x2f0] sm:$0xff] }
 0x244   :  { %v1544_v61 = vadd.f32 %v1540_v50, %v1514_v49  ;;  %1572 = vrot.lane.b32.xlu1 %v3402_v41, %s2500_s4  ;;  %v1605_v53 = vrot.slane %v3402_v41, 5  ;;  %v1598_v34 = vrot.slane %v3402_v41, 4  ;;  %1570 = vst.msk [vmem:[#allocation4] sm:$0x1] %vm1569_vm11, %v3402_v41  ;;  %v1612_v63 = vrot.slane %v3402_v41, 6  ;;  %1871 = vmatpush.msra.mxu2 %v1726_v52  ;;  %v1694_v23 = vld [vmem:[%s4001_s5 + $0x28] sm:$0xff] }
 0x245   :  { %v1584_v0 = vrot.slane %v3402_v41, 2  ;;  %v1619_v8 = vrot.slane %v3402_v41, 7  ;;  %v1576_v9 = vrot.slane %v3402_v41, 1  ;;  %v1591_v24 = vrot.slane %v3402_v41, 3  ;;  %1830 = vmatpush.msra.mxu0 %v1695_v4  ;;  %v1721_v49 = vld [vmem:[%s4001_s5 + $0x100] sm:$0xff]  ;;  %1847 = vmatpush.msra.mxu1 %v1714_v3  ;;  %v1766_v45 = vld [vmem:[%s4001_s5 + $0x268] sm:$0xff] }
 0x246   :  { %1606 = vrot.lane.b32.xlu0 %v1605_v53, %s2500_s4  ;;  %1601 = vrot.lane.b32.xlu2 %v1598_v34, %s2500_s4  ;;  %v1546_v1 = vmax.f32 %v1418_v57, %v1544_v61  ;;  %1600 = vst.msk [vmem:[#allocation4 + $0x10] sm:$0x1] %vm1569_vm11, %v1598_v34  ;;  %v1745_v50 = vld [vmem:[%s4001_s5 + $0x1c0] sm:$0xff]  ;;  %v1800_v57 = vld [vmem:[%s4001_s5 + $0x378] sm:$0xff] }
 0x247   :  { %1586 = vst.msk [vmem:[#allocation4 + $0x8] sm:$0x1] %vm1569_vm11, %v1584_v0  ;;  %1872 = vmatpush.msra.mxu2 %v1725_v55  ;;  %1887 = vmatpush.msra.mxu3 %v1746_v19  ;;  %v1693_v61 = vld [vmem:[%s4001_s5 + $0x20] sm:$0xff]  ;;  %v1712_v34 = vld [vmem:[%s4001_s5 + $0xb8] sm:$0xff]  ;;  %v1791_v56 = vld [vmem:[%s4001_s5 + $0x330] sm:$0xff] }
 0x248   :  { %v1558_v2 = vadd.f32 %v1555_v62, %v1546_v1  ;;  %1614 = vst.msk [vmem:[#allocation4 + $0x18] sm:$0x1] %vm1569_vm11, %v1612_v63  ;;  %1831 = vmatpush.msra.mxu0 %v1694_v23  ;;  %1848 = vmatpush.msra.mxu1 %v1713_v33  ;;  %v1744_v62 = vld [vmem:[%s4001_s5 + $0x1b8] sm:$0xff]  ;;  %v1711_v1 = vld [vmem:[%s4001_s5 + $0xb0] sm:$0xff]  ;;  %v1737_v52 = vld [vmem:[%s4001_s5 + $0x180] sm:$0xff] }
 0x249   :  { %1873 = vmatpush.msra.mxu2 %v1724_v40  ;;  %1888 = vmatpush.msra.mxu3 %v1745_v50  ;;  %v1764_v55 = vld [vmem:[%s4001_s5 + $0x258] sm:$0xff]  ;;  %v1815_v58 = vld [vmem:[%s4001_s5 + $0x3f0] sm:$0xff]  ;;  %v1790_v48 = vld [vmem:[%s4001_s5 + $0x328] sm:$0xff] }
 0x24a   :  { %v3419_v6 = vmax.f32 %v1558_v2, 0.0  ;;  %1832 = vmatpush.msra.mxu0 %v1693_v61  ;;  %1849 = vmatpush.msra.mxu1 %v1712_v34  ;;  %v1743_v2 = vld [vmem:[%s4001_s5 + $0x1b0] sm:$0xff]  ;;  %v1814_v44 = vld [vmem:[%s4001_s5 + $0x3e8] sm:$0xff]  ;;  %v1781_v4 = vld [vmem:[%s4001_s5 + $0x2e0] sm:$0xff] }
 0x24b   :  { %1874 = vmatpush.msra.mxu2 %v1723_v46  ;;  %1889 = vmatpush.msra.mxu3 %v1744_v62  ;;  %v1763_v40 = vld [vmem:[%s4001_s5 + $0x250] sm:$0xff]  ;;  %v1762_v59 = vld [vmem:[%s4001_s5 + $0x248] sm:$0xff]  ;;  %v1789_v3 = vld [vmem:[%s4001_s5 + $0x320] sm:$0xff] }
 0x24c   :  { %1620 = vrot.lane.b32.xlu1 %v1619_v8, %s2500_s4  ;;  %v1653_v10 = vrot.slane %v3419_v6, 4  ;;  %v1667_v11 = vrot.slane %v3419_v6, 6  ;;  %v1639_v12 = vrot.slane %v3419_v6, 2  ;;  %1626 = vst.msk [vmem:[#allocation4 + $0x20] sm:$0x1] %vm1569_vm11, %v3419_v6  ;;  %v1660_v28 = vrot.slane %v3419_v6, 5  ;;  %1850 = vmatpush.msra.mxu1 %v1711_v1 }
 0x24d   :  { %v1632_v29 = vrot.slane %v3419_v6, 1  ;;  %v1674_v5 = vrot.slane %v3419_v6, 7  ;;  %v1646_v31 = vrot.slane %v3419_v6, 3  ;;  %1875 = vmatpush.msra.mxu2 %v1722_v7  ;;  %1890 = vmatpush.msra.mxu3 %v1743_v2  ;;  %v1813_v7 = vld [vmem:[%s4001_s5 + $0x3e0] sm:$0xff]  ;;  %v1780_v23 = vld [vmem:[%s4001_s5 + $0x2d8] sm:$0xff]  ;;  %v1779_v50 = vld [vmem:[%s4001_s5 + $0x2d0] sm:$0xff] }
 0x24e   :  { %1615 = vrot.lane.b32.xlu2 %v1612_v63, %s2500_s4  ;;  %1577 = vrot.lane.b32.xlu0 %v1576_v9, %s2500_s4  ;;  %1641 = vst.msk [vmem:[#allocation4 + $0x28] sm:$0x1] %vm1569_vm11, %v1639_v12  ;;  %v1799_v63 = vld [vmem:[%s4001_s5 + $0x370] sm:$0xff]  ;;  %v1761_v19 = vld [vmem:[%s4001_s5 + $0x240] sm:$0xff] }
 0x24f   :  { %1655 = vst.msk [vmem:[#allocation4 + $0x30] sm:$0x1] %vm1569_vm11, %v1653_v10  ;;  %1876 = vmatpush.msra.mxu2 %v1721_v49  ;;  %1891 = vmatpush.msra.mxu3 %v1742_v13  ;;  %v1788_v33 = vld [vmem:[%s4001_s5 + $0x318] sm:$0xff]  ;;  %v1811_v61 = vld [vmem:[%s4001_s5 + $0x3d0] sm:$0xff]  ;;  %v1778_v62 = vld [vmem:[%s4001_s5 + $0x2c8] sm:$0xff] }
 0x250   :  { %1669 = vst.msk [vmem:[#allocation4 + $0x38] sm:$0x1] %vm1569_vm11, %v1667_v11  ;;  %v1760_v49 = vld [vmem:[%s4001_s5 + $0x238] sm:$0xff]  ;;  %v1759_v34 = vld [vmem:[%s4001_s5 + $0x230] sm:$0xff]  ;;  %v1758_v2 = vld [vmem:[%s4001_s5 + $0x228] sm:$0xff] }
 0x251   :  { %1941 = vmatpush.msrb.mxu2 %v1800_v57  ;;  %1892 = vmatpush.msra.mxu3 %v1741_v21  ;;  %v1787_v57 = vld [vmem:[%s4001_s5 + $0x310] sm:$0xff]  ;;  %v1757_v13 = vld [vmem:[%s4001_s5 + $0x220] sm:$0xff] }
 0x252   :  { %v1807_v21 = vld [vmem:[%s4001_s5 + $0x3b0] sm:$0xff]  ;;  %v1753_v41 = vld [vmem:[%s4001_s5 + $0x200] sm:$0xff] }
 0x253   :  { %1942 = vmatpush.msrb.mxu2 %v1799_v63  ;;  %1893 = vmatpush.msra.mxu3 %v1740_v26  ;;  %v1786_v63 = vld [vmem:[%s4001_s5 + $0x308] sm:$0xff] }
 0x254   :  { %1656 = vrot.lane.b32.xlu1 %v1653_v10, %s2500_s4  ;;  %v1798_v10 = vld [vmem:[%s4001_s5 + $0x368] sm:$0xff] }
 0x255   :  { %1943 = vmatpush.msrb.mxu2 %v1798_v10  ;;  %1894 = vmatpush.msra.mxu3 %v1739_v37  ;;  %v1777_v10 = vld [vmem:[%s4001_s5 + $0x2c0] sm:$0xff]  ;;  %v1806_v26 = vld [vmem:[%s4001_s5 + $0x3a8] sm:$0xff] }
 0x256   :  { %1587 = vrot.lane.b32.xlu2 %v1584_v0, %s2500_s4  ;;  %1592 = vrot.lane.b32.xlu0 %v1591_v24, %s2500_s4  ;;  %v1692_v0 = vld [vmem:[%s4001_s5 + $0x18] sm:$0xff]  ;;  %v1773_v37 = vld [vmem:[%s4001_s5 + $0x2a0] sm:$0xff] }
 0x257   :  { %1833 = vmatpush.msra.mxu0 %v1692_v0  ;;  %1944 = vmatpush.msrb.mxu2 %v1797_v14  ;;  %v1810_v0 = vld [vmem:[%s4001_s5 + $0x3c8] sm:$0xff]  ;;  %v1776_v14 = vld [vmem:[%s4001_s5 + $0x2b8] sm:$0xff] }
 0x258   :  { %1895 = vmatpush.msra.mxu3 %v1738_v43  ;;  %v1803_v43 = vld [vmem:[%s4001_s5 + $0x390] sm:$0xff] }
 0x259   :  { %1945 = vmatpush.msrb.mxu2 %v1796_v22  ;;  %v1755_v22 = vld [vmem:[%s4001_s5 + $0x210] sm:$0xff] }
 0x25a   :  { %1896 = vmatpush.msra.mxu3 %v1737_v52 }
 0x25b   :  { %1946 = vmatpush.msrb.mxu2 %v1795_v27 }
 0x25c   :  { %1670 = vrot.lane.b32.xlu1 %v1667_v11, %s2500_s4  ;;  %v1691_v11 = vld [vmem:[%s4001_s5 + $0x10] sm:$0xff]  ;;  %1961 = vmatpush.msrb.mxu3 %v1816_v18 }
 0x25d   :  { %1834 = vmatpush.msra.mxu0 %v1691_v11  ;;  %1947 = vmatpush.msrb.mxu2 %v1794_v39  ;;  %v1785_v11 = vld [vmem:[%s4001_s5 + $0x300] sm:$0xff]  ;;  %v1804_v39 = vld [vmem:[%s4001_s5 + $0x398] sm:$0xff] }
 0x25e   :  { %1661 = vrot.lane.b32.xlu2 %v1660_v28, %s2500_s4  ;;  %1628 = vrot.lane.b32.xlu0 %v3419_v6, %s2500_s4  ;;  %v1995_v6 = vld [vmem:[%s4003_s7 + $0x68] sm:$0xff] }
 0x25f   :  { %1835 = vmatpush.msra.mxu0 %v1690_v15  ;;  %1948 = vmatpush.msrb.mxu2 %v1793_v47  ;;  %v1808_v15 = vld [vmem:[%s4001_s5 + $0x3b8] sm:$0xff] }
 0x260   :  { %1962 = vmatpush.msrb.mxu3 %v1815_v58 }
 0x261   :  { %1836 = vmatpush.msra.mxu0 %v1689_v25  ;;  %v1774_v25 = vld [vmem:[%s4001_s5 + $0x2a8] sm:$0xff] }
 0x262   :  { %1963 = vmatpush.msrb.mxu3 %v1814_v44 }
 0x263   :  { %1901 = vmatpush.msrb.mxu0 %v1768_v32 }
 0x264   :  { %1642 = vrot.lane.b32.xlu1 %v1639_v12, %s2500_s4  ;;  %v1710_v12 = vld [vmem:[%s4001_s5 + $0xa8] sm:$0xff]  ;;  %1964 = vmatpush.msrb.mxu3 %v1813_v7  ;;  %v1993_v7 = vld [vmem:[%s4003_s7 + $0x58] sm:$0xff] }
 0x265   :  { %1851 = vmatpush.msra.mxu1 %v1710_v12  ;;  %1902 = vmatpush.msrb.mxu0 %v1767_v38  ;;  %v1809_v12 = vld [vmem:[%s4001_s5 + $0x3c0] sm:$0xff] }
 0x266   :  { %1633 = vrot.lane.b32.xlu2 %v1632_v29, %s2500_s4  ;;  %1675 = vrot.lane.b32.xlu0 %v1674_v5, %s2500_s4  ;;  %v1805_v38 = vld [vmem:[%s4001_s5 + $0x3a0] sm:$0xff] }
 0x267   :  { %1852 = vmatpush.msra.mxu1 %v1709_v17  ;;  %1903 = vmatpush.msrb.mxu0 %v1766_v45  ;;  %v1775_v17 = vld [vmem:[%s4001_s5 + $0x2b0] sm:$0xff]  ;;  %v1770_v45 = vld [vmem:[%s4001_s5 + $0x288] sm:$0xff] }
 0x269   :  { %1853 = vmatpush.msra.mxu1 %v1708_v30  ;;  %1904 = vmatpush.msrb.mxu0 %v1765_v54 }
 0x26b   :  { %1854 = vmatpush.msra.mxu1 %v1707_v35  ;;  %1905 = vmatpush.msrb.mxu0 %v1764_v55  ;;  %v1754_v35 = vld [vmem:[%s4001_s5 + $0x208] sm:$0xff] }
 0x26d   :  { %1855 = vmatpush.msra.mxu1 %v1706_v60  ;;  %1906 = vmatpush.msrb.mxu0 %v1763_v40  ;;  %v1771_v60 = vld [vmem:[%s4001_s5 + $0x290] sm:$0xff] }
 0x26e   :  { %1647 = vrot.lane.b32.xlu2 %v1646_v31, %s2500_s4 }
 0x26f   :  { %1856 = vmatpush.msra.mxu1 %v1705_v36  ;;  %1907 = vmatpush.msrb.mxu0 %v1762_v59  ;;  %v1769_v36 = vld [vmem:[%s4001_s5 + $0x280] sm:$0xff] }
 0x271   :  { %1921 = vmatpush.msrb.mxu1 %v1784_v42  ;;  %1908 = vmatpush.msrb.mxu0 %v1761_v19  ;;  %v1992_v19 = vld [vmem:[%s4003_s7 + $0x50] sm:$0xff] }
 0x273   :  { %1922 = vmatpush.msrb.mxu1 %v1783_v20  ;;  %1909 = vmatpush.msrb.mxu0 %v1760_v49  ;;  %v1988_v49 = vld [vmem:[%s4003_s7 + $0x30] sm:$0xff] }
 0x275   :  { %1923 = vmatpush.msrb.mxu1 %v1782_v16  ;;  %1910 = vmatpush.msrb.mxu0 %v1759_v34  ;;  %v1984_v34 = vld [vmem:[%s4003_s7 + $0x10] sm:$0xff] }
 0x277   :  { %1924 = vmatpush.msrb.mxu1 %v1781_v4  ;;  %1911 = vmatpush.msrb.mxu0 %v1758_v2  ;;  %v2036_v2 = vld [vmem:[%s4005_s9 + $0x68] sm:$0xff] }
 0x279   :  { %1925 = vmatpush.msrb.mxu1 %v1780_v23  ;;  %1912 = vmatpush.msrb.mxu0 %v1757_v13  ;;  %v1991_v23 = vld [vmem:[%s4003_s7 + $0x48] sm:$0xff]  ;;  %v2034_v13 = vld [vmem:[%s4005_s9 + $0x58] sm:$0xff] }
 0x27b   :  { %1926 = vmatpush.msrb.mxu1 %v1779_v50  ;;  %v1987_v50 = vld [vmem:[%s4003_s7 + $0x28] sm:$0xff] }
 0x27d   :  { %1927 = vmatpush.msrb.mxu1 %v1778_v62  ;;  %v1983_v62 = vld [vmem:[%s4003_s7 + $0x8] sm:$0xff] }
 0x27f   :  { %1928 = vmatpush.msrb.mxu1 %v1777_v10  ;;  %v2461_v10 = vld [vmem:[%s4002_s6] ss:$0 sm:$0xff] }
 0x281   :  { %1929 = vmatpush.msrb.mxu1 %v1776_v14 }
 0x283   :  { %1930 = vmatpush.msrb.mxu1 %v1775_v17 }
 0x285   :  { %1931 = vmatpush.msrb.mxu1 %v1774_v25 }
 0x287   :  { %1932 = vmatpush.msrb.mxu1 %v1773_v37 }
 0x2a0   :  { %v1602_v51 = vpop.permute.xlu2 %1601 }
 0x2a1   :  { %1604 = vst.msk [vmem:[#allocation4 + $0x11] sm:$0x1] %vm1569_vm11, %v1602_v51  ;;  %v1802_v51 = vld [vmem:[%s4001_s5 + $0x388] sm:$0xff] }
 0x2a2   :  { %1611 = vst.msk [vmem:[#allocation4 + $0x11] sm:$0x1] %vm1580_vm12, %v1605_v53  ;;  %v1792_v53 = vld [vmem:[%s4001_s5 + $0x338] sm:$0xff] }
 0x2a3   :  { %1949 = vmatpush.msrb.mxu2 %v1792_v53  ;;  %v1801_v53 = vld [vmem:[%s4001_s5 + $0x380] sm:$0xff] }
 0x2a5   :  { %1950 = vmatpush.msrb.mxu2 %v1791_v56 }
 0x2a7   :  { %1951 = vmatpush.msrb.mxu2 %v1790_v48 }
 0x2a8   :  { %v1616_v46 = vpop.permute.xlu2 %1615 }
 0x2a9   :  { %1618 = vst.msk [vmem:[#allocation4 + $0x19] sm:$0x1] %vm1569_vm11, %v1616_v46  ;;  %1952 = vmatpush.msrb.mxu2 %v1789_v3  ;;  %v1996_v3 = vld [vmem:[%s4003_s7 + $0x70] sm:$0xff] }
 0x2aa   :  { %1625 = vst.msk [vmem:[#allocation4 + $0x19] sm:$0x1] %vm1580_vm12, %v1619_v8  ;;  %v1812_v8 = vld [vmem:[%s4001_s5 + $0x3d8] sm:$0xff] }
 0x2ab   :  { %1953 = vmatpush.msrb.mxu2 %v1788_v33  ;;  %1965 = vmatpush.msrb.mxu3 %v1812_v8  ;;  %v1990_v33 = vld [vmem:[%s4003_s7 + $0x40] sm:$0xff]  ;;  %v1989_v8 = vld [vmem:[%s4003_s7 + $0x38] sm:$0xff] }
 0x2ad   :  { %1954 = vmatpush.msrb.mxu2 %v1787_v57  ;;  %1966 = vmatpush.msrb.mxu3 %v1811_v61  ;;  %v1986_v57 = vld [vmem:[%s4003_s7 + $0x20] sm:$0xff]  ;;  %v1985_v61 = vld [vmem:[%s4003_s7 + $0x18] sm:$0xff] }
 0x2af   :  { %1955 = vmatpush.msrb.mxu2 %v1786_v63  ;;  %1967 = vmatpush.msrb.mxu3 %v1810_v0  ;;  %v1982_v63 = vld [vmem:[%s4003_s7] sm:$0xff]  ;;  %v2038_v0 = vld [vmem:[%s4005_s9 + $0x78] sm:$0xff] }
 0x2b0   :  { %v1588_v1 = vpop.permute.xlu2 %1587 }
 0x2b1   :  { %1590 = vst.msk [vmem:[#allocation4 + $0x9] sm:$0x1] %vm1569_vm11, %v1588_v1  ;;  %1956 = vmatpush.msrb.mxu2 %v1785_v11  ;;  %1968 = vmatpush.msrb.mxu3 %v1809_v12  ;;  %v2037_v1 = vld [vmem:[%s4005_s9 + $0x70] sm:$0xff]  ;;  %v2035_v11 = vld [vmem:[%s4005_s9 + $0x60] sm:$0xff] }
 0x2b2   :  { %1597 = vst.msk [vmem:[#allocation4 + $0x9] sm:$0x1] %vm1580_vm12, %v1591_v24  ;;  %v1756_v24 = vld [vmem:[%s4001_s5 + $0x218] sm:$0xff] }
 0x2b3   :  { %1969 = vmatpush.msrb.mxu3 %v1808_v15  ;;  %1913 = vmatpush.msrb.mxu0 %v1756_v24  ;;  %v2033_v24 = vld [vmem:[%s4005_s9 + $0x50] sm:$0xff] }
 0x2b5   :  { %1970 = vmatpush.msrb.mxu3 %v1807_v21  ;;  %1914 = vmatpush.msrb.mxu0 %v1755_v22  ;;  %v2032_v21 = vld [vmem:[%s4005_s9 + $0x48] sm:$0xff]  ;;  %v2031_v22 = vld [vmem:[%s4005_s9 + $0x40] sm:$0xff] }
 0x2b6   :  { %v1573_v30 = vpop.permute.xlu1 %1572 }
 0x2b7   :  { %1575 = vst.msk [vmem:[#allocation4 + $0x1] sm:$0x1] %vm1569_vm11, %v1573_v30  ;;  %1971 = vmatpush.msrb.mxu3 %v1806_v26  ;;  %1915 = vmatpush.msrb.mxu0 %v1754_v35  ;;  %v2030_v26 = vld [vmem:[%s4005_s9 + $0x38] sm:$0xff] }
 0x2b8   :  { %1583 = vst.msk [vmem:[#allocation4 + $0x1] sm:$0x1] %vm1580_vm12, %v1576_v9  ;;  %v1607_v32 = vpop.permute.xlu0 %1606  ;;  %v1662_v27 = vpop.permute.xlu2 %1661  ;;  %v1772_v9 = vld [vmem:[%s4001_s5 + $0x298] sm:$0xff] }
 0x2b9   :  { %1609 = vst.msk [vmem:[#allocation4 + $0x10] sm:$0x1] %vm1580_vm12, %v1607_v32  ;;  %1972 = vmatpush.msrb.mxu3 %v1805_v38  ;;  %1916 = vmatpush.msrb.mxu0 %v1753_v41  ;;  %v2029_v32 = vld [vmem:[%s4005_s9 + $0x30] sm:$0xff]  ;;  %v2028_v38 = vld [vmem:[%s4005_s9 + $0x28] sm:$0xff] }
 0x2ba   :  { %1664 = vst.msk [vmem:[#allocation4 + $0x30] sm:$0x1] %vm1580_vm12, %v1662_v27  ;;  %1933 = vmatpush.msrb.mxu1 %v1772_v9 }
 0x2bb   :  { %1973 = vmatpush.msrb.mxu3 %v1804_v39  ;;  %v2027_v39 = vld [vmem:[%s4005_s9 + $0x20] sm:$0xff] }
 0x2bc   :  { %1934 = vmatpush.msrb.mxu1 %v1771_v60 }
 0x2bd   :  { %1974 = vmatpush.msrb.mxu3 %v1803_v43  ;;  %v2026_v43 = vld [vmem:[%s4005_s9 + $0x18] sm:$0xff] }
 0x2be   :  { %v1621_v47 = vpop.permute.xlu1 %1620  ;;  %1935 = vmatpush.msrb.mxu1 %v1770_v45 }
 0x2bf   :  { %1623 = vst.msk [vmem:[#allocation4 + $0x18] sm:$0x1] %vm1580_vm12, %v1621_v47  ;;  %1975 = vmatpush.msrb.mxu3 %v1802_v51 }
 0x2c0   :  { %v1634_v52 = vpop.permute.xlu2 %1633  ;;  %v1578_v54 = vpop.permute.xlu0 %1577  ;;  %v1683_v42 = vld [vmem:[#allocation4 + $0x10] sm:$0xff]  ;;  %1936 = vmatpush.msrb.mxu1 %v1769_v36 }
 0x2c1   :  { %1636 = vst.msk [vmem:[#allocation4 + $0x20] sm:$0x1] %vm1580_vm12, %v1634_v52  ;;  %1877 = vmatmul.f32.vlgmr.msra.gmra.mxu2 %v1683_v42  ;;  %1976 = vmatpush.msrb.mxu3 %v1801_v53  ;;  %v2024_v42 = vld [vmem:[%s4005_s9 + $0x8] sm:$0xff]  ;;  %v2023_v53 = vld [vmem:[%s4005_s9] sm:$0xff] }
 0x2c2   :  { %1581 = vst.msk [vmem:[#allocation4] sm:$0x1] %vm1580_vm12, %v1578_v54  ;;  %v2025_v54 = vld [vmem:[%s4005_s9 + $0x10] sm:$0xff]  ;;  %s2072_s9 = sshll.u32 %s4007_s11, 4  ;;  %s2073_s9 = int_to_ptr.hbm [resolvable:$true] %s2072_s9 }
 0x2c6   :  { %v1657_v18 = vpop.permute.xlu1 %1656  ;;  %v1684_v55 = vld [vmem:[#allocation4 + $0x18] sm:$0xff] }
 0x2c7   :  { %1659 = vst.msk [vmem:[#allocation4 + $0x31] sm:$0x1] %vm1569_vm11, %v1657_v18  ;;  %1897 = vmatmul.f32.vlgmr.msra.gmra.mxu3 %v1684_v55  ;;  %v2462_v18 = vld [vmem:[%s4004_s8] ss:$0 sm:$0xff] }
 0x2c8   :  { %1666 = vst.msk [vmem:[#allocation4 + $0x31] sm:$0x1] %vm1580_vm12, %v1660_v28  ;;  %v1648_v20 = vpop.permute.xlu2 %1647  ;;  %v1593_v56 = vpop.permute.xlu0 %1592 }
 0x2c9   :  { %1650 = vst.msk [vmem:[#allocation4 + $0x28] sm:$0x1] %vm1580_vm12, %v1648_v20  ;;  %v1681_v58 = vld [vmem:[#allocation4] sm:$0xff] }
 0x2ca   :  { %1595 = vst.msk [vmem:[#allocation4 + $0x8] sm:$0x1] %vm1580_vm12, %v1593_v56  ;;  %1837 = vmatmul.f32.vlgmr.msra.gmra.mxu0 %v1681_v58  ;;  %v2463_v58 = vld [vmem:[%s4006_s10] ss:$0 sm:$0xff] }
 0x2ce   :  { %v1671_v40 = vpop.permute.xlu1 %1670 }
 0x2cf   :  { %1673 = vst.msk [vmem:[#allocation4 + $0x39] sm:$0x1] %vm1569_vm11, %v1671_v40  ;;  %v1687_v16 = vld [vmem:[#allocation4 + $0x30] sm:$0xff] }
 0x2d0   :  { %1680 = vst.msk [vmem:[#allocation4 + $0x39] sm:$0x1] %vm1580_vm12, %v1674_v5  ;;  %1957 = vmatmul.f32.vlgmr.msrb.gmra.mxu2 %v1687_v16  ;;  %v1629_v48 = vpop.permute.xlu0 %1628 }
 0x2d1   :  { %1631 = vst.msk [vmem:[#allocation4 + $0x21] sm:$0x1] %vm1569_vm11, %v1629_v48  ;;  %v1682_v28 = vld [vmem:[#allocation4 + $0x8] sm:$0xff] }
 0x2d2   :  { %1638 = vst.msk [vmem:[#allocation4 + $0x21] sm:$0x1] %vm1580_vm12, %v1632_v29  ;;  %1857 = vmatmul.f32.vlgmr.msra.gmra.mxu1 %v1682_v28  ;;  %v1997_v29 = vld [vmem:[%s4003_s7 + $0x78] sm:$0xff] }
 0x2d3   :  { %2002 = vmatpush.msra.mxu0 %v1997_v29  ;;  %2043 = vmatpush.msra.mxu1 %v2038_v0 }
 0x2d5   :  { %2003 = vmatpush.msra.mxu0 %v1996_v3  ;;  %2044 = vmatpush.msra.mxu1 %v2037_v1 }
 0x2d6   :  { %v1643_v44 = vpop.permute.xlu1 %1642 }
 0x2d7   :  { %1645 = vst.msk [vmem:[#allocation4 + $0x29] sm:$0x1] %vm1569_vm11, %v1643_v44  ;;  %2004 = vmatpush.msra.mxu0 %v1995_v6  ;;  %2045 = vmatpush.msra.mxu1 %v2036_v2 }
 0x2d8   :  { %1652 = vst.msk [vmem:[#allocation4 + $0x29] sm:$0x1] %vm1580_vm12, %v1646_v31  ;;  %v1676_v46 = vpop.permute.xlu0 %1675  ;;  %v1994_v31 = vld [vmem:[%s4003_s7 + $0x60] sm:$0xff] }
 0x2d9   :  { %1678 = vst.msk [vmem:[#allocation4 + $0x38] sm:$0x1] %vm1580_vm12, %v1676_v46  ;;  %v1685_v5 = vld [vmem:[#allocation4 + $0x20] sm:$0xff]  ;;  %2005 = vmatpush.msra.mxu0 %v1994_v31  ;;  %2046 = vmatpush.msra.mxu1 %v2035_v11 }
 0x2da   :  { %1917 = vmatmul.f32.vlgmr.msrb.gmra.mxu0 %v1685_v5 }
 0x2db   :  { %2006 = vmatpush.msra.mxu0 %v1993_v7  ;;  %2047 = vmatpush.msra.mxu1 %v2034_v13 }
 0x2dd   :  { %2007 = vmatpush.msra.mxu0 %v1992_v19  ;;  %2048 = vmatpush.msra.mxu1 %v2033_v24 }
 0x2df   :  { %v1686_v59 = vld [vmem:[#allocation4 + $0x28] sm:$0xff]  ;;  %2008 = vmatpush.msra.mxu0 %v1991_v23  ;;  %2049 = vmatpush.msra.mxu1 %v2032_v21 }
 0x2e0   :  { %1937 = vmatmul.f32.vlgmr.msrb.gmra.mxu1 %v1686_v59  ;;  %v1688_v4 = vld [vmem:[#allocation4 + $0x38] sm:$0xff] }
 0x2e1   :  { %1977 = vmatmul.f32.vlgmr.msrb.gmra.mxu3 %v1688_v4  ;;  %2009 = vmatpush.msra.mxu0 %v1990_v33 }
 0x2e2   :  { %2050 = vmatpush.msra.mxu1 %v2031_v22 }
 0x2e3   :  { %2010 = vmatpush.msra.mxu0 %v1989_v8 }
 0x2e4   :  { %2051 = vmatpush.msra.mxu1 %v2030_v26 }
 0x2e5   :  { %2011 = vmatpush.msra.mxu0 %v1988_v49 }
 0x2e6   :  { %2052 = vmatpush.msra.mxu1 %v2029_v32 }
 0x2e7   :  { %2012 = vmatpush.msra.mxu0 %v1987_v50 }
 0x2e8   :  { %2053 = vmatpush.msra.mxu1 %v2028_v38 }
 0x2e9   :  { %2013 = vmatpush.msra.mxu0 %v1986_v57 }
 0x2ea   :  { %2054 = vmatpush.msra.mxu1 %v2027_v39 }
 0x2eb   :  { %2014 = vmatpush.msra.mxu0 %v1985_v61 }
 0x2ec   :  { %2055 = vmatpush.msra.mxu1 %v2026_v43 }
 0x2ed   :  { %2015 = vmatpush.msra.mxu0 %v1984_v34 }
 0x2ee   :  { %2056 = vmatpush.msra.mxu1 %v2025_v54 }
 0x2ef   :  { %2016 = vmatpush.msra.mxu0 %v1983_v62 }
 0x2f0   :  { %2057 = vmatpush.msra.mxu1 %v2024_v42 }
 0x2f1   :  { %2017 = vmatpush.msra.mxu0 %v1982_v63 }
 0x2f2   :  { %2058 = vmatpush.msra.mxu1 %v2023_v53 }
 0x344   :  { %v1878_v25 = vpop.f32.mrf.mxu2 }
 0x347   :  { %v1838_v12 = vpop.f32.mrf.mxu0 }
 0x348   :  { %v1839_v15 = vadd.f32 %v2461_v10, %v1838_v12 }
 0x34a   :  { %v1898_v27 = vpop.f32.mrf.mxu3 }
 0x34f   :  { %v1858_v14 = vpop.f32.mrf.mxu1 }
 0x350   :  { %v1859_v17 = vadd.f32 %v1858_v14, %v1839_v15 }
 0x352   :  { %v1879_v30 = vadd.f32 %v1878_v25, %v1859_v17 }
 0x353   :  { %v1958_v45 = vpop.f32.mrf.mxu2 }
 0x354   :  { %v1899_v37 = vadd.f32 %v1898_v27, %v1879_v30 }
 0x357   :  { %v1918_v35 = vpop.f32.mrf.mxu0 }
 0x358   :  { %v1919_v41 = vadd.f32 %v1918_v35, %v1899_v37 }
 0x35d   :  { %v1938_v9 = vpop.f32.mrf.mxu1 }
 0x35e   :  { %v1939_v60 = vadd.f32 %v1938_v9, %v1919_v41 }
 0x360   :  { %v1959_v47 = vadd.f32 %v1958_v45, %v1939_v60 }
 0x364   :  { %v1978_v51 = vpop.f32.mrf.mxu3 }
 0x365   :  { %v1979_v36 = vadd.f32 %v1978_v51, %v1959_v47 }
 0x367   :  { %v1981_v52 = vmax.f32 %v1979_v36, 0.0 }
 0x369   :  { %2018 = vmatmul.f32.vlgmr.msra.gmra.mxu0 %v1981_v52 }
 0x3e6   :  { %v2019_v55 = vpop.f32.mrf.mxu0 }
 0x3e7   :  { %v2020_v20 = vadd.f32 %v2462_v18, %v2019_v55 }
 0x3e9   :  { %v2022_v56 = vmax.f32 %v2020_v20, 0.0 }
 0x3eb   :  { %2059 = vmatmul.f32.vlgmr.msra.gmra.mxu1 %v2022_v56 }
 0x468   :  { %v2060_v40 = vpop.f32.mrf.mxu1 }
 0x469   :  { %v2061_v16 = vadd.f32 %v2463_v58, %v2060_v40 }
 0x46b   :  { %2064 = vst.msk [vmem:[#allocation5] sm:$0x3] %vm2063_vm13, %v2061_v16 }
 0x46c   :  { %2075 = dma.vmem_to_hbm [thread:$0]  %s2071_s18, 32, %s2073_s9, [#allocation6]  }
 0x46d   :  { %2488 = dma.done.wait [#allocation6], 32  }
 0x46e   :  { %2489 = vsyncadd [#allocation6], 4294967264 }
 0x46f   :  { %2080 = vsyncpa [#allocation6], 1 }

</bundles_post_ra>
